<compile_context>
chip_gen: v6e
topology: v6e:2x2x1
jax: 0.10.0
libtpu: 0.0.40
codegen_flags: <defaults>
</compile_context>

<pallas_src>
import numpy as np

import jax
import jax.numpy as jnp
from jax.experimental import pallas as pl
from jax.experimental.pallas import tpu as pltpu

# ---- small hyperparameters consistent with the module's structure ----
# (scaled-down n_embd / n_head / n_layer / block_size; head_size stays 64)
N_EMBD = 128            # n_embd
N_HEAD = 2              # n_head
HEAD_SIZE = N_EMBD // N_HEAD
N_LAYER = 2             # n_layer
BLOCK_SIZE = 16         # block_size (max context)
VOCAB_SIZE = 256        # vocab_size
EPS = 1e-5              # PyTorch LayerNorm default eps
NEG_BIG = -1e30         # large finite negative (robust stand-in for -inf)

# concatenated (token | position) embedding table rows, padded up to a
# multiple of 128 so the two-hot gather matmul has an MXU-aligned K dim.
EMB_ROWS = ((VOCAB_SIZE + BLOCK_SIZE + 127) // 128) * 128


# ---------------- in-kernel helpers (f32 math) ----------------
def _layernorm(x, g, b):
    mu = jnp.mean(x, axis=-1, keepdims=True)
    var = jnp.mean(jnp.square(x - mu), axis=-1, keepdims=True)
    return (x - mu) * jax.lax.rsqrt(var + EPS) * g + b


def _softmax_lastdim(x):
    # NOTE: approx reciprocal (EUP slot) => ~1e-4 rel. error vs exact divide.
    m = jnp.max(x, axis=-1, keepdims=True)
    e = jnp.exp(x - m)
    return e * pl.reciprocal(jnp.sum(e, axis=-1, keepdims=True), approx=True)


# ---------------- fused Pallas kernel (whole batch, all layers) ----------------
def gpt_fused_kernel(ids_ref, mask_ref, emb_ref,
                     wqkv_ref, wproj_ref, w1_ref, w2_ref, wlm_ref,
                     vec_ref, b1_ref, lnf_ref, blm_ref,
                     o_ref):
    BT = ids_ref.shape[0]
    C = N_EMBD
    HS = HEAD_SIZE
    scale = float(N_EMBD) ** -0.5             # module quirk: C**-0.5 (C = n_embd)

    # ---- fused token + position embedding: one "two-hot" MXU matmul ----
    tok_ids = ids_ref[:, 0:1]                                  # (BT, 1) int32
    pos_ids = ids_ref[:, 1:2]                                  # (BT, 1) int32 (offset by vocab)
    col = jax.lax.broadcasted_iota(jnp.int32, (BT, EMB_ROWS), 1)
    hot = jnp.where(jnp.logical_or(col == tok_ids, col == pos_ids),
                    1.0, 0.0).astype(jnp.bfloat16)             # (BT, EMB_ROWS)
    # = tok_emb[idx] + pos_emb[t], accumulated in f32
    x = jnp.dot(hot, emb_ref[...], preferred_element_type=jnp.float32)   # (BT, C)

    # additive causal + batch-block-diagonal mask, built once, reused per layer
    mask_add = mask_ref[...]                                   # (BT, BT) f32 of {0, -1e30}

    for l in range(N_LAYER):                                   # static unroll (N_LAYER tiny)
        vec = vec_ref[l]                                       # (6, C) packed small params
        ln1_g, ln1_b = vec[0:1, :], vec[1:2, :]
        ln2_g, ln2_b = vec[2:3, :], vec[3:4, :]
        bproj, b2 = vec[4:5, :], vec[5:6, :]

        # ---- multi-head self-attention on LN1(x) ----
        h1 = _layernorm(x, ln1_g, ln1_b).astype(jnp.bfloat16)
        qkv = jnp.dot(h1, wqkv_ref[l],
                      preferred_element_type=jnp.float32)      # (BT, 3C) fused q|k|v proj
        sa = None
        for h in range(N_HEAD):
            q_h = qkv[:, h * HS:(h + 1) * HS].astype(jnp.bfloat16)
            k_h = qkv[:, C + h * HS:C + (h + 1) * HS].astype(jnp.bfloat16)
            v_h = qkv[:, 2 * C + h * HS:2 * C + (h + 1) * HS].astype(jnp.bfloat16)
            # q @ k^T without materializing a transpose
            att = jax.lax.dot_general(q_h, k_h, (((1,), (1,)), ((), ())),
                                      preferred_element_type=jnp.float32)   # (BT, BT)
            att = att * scale + mask_add
            att = _softmax_lastdim(att).astype(jnp.bfloat16)    # dropout = identity
            out_h = jnp.dot(att, v_h,
                            preferred_element_type=jnp.float32)             # (BT, HS)
            # head-concat + output proj fused: accumulate out_h @ wproj[head rows]
            contrib = jnp.dot(out_h.astype(jnp.bfloat16),
                              wproj_ref[l, h * HS:(h + 1) * HS, :],
                              preferred_element_type=jnp.float32)           # (BT, C)
            sa = contrib if sa is None else sa + contrib
        x = x + sa + bproj                                     # residual

        # ---- feed-forward on LN2(x) ----
        h2 = _layernorm(x, ln2_g, ln2_b).astype(jnp.bfloat16)
        f = jnp.dot(h2, w1_ref[l], preferred_element_type=jnp.float32) + b1_ref[l]
        f = jnp.maximum(f, 0.0).astype(jnp.bfloat16)           # ReLU
        f = jnp.dot(f, w2_ref[l], preferred_element_type=jnp.float32) + b2
        x = x + f                                              # residual

    # ---- final LayerNorm + lm_head (lane-dense V = multiple of 128) ----
    hf = _layernorm(x, lnf_ref[0:1, :], lnf_ref[1:2, :]).astype(jnp.bfloat16)
    o_ref[...] = jnp.dot(hf, wlm_ref[...],
                         preferred_element_type=jnp.float32) + blm_ref[...]


# ---------------- wrapper (single un-gridded pallas_call) ----------------
def run_gpt_fused(ids2, mask_add, params):
    BT = ids2.shape[0]
    args = (ids2, mask_add, params["emb"],
            params["wqkv"], params["wproj"], params["w1"], params["w2"], params["wlm"],
            params["ln_vecs"], params["b1"], params["lnf"], params["blm"])
    return pl.pallas_call(
        gpt_fused_kernel,
        out_shape=jax.ShapeDtypeStruct((BT, VOCAB_SIZE), jnp.float32),
        compiler_params=pltpu.CompilerParams(
            vmem_limit_bytes=32 * 1024 * 1024,   # ~1 MB actually used (bf16 weights)
        ),
    )(*args)


# ---------------- parameter initialization (deterministic) ----------------
def init_params(key):
    def normal_bf16(k, shape, scale=0.02):
        return (scale * jax.random.normal(k, shape, dtype=jnp.float32)).astype(jnp.bfloat16)

    keys = jax.random.split(key, 3 + 4 * N_LAYER)
    k_tok, k_pos, k_lm = keys[0], keys[1], keys[2]
    lkeys = keys[3:].reshape(N_LAYER, 4, 2)

    # concatenated (token | position) embedding table, zero-padded to EMB_ROWS
    tok = normal_bf16(k_tok, (VOCAB_SIZE, N_EMBD))
    pos = normal_bf16(k_pos, (BLOCK_SIZE, N_EMBD))
    pad = jnp.zeros((EMB_ROWS - VOCAB_SIZE - BLOCK_SIZE, N_EMBD), jnp.bfloat16)
    emb = jnp.concatenate([tok, pos, pad], axis=0)

    # packed per-layer small params: rows = [ln1_g, ln1_b, ln2_g, ln2_b, bproj, b2]
    ln_vecs = jnp.zeros((N_LAYER, 6, N_EMBD), jnp.float32)
    ln_vecs = ln_vecs.at[:, 0, :].set(1.0).at[:, 2, :].set(1.0)

    params = {
        "emb": emb,                                                          # (EMB_ROWS, C) bf16
        "wqkv": jnp.stack([normal_bf16(lkeys[l, 0], (N_EMBD, 3 * N_EMBD))
                           for l in range(N_LAYER)]),                        # bf16
        "wproj": jnp.stack([normal_bf16(lkeys[l, 1], (N_EMBD, N_EMBD))
                            for l in range(N_LAYER)]),                       # bf16
        "w1": jnp.stack([normal_bf16(lkeys[l, 2], (N_EMBD, 4 * N_EMBD))
                         for l in range(N_LAYER)]),                          # bf16
        "w2": jnp.stack([normal_bf16(lkeys[l, 3], (4 * N_EMBD, N_EMBD))
                         for l in range(N_LAYER)]),                          # bf16
        "wlm": normal_bf16(k_lm, (N_EMBD, VOCAB_SIZE)),                      # bf16
        "ln_vecs": ln_vecs,                                                  # (L, 6, C) f32
        "b1": jnp.zeros((N_LAYER, 1, 4 * N_EMBD), jnp.float32),              # (L, 1, 4C) f32
        "lnf": jnp.concatenate([jnp.ones((1, N_EMBD), jnp.float32),
                                jnp.zeros((1, N_EMBD), jnp.float32)], 0),    # (2, C) f32
        "blm": jnp.zeros((1, VOCAB_SIZE), jnp.float32),                      # (1, V) f32
    }
    return params


# ---------------- full forward (index prep + single fused Pallas call) ----------------
@jax.jit
def gpt_forward(idx, params):
    B, T = idx.shape
    if T > BLOCK_SIZE:
        raise ValueError(f"sequence length {T} exceeds block_size {BLOCK_SIZE}")

    flat_tok = idx.reshape(B * T).astype(jnp.int32)
    pos_ids = jnp.asarray(np.tile(np.arange(T, dtype=np.int32), B) + VOCAB_SIZE)
    ids2 = jnp.stack([flat_tok, pos_ids], axis=-1)             # (B*T, 2) int32

    # additive causal mask, block-diagonal over the flattened batch (trace-time const)
    rows = np.arange(B * T)
    bi, ti = rows // T, rows % T
    allow = (bi[:, None] == bi[None, :]) & (ti[None, :] <= ti[:, None])
    mask_add = jnp.asarray(np.where(allow, 0.0, NEG_BIG).astype(np.float32))  # (BT, BT)

    logits = run_gpt_fused(ids2, mask_add, params)             # one pallas_call for everything
    return logits.reshape(B, T, VOCAB_SIZE), None              # loss=None (targets path TODO)


if __name__ == "__main__":
    key = jax.random.PRNGKey(0)
    pkey, ikey = jax.random.split(key)
    params = init_params(pkey)

    B, T = 2, BLOCK_SIZE                                       # (batch, seq)
    idx = jax.random.randint(ikey, (B, T), 0, VOCAB_SIZE, dtype=jnp.int32)

    logits, loss = gpt_forward(idx, params)
    jax.block_until_ready(logits)
    assert logits.shape == (B, T, VOCAB_SIZE)
    assert loss is None
    assert bool(jnp.all(jnp.isfinite(logits)))
    print("KERNEL_OK")
</pallas_src>

<mosaic_0001>
module attributes {stable_mosaic.version = 11 : i64} {
  func.func @gpt_fused_kernel(%arg0: memref<32x2xi32, #tpu.memory_space<vmem>>, %arg1: memref<32x32xf32, #tpu.memory_space<vmem>>, %arg2: memref<384x128xbf16, #tpu.memory_space<vmem>>, %arg3: memref<2x128x384xbf16, #tpu.memory_space<vmem>>, %arg4: memref<2x128x128xbf16, #tpu.memory_space<vmem>>, %arg5: memref<2x128x512xbf16, #tpu.memory_space<vmem>>, %arg6: memref<2x512x128xbf16, #tpu.memory_space<vmem>>, %arg7: memref<128x256xbf16, #tpu.memory_space<vmem>>, %arg8: memref<2x6x128xf32, #tpu.memory_space<vmem>>, %arg9: memref<2x1x512xf32, #tpu.memory_space<vmem>>, %arg10: memref<2x128xf32, #tpu.memory_space<vmem>>, %arg11: memref<1x256xf32, #tpu.memory_space<vmem>>, %arg12: memref<32x256xf32, #tpu.memory_space<vmem>>) attributes {dimension_semantics = [], scalar_prefetch = 0 : i64, scratch_operands = 0 : i64, tpu.core_type = #tpu.core_type<tc>} {
    %c0 = arith.constant 0 : index
    %c0_0 = arith.constant 0 : index
    %0 = vector.load %arg0[%c0, %c0_0] : memref<32x2xi32, #tpu.memory_space<vmem>>, vector<32x1xi32>
    %c0_1 = arith.constant 0 : index
    %c1 = arith.constant 1 : index
    %1 = vector.load %arg0[%c0_1, %c1] : memref<32x2xi32, #tpu.memory_space<vmem>>, vector<32x1xi32>
    %2 = tpu.iota {dimensions = array<i32: 1>} : vector<32x384xi32>
    %3 = vector.broadcast %0 : vector<32x1xi32> to vector<32x384xi32>
    %4 = arith.cmpi eq, %2, %3 : vector<32x384xi32>
    %5 = vector.broadcast %1 : vector<32x1xi32> to vector<32x384xi32>
    %6 = arith.cmpi eq, %2, %5 : vector<32x384xi32>
    %7 = arith.ori %4, %6 : vector<32x384xi1>
    %cst = arith.constant 1.000000e+00 : f32
    %cst_2 = arith.constant 0.000000e+00 : f32
    %8 = vector.broadcast %cst : f32 to vector<32x384xf32>
    %9 = vector.broadcast %cst_2 : f32 to vector<32x384xf32>
    %10 = arith.select %7, %8, %9 : vector<32x384xi1>, vector<32x384xf32>
    %11 = arith.truncf %10 : vector<32x384xf32> to vector<32x384xbf16>
    %c0_3 = arith.constant 0 : index
    %c0_4 = arith.constant 0 : index
    %12 = vector.load %arg2[%c0_3, %c0_4] : memref<384x128xbf16, #tpu.memory_space<vmem>>, vector<384x128xbf16>
    %cst_5 = arith.constant dense<0.000000e+00> : vector<32x128xf32>
    %13 = tpu.matmul %11, %12, %cst_5 {dimension_numbers = #tpu.dot_dimension_numbers<[1], [0], [0], [1], [0, 0, 1, 1], [], []>} : vector<32x384xbf16>, vector<384x128xbf16>, vector<32x128xf32> -> vector<32x128xf32>
    %c0_6 = arith.constant 0 : index
    %c0_7 = arith.constant 0 : index
    %14 = vector.load %arg1[%c0_6, %c0_7] : memref<32x32xf32, #tpu.memory_space<vmem>>, vector<32x32xf32>
    %c0_8 = arith.constant 0 : index
    %c0_9 = arith.constant 0 : index
    %c0_10 = arith.constant 0 : index
    %15 = vector.load %arg8[%c0_8, %c0_9, %c0_10] : memref<2x6x128xf32, #tpu.memory_space<vmem>>, vector<1x6x128xf32>
    %16 = vector.shape_cast %15 : vector<1x6x128xf32> to vector<6x128xf32>
    %17 = vector.extract_strided_slice %16 {offsets = [0, 0], sizes = [1, 128], strides = [1, 1]} : vector<6x128xf32> to vector<1x128xf32>
    %18 = vector.extract_strided_slice %16 {offsets = [1, 0], sizes = [1, 128], strides = [1, 1]} : vector<6x128xf32> to vector<1x128xf32>
    %19 = vector.extract_strided_slice %16 {offsets = [2, 0], sizes = [1, 128], strides = [1, 1]} : vector<6x128xf32> to vector<1x128xf32>
    %20 = vector.extract_strided_slice %16 {offsets = [3, 0], sizes = [1, 128], strides = [1, 1]} : vector<6x128xf32> to vector<1x128xf32>
    %21 = vector.extract_strided_slice %16 {offsets = [4, 0], sizes = [1, 128], strides = [1, 1]} : vector<6x128xf32> to vector<1x128xf32>
    %22 = vector.extract_strided_slice %16 {offsets = [5, 0], sizes = [1, 128], strides = [1, 1]} : vector<6x128xf32> to vector<1x128xf32>
    %cst_11 = arith.constant dense<0.000000e+00> : vector<32xf32>
    %23 = vector.multi_reduction <add>, %13, %cst_11 [1] : vector<32x128xf32> to vector<32xf32>
    %24 = vector.shape_cast %23 : vector<32xf32> to vector<32x1xf32>
    %cst_12 = arith.constant 1.280000e+02 : f32
    %25 = vector.broadcast %cst_12 : f32 to vector<32x1xf32>
    %26 = arith.divf %24, %25 : vector<32x1xf32>
    %27 = vector.broadcast %26 : vector<32x1xf32> to vector<32x128xf32>
    %28 = arith.subf %13, %27 : vector<32x128xf32>
    %29 = arith.mulf %28, %28 : vector<32x128xf32>
    %cst_13 = arith.constant dense<0.000000e+00> : vector<32xf32>
    %30 = vector.multi_reduction <add>, %29, %cst_13 [1] : vector<32x128xf32> to vector<32xf32>
    %31 = vector.shape_cast %30 : vector<32xf32> to vector<32x1xf32>
    %cst_14 = arith.constant 1.280000e+02 : f32
    %32 = vector.broadcast %cst_14 : f32 to vector<32x1xf32>
    %33 = arith.divf %31, %32 : vector<32x1xf32>
    %34 = vector.broadcast %26 : vector<32x1xf32> to vector<32x128xf32>
    %35 = arith.subf %13, %34 : vector<32x128xf32>
    %cst_15 = arith.constant 9.99999974E-6 : f32
    %36 = vector.broadcast %cst_15 : f32 to vector<32x1xf32>
    %37 = arith.addf %33, %36 : vector<32x1xf32>
    %38 = math.rsqrt %37 : vector<32x1xf32>
    %39 = vector.broadcast %38 : vector<32x1xf32> to vector<32x128xf32>
    %40 = arith.mulf %35, %39 : vector<32x128xf32>
    %41 = vector.broadcast %17 : vector<1x128xf32> to vector<32x128xf32>
    %42 = arith.mulf %40, %41 : vector<32x128xf32>
    %43 = vector.broadcast %18 : vector<1x128xf32> to vector<32x128xf32>
    %44 = arith.addf %42, %43 : vector<32x128xf32>
    %45 = arith.truncf %44 : vector<32x128xf32> to vector<32x128xbf16>
    %c0_16 = arith.constant 0 : index
    %c0_17 = arith.constant 0 : index
    %c0_18 = arith.constant 0 : index
    %46 = vector.load %arg3[%c0_16, %c0_17, %c0_18] : memref<2x128x384xbf16, #tpu.memory_space<vmem>>, vector<1x128x384xbf16>
    %47 = vector.shape_cast %46 : vector<1x128x384xbf16> to vector<128x384xbf16>
    %cst_19 = arith.constant dense<0.000000e+00> : vector<32x384xf32>
    %48 = tpu.matmul %45, %47, %cst_19 {dimension_numbers = #tpu.dot_dimension_numbers<[1], [0], [0], [1], [0, 0, 1, 1], [], []>} : vector<32x128xbf16>, vector<128x384xbf16>, vector<32x384xf32> -> vector<32x384xf32>
    %49 = vector.extract_strided_slice %48 {offsets = [0, 0], sizes = [32, 64], strides = [1, 1]} : vector<32x384xf32> to vector<32x64xf32>
    %50 = arith.truncf %49 : vector<32x64xf32> to vector<32x64xbf16>
    %51 = vector.extract_strided_slice %48 {offsets = [0, 128], sizes = [32, 64], strides = [1, 1]} : vector<32x384xf32> to vector<32x64xf32>
    %52 = arith.truncf %51 : vector<32x64xf32> to vector<32x64xbf16>
    %53 = vector.extract_strided_slice %48 {offsets = [0, 256], sizes = [32, 64], strides = [1, 1]} : vector<32x384xf32> to vector<32x64xf32>
    %54 = arith.truncf %53 : vector<32x64xf32> to vector<32x64xbf16>
    %cst_20 = arith.constant dense<0.000000e+00> : vector<32x32xf32>
    %55 = tpu.matmul %50, %52, %cst_20 {dimension_numbers = #tpu.dot_dimension_numbers<[1], [1], [0], [0], [0, 0, 1, 0], [], []>} : vector<32x64xbf16>, vector<32x64xbf16>, vector<32x32xf32> -> vector<32x32xf32>
    %cst_21 = arith.constant 0.0883883461 : f32
    %56 = vector.broadcast %cst_21 : f32 to vector<32x32xf32>
    %57 = arith.mulf %55, %56 : vector<32x32xf32>
    %58 = arith.addf %57, %14 : vector<32x32xf32>
    %cst_22 = arith.constant dense<0xFF800000> : vector<32xf32>
    %59 = vector.multi_reduction <maximumf>, %58, %cst_22 [1] : vector<32x32xf32> to vector<32xf32>
    %60 = vector.shape_cast %59 : vector<32xf32> to vector<32x1xf32>
    %61 = vector.broadcast %60 : vector<32x1xf32> to vector<32x32xf32>
    %62 = arith.subf %58, %61 : vector<32x32xf32>
    %63 = math.exp %62 : vector<32x32xf32>
    %cst_23 = arith.constant dense<0.000000e+00> : vector<32xf32>
    %64 = vector.multi_reduction <add>, %63, %cst_23 [1] : vector<32x32xf32> to vector<32xf32>
    %65 = vector.shape_cast %64 : vector<32xf32> to vector<32x1xf32>
    %66 = tpu.reciprocal %65 {approx = true} : vector<32x1xf32> -> vector<32x1xf32>
    %67 = vector.broadcast %66 : vector<32x1xf32> to vector<32x32xf32>
    %68 = arith.mulf %63, %67 : vector<32x32xf32>
    %69 = arith.truncf %68 : vector<32x32xf32> to vector<32x32xbf16>
    %cst_24 = arith.constant dense<0.000000e+00> : vector<32x64xf32>
    %70 = tpu.matmul %69, %54, %cst_24 {dimension_numbers = #tpu.dot_dimension_numbers<[1], [0], [0], [1], [0, 0, 1, 1], [], []>} : vector<32x32xbf16>, vector<32x64xbf16>, vector<32x64xf32> -> vector<32x64xf32>
    %71 = arith.truncf %70 : vector<32x64xf32> to vector<32x64xbf16>
    %c0_25 = arith.constant 0 : index
    %c0_26 = arith.constant 0 : index
    %c0_27 = arith.constant 0 : index
    %72 = vector.load %arg4[%c0_25, %c0_26, %c0_27] : memref<2x128x128xbf16, #tpu.memory_space<vmem>>, vector<1x64x128xbf16>
    %73 = vector.shape_cast %72 : vector<1x64x128xbf16> to vector<64x128xbf16>
    %cst_28 = arith.constant dense<0.000000e+00> : vector<32x128xf32>
    %74 = tpu.matmul %71, %73, %cst_28 {dimension_numbers = #tpu.dot_dimension_numbers<[1], [0], [0], [1], [0, 0, 1, 1], [], []>} : vector<32x64xbf16>, vector<64x128xbf16>, vector<32x128xf32> -> vector<32x128xf32>
    %75 = vector.extract_strided_slice %48 {offsets = [0, 64], sizes = [32, 64], strides = [1, 1]} : vector<32x384xf32> to vector<32x64xf32>
    %76 = arith.truncf %75 : vector<32x64xf32> to vector<32x64xbf16>
    %77 = vector.extract_strided_slice %48 {offsets = [0, 192], sizes = [32, 64], strides = [1, 1]} : vector<32x384xf32> to vector<32x64xf32>
    %78 = arith.truncf %77 : vector<32x64xf32> to vector<32x64xbf16>
    %79 = vector.extract_strided_slice %48 {offsets = [0, 320], sizes = [32, 64], strides = [1, 1]} : vector<32x384xf32> to vector<32x64xf32>
    %80 = arith.truncf %79 : vector<32x64xf32> to vector<32x64xbf16>
    %cst_29 = arith.constant dense<0.000000e+00> : vector<32x32xf32>
    %81 = tpu.matmul %76, %78, %cst_29 {dimension_numbers = #tpu.dot_dimension_numbers<[1], [1], [0], [0], [0, 0, 1, 0], [], []>} : vector<32x64xbf16>, vector<32x64xbf16>, vector<32x32xf32> -> vector<32x32xf32>
    %cst_30 = arith.constant 0.0883883461 : f32
    %82 = vector.broadcast %cst_30 : f32 to vector<32x32xf32>
    %83 = arith.mulf %81, %82 : vector<32x32xf32>
    %84 = arith.addf %83, %14 : vector<32x32xf32>
    %cst_31 = arith.constant dense<0xFF800000> : vector<32xf32>
    %85 = vector.multi_reduction <maximumf>, %84, %cst_31 [1] : vector<32x32xf32> to vector<32xf32>
    %86 = vector.shape_cast %85 : vector<32xf32> to vector<32x1xf32>
    %87 = vector.broadcast %86 : vector<32x1xf32> to vector<32x32xf32>
    %88 = arith.subf %84, %87 : vector<32x32xf32>
    %89 = math.exp %88 : vector<32x32xf32>
    %cst_32 = arith.constant dense<0.000000e+00> : vector<32xf32>
    %90 = vector.multi_reduction <add>, %89, %cst_32 [1] : vector<32x32xf32> to vector<32xf32>
    %91 = vector.shape_cast %90 : vector<32xf32> to vector<32x1xf32>
    %92 = tpu.reciprocal %91 {approx = true} : vector<32x1xf32> -> vector<32x1xf32>
    %93 = vector.broadcast %92 : vector<32x1xf32> to vector<32x32xf32>
    %94 = arith.mulf %89, %93 : vector<32x32xf32>
    %95 = arith.truncf %94 : vector<32x32xf32> to vector<32x32xbf16>
    %cst_33 = arith.constant dense<0.000000e+00> : vector<32x64xf32>
    %96 = tpu.matmul %95, %80, %cst_33 {dimension_numbers = #tpu.dot_dimension_numbers<[1], [0], [0], [1], [0, 0, 1, 1], [], []>} : vector<32x32xbf16>, vector<32x64xbf16>, vector<32x64xf32> -> vector<32x64xf32>
    %97 = arith.truncf %96 : vector<32x64xf32> to vector<32x64xbf16>
    %c0_34 = arith.constant 0 : index
    %c64 = arith.constant 64 : index
    %c0_35 = arith.constant 0 : index
    %98 = vector.load %arg4[%c0_34, %c64, %c0_35] : memref<2x128x128xbf16, #tpu.memory_space<vmem>>, vector<1x64x128xbf16>
    %99 = vector.shape_cast %98 : vector<1x64x128xbf16> to vector<64x128xbf16>
    %cst_36 = arith.constant dense<0.000000e+00> : vector<32x128xf32>
    %100 = tpu.matmul %97, %99, %cst_36 {dimension_numbers = #tpu.dot_dimension_numbers<[1], [0], [0], [1], [0, 0, 1, 1], [], []>} : vector<32x64xbf16>, vector<64x128xbf16>, vector<32x128xf32> -> vector<32x128xf32>
    %101 = arith.addf %74, %100 : vector<32x128xf32>
    %102 = arith.addf %13, %101 : vector<32x128xf32>
    %103 = vector.broadcast %21 : vector<1x128xf32> to vector<32x128xf32>
    %104 = arith.addf %102, %103 : vector<32x128xf32>
    %cst_37 = arith.constant dense<0.000000e+00> : vector<32xf32>
    %105 = vector.multi_reduction <add>, %104, %cst_37 [1] : vector<32x128xf32> to vector<32xf32>
    %106 = vector.shape_cast %105 : vector<32xf32> to vector<32x1xf32>
    %cst_38 = arith.constant 1.280000e+02 : f32
    %107 = vector.broadcast %cst_38 : f32 to vector<32x1xf32>
    %108 = arith.divf %106, %107 : vector<32x1xf32>
    %109 = vector.broadcast %108 : vector<32x1xf32> to vector<32x128xf32>
    %110 = arith.subf %104, %109 : vector<32x128xf32>
    %111 = arith.mulf %110, %110 : vector<32x128xf32>
    %cst_39 = arith.constant dense<0.000000e+00> : vector<32xf32>
    %112 = vector.multi_reduction <add>, %111, %cst_39 [1] : vector<32x128xf32> to vector<32xf32>
    %113 = vector.shape_cast %112 : vector<32xf32> to vector<32x1xf32>
    %cst_40 = arith.constant 1.280000e+02 : f32
    %114 = vector.broadcast %cst_40 : f32 to vector<32x1xf32>
    %115 = arith.divf %113, %114 : vector<32x1xf32>
    %116 = vector.broadcast %108 : vector<32x1xf32> to vector<32x128xf32>
    %117 = arith.subf %104, %116 : vector<32x128xf32>
    %cst_41 = arith.constant 9.99999974E-6 : f32
    %118 = vector.broadcast %cst_41 : f32 to vector<32x1xf32>
    %119 = arith.addf %115, %118 : vector<32x1xf32>
    %120 = math.rsqrt %119 : vector<32x1xf32>
    %121 = vector.broadcast %120 : vector<32x1xf32> to vector<32x128xf32>
    %122 = arith.mulf %117, %121 : vector<32x128xf32>
    %123 = vector.broadcast %19 : vector<1x128xf32> to vector<32x128xf32>
    %124 = arith.mulf %122, %123 : vector<32x128xf32>
    %125 = vector.broadcast %20 : vector<1x128xf32> to vector<32x128xf32>
    %126 = arith.addf %124, %125 : vector<32x128xf32>
    %127 = arith.truncf %126 : vector<32x128xf32> to vector<32x128xbf16>
    %c0_42 = arith.constant 0 : index
    %c0_43 = arith.constant 0 : index
    %c0_44 = arith.constant 0 : index
    %128 = vector.load %arg5[%c0_42, %c0_43, %c0_44] : memref<2x128x512xbf16, #tpu.memory_space<vmem>>, vector<1x128x512xbf16>
    %129 = vector.shape_cast %128 : vector<1x128x512xbf16> to vector<128x512xbf16>
    %cst_45 = arith.constant dense<0.000000e+00> : vector<32x512xf32>
    %130 = tpu.matmul %127, %129, %cst_45 {dimension_numbers = #tpu.dot_dimension_numbers<[1], [0], [0], [1], [0, 0, 1, 1], [], []>} : vector<32x128xbf16>, vector<128x512xbf16>, vector<32x512xf32> -> vector<32x512xf32>
    %c0_46 = arith.constant 0 : index
    %c0_47 = arith.constant 0 : index
    %c0_48 = arith.constant 0 : index
    %131 = vector.load %arg9[%c0_46, %c0_47, %c0_48] : memref<2x1x512xf32, #tpu.memory_space<vmem>>, vector<1x1x512xf32>
    %132 = vector.shape_cast %131 : vector<1x1x512xf32> to vector<1x512xf32>
    %133 = vector.broadcast %132 : vector<1x512xf32> to vector<32x512xf32>
    %134 = arith.addf %130, %133 : vector<32x512xf32>
    %cst_49 = arith.constant 0.000000e+00 : f32
    %135 = vector.broadcast %cst_49 : f32 to vector<32x512xf32>
    %136 = arith.maximumf %134, %135 : vector<32x512xf32>
    %137 = arith.truncf %136 : vector<32x512xf32> to vector<32x512xbf16>
    %c0_50 = arith.constant 0 : index
    %c0_51 = arith.constant 0 : index
    %c0_52 = arith.constant 0 : index
    %138 = vector.load %arg6[%c0_50, %c0_51, %c0_52] : memref<2x512x128xbf16, #tpu.memory_space<vmem>>, vector<1x512x128xbf16>
    %139 = vector.shape_cast %138 : vector<1x512x128xbf16> to vector<512x128xbf16>
    %cst_53 = arith.constant dense<0.000000e+00> : vector<32x128xf32>
    %140 = tpu.matmul %137, %139, %cst_53 {dimension_numbers = #tpu.dot_dimension_numbers<[1], [0], [0], [1], [0, 0, 1, 1], [], []>} : vector<32x512xbf16>, vector<512x128xbf16>, vector<32x128xf32> -> vector<32x128xf32>
    %141 = vector.broadcast %22 : vector<1x128xf32> to vector<32x128xf32>
    %142 = arith.addf %140, %141 : vector<32x128xf32>
    %143 = arith.addf %104, %142 : vector<32x128xf32>
    %c1_54 = arith.constant 1 : index
    %c0_55 = arith.constant 0 : index
    %c0_56 = arith.constant 0 : index
    %144 = vector.load %arg8[%c1_54, %c0_55, %c0_56] : memref<2x6x128xf32, #tpu.memory_space<vmem>>, vector<1x6x128xf32>
    %145 = vector.shape_cast %144 : vector<1x6x128xf32> to vector<6x128xf32>
    %146 = vector.extract_strided_slice %145 {offsets = [0, 0], sizes = [1, 128], strides = [1, 1]} : vector<6x128xf32> to vector<1x128xf32>
    %147 = vector.extract_strided_slice %145 {offsets = [1, 0], sizes = [1, 128], strides = [1, 1]} : vector<6x128xf32> to vector<1x128xf32>
    %148 = vector.extract_strided_slice %145 {offsets = [2, 0], sizes = [1, 128], strides = [1, 1]} : vector<6x128xf32> to vector<1x128xf32>
    %149 = vector.extract_strided_slice %145 {offsets = [3, 0], sizes = [1, 128], strides = [1, 1]} : vector<6x128xf32> to vector<1x128xf32>
    %150 = vector.extract_strided_slice %145 {offsets = [4, 0], sizes = [1, 128], strides = [1, 1]} : vector<6x128xf32> to vector<1x128xf32>
    %151 = vector.extract_strided_slice %145 {offsets = [5, 0], sizes = [1, 128], strides = [1, 1]} : vector<6x128xf32> to vector<1x128xf32>
    %cst_57 = arith.constant dense<0.000000e+00> : vector<32xf32>
    %152 = vector.multi_reduction <add>, %143, %cst_57 [1] : vector<32x128xf32> to vector<32xf32>
    %153 = vector.shape_cast %152 : vector<32xf32> to vector<32x1xf32>
    %cst_58 = arith.constant 1.280000e+02 : f32
    %154 = vector.broadcast %cst_58 : f32 to vector<32x1xf32>
    %155 = arith.divf %153, %154 : vector<32x1xf32>
    %156 = vector.broadcast %155 : vector<32x1xf32> to vector<32x128xf32>
    %157 = arith.subf %143, %156 : vector<32x128xf32>
    %158 = arith.mulf %157, %157 : vector<32x128xf32>
    %cst_59 = arith.constant dense<0.000000e+00> : vector<32xf32>
    %159 = vector.multi_reduction <add>, %158, %cst_59 [1] : vector<32x128xf32> to vector<32xf32>
    %160 = vector.shape_cast %159 : vector<32xf32> to vector<32x1xf32>
    %cst_60 = arith.constant 1.280000e+02 : f32
    %161 = vector.broadcast %cst_60 : f32 to vector<32x1xf32>
    %162 = arith.divf %160, %161 : vector<32x1xf32>
    %163 = vector.broadcast %155 : vector<32x1xf32> to vector<32x128xf32>
    %164 = arith.subf %143, %163 : vector<32x128xf32>
    %cst_61 = arith.constant 9.99999974E-6 : f32
    %165 = vector.broadcast %cst_61 : f32 to vector<32x1xf32>
    %166 = arith.addf %162, %165 : vector<32x1xf32>
    %167 = math.rsqrt %166 : vector<32x1xf32>
    %168 = vector.broadcast %167 : vector<32x1xf32> to vector<32x128xf32>
    %169 = arith.mulf %164, %168 : vector<32x128xf32>
    %170 = vector.broadcast %146 : vector<1x128xf32> to vector<32x128xf32>
    %171 = arith.mulf %169, %170 : vector<32x128xf32>
    %172 = vector.broadcast %147 : vector<1x128xf32> to vector<32x128xf32>
    %173 = arith.addf %171, %172 : vector<32x128xf32>
    %174 = arith.truncf %173 : vector<32x128xf32> to vector<32x128xbf16>
    %c1_62 = arith.constant 1 : index
    %c0_63 = arith.constant 0 : index
    %c0_64 = arith.constant 0 : index
    %175 = vector.load %arg3[%c1_62, %c0_63, %c0_64] : memref<2x128x384xbf16, #tpu.memory_space<vmem>>, vector<1x128x384xbf16>
    %176 = vector.shape_cast %175 : vector<1x128x384xbf16> to vector<128x384xbf16>
    %cst_65 = arith.constant dense<0.000000e+00> : vector<32x384xf32>
    %177 = tpu.matmul %174, %176, %cst_65 {dimension_numbers = #tpu.dot_dimension_numbers<[1], [0], [0], [1], [0, 0, 1, 1], [], []>} : vector<32x128xbf16>, vector<128x384xbf16>, vector<32x384xf32> -> vector<32x384xf32>
    %178 = vector.extract_strided_slice %177 {offsets = [0, 0], sizes = [32, 64], strides = [1, 1]} : vector<32x384xf32> to vector<32x64xf32>
    %179 = arith.truncf %178 : vector<32x64xf32> to vector<32x64xbf16>
    %180 = vector.extract_strided_slice %177 {offsets = [0, 128], sizes = [32, 64], strides = [1, 1]} : vector<32x384xf32> to vector<32x64xf32>
    %181 = arith.truncf %180 : vector<32x64xf32> to vector<32x64xbf16>
    %182 = vector.extract_strided_slice %177 {offsets = [0, 256], sizes = [32, 64], strides = [1, 1]} : vector<32x384xf32> to vector<32x64xf32>
    %183 = arith.truncf %182 : vector<32x64xf32> to vector<32x64xbf16>
    %cst_66 = arith.constant dense<0.000000e+00> : vector<32x32xf32>
    %184 = tpu.matmul %179, %181, %cst_66 {dimension_numbers = #tpu.dot_dimension_numbers<[1], [1], [0], [0], [0, 0, 1, 0], [], []>} : vector<32x64xbf16>, vector<32x64xbf16>, vector<32x32xf32> -> vector<32x32xf32>
    %cst_67 = arith.constant 0.0883883461 : f32
    %185 = vector.broadcast %cst_67 : f32 to vector<32x32xf32>
    %186 = arith.mulf %184, %185 : vector<32x32xf32>
    %187 = arith.addf %186, %14 : vector<32x32xf32>
    %cst_68 = arith.constant dense<0xFF800000> : vector<32xf32>
    %188 = vector.multi_reduction <maximumf>, %187, %cst_68 [1] : vector<32x32xf32> to vector<32xf32>
    %189 = vector.shape_cast %188 : vector<32xf32> to vector<32x1xf32>
    %190 = vector.broadcast %189 : vector<32x1xf32> to vector<32x32xf32>
    %191 = arith.subf %187, %190 : vector<32x32xf32>
    %192 = math.exp %191 : vector<32x32xf32>
    %cst_69 = arith.constant dense<0.000000e+00> : vector<32xf32>
    %193 = vector.multi_reduction <add>, %192, %cst_69 [1] : vector<32x32xf32> to vector<32xf32>
    %194 = vector.shape_cast %193 : vector<32xf32> to vector<32x1xf32>
    %195 = tpu.reciprocal %194 {approx = true} : vector<32x1xf32> -> vector<32x1xf32>
    %196 = vector.broadcast %195 : vector<32x1xf32> to vector<32x32xf32>
    %197 = arith.mulf %192, %196 : vector<32x32xf32>
    %198 = arith.truncf %197 : vector<32x32xf32> to vector<32x32xbf16>
    %cst_70 = arith.constant dense<0.000000e+00> : vector<32x64xf32>
    %199 = tpu.matmul %198, %183, %cst_70 {dimension_numbers = #tpu.dot_dimension_numbers<[1], [0], [0], [1], [0, 0, 1, 1], [], []>} : vector<32x32xbf16>, vector<32x64xbf16>, vector<32x64xf32> -> vector<32x64xf32>
    %200 = arith.truncf %199 : vector<32x64xf32> to vector<32x64xbf16>
    %c1_71 = arith.constant 1 : index
    %c0_72 = arith.constant 0 : index
    %c0_73 = arith.constant 0 : index
    %201 = vector.load %arg4[%c1_71, %c0_72, %c0_73] : memref<2x128x128xbf16, #tpu.memory_space<vmem>>, vector<1x64x128xbf16>
    %202 = vector.shape_cast %201 : vector<1x64x128xbf16> to vector<64x128xbf16>
    %cst_74 = arith.constant dense<0.000000e+00> : vector<32x128xf32>
    %203 = tpu.matmul %200, %202, %cst_74 {dimension_numbers = #tpu.dot_dimension_numbers<[1], [0], [0], [1], [0, 0, 1, 1], [], []>} : vector<32x64xbf16>, vector<64x128xbf16>, vector<32x128xf32> -> vector<32x128xf32>
    %204 = vector.extract_strided_slice %177 {offsets = [0, 64], sizes = [32, 64], strides = [1, 1]} : vector<32x384xf32> to vector<32x64xf32>
    %205 = arith.truncf %204 : vector<32x64xf32> to vector<32x64xbf16>
    %206 = vector.extract_strided_slice %177 {offsets = [0, 192], sizes = [32, 64], strides = [1, 1]} : vector<32x384xf32> to vector<32x64xf32>
    %207 = arith.truncf %206 : vector<32x64xf32> to vector<32x64xbf16>
    %208 = vector.extract_strided_slice %177 {offsets = [0, 320], sizes = [32, 64], strides = [1, 1]} : vector<32x384xf32> to vector<32x64xf32>
    %209 = arith.truncf %208 : vector<32x64xf32> to vector<32x64xbf16>
    %cst_75 = arith.constant dense<0.000000e+00> : vector<32x32xf32>
    %210 = tpu.matmul %205, %207, %cst_75 {dimension_numbers = #tpu.dot_dimension_numbers<[1], [1], [0], [0], [0, 0, 1, 0], [], []>} : vector<32x64xbf16>, vector<32x64xbf16>, vector<32x32xf32> -> vector<32x32xf32>
    %cst_76 = arith.constant 0.0883883461 : f32
    %211 = vector.broadcast %cst_76 : f32 to vector<32x32xf32>
    %212 = arith.mulf %210, %211 : vector<32x32xf32>
    %213 = arith.addf %212, %14 : vector<32x32xf32>
    %cst_77 = arith.constant dense<0xFF800000> : vector<32xf32>
    %214 = vector.multi_reduction <maximumf>, %213, %cst_77 [1] : vector<32x32xf32> to vector<32xf32>
    %215 = vector.shape_cast %214 : vector<32xf32> to vector<32x1xf32>
    %216 = vector.broadcast %215 : vector<32x1xf32> to vector<32x32xf32>
    %217 = arith.subf %213, %216 : vector<32x32xf32>
    %218 = math.exp %217 : vector<32x32xf32>
    %cst_78 = arith.constant dense<0.000000e+00> : vector<32xf32>
    %219 = vector.multi_reduction <add>, %218, %cst_78 [1] : vector<32x32xf32> to vector<32xf32>
    %220 = vector.shape_cast %219 : vector<32xf32> to vector<32x1xf32>
    %221 = tpu.reciprocal %220 {approx = true} : vector<32x1xf32> -> vector<32x1xf32>
    %222 = vector.broadcast %221 : vector<32x1xf32> to vector<32x32xf32>
    %223 = arith.mulf %218, %222 : vector<32x32xf32>
    %224 = arith.truncf %223 : vector<32x32xf32> to vector<32x32xbf16>
    %cst_79 = arith.constant dense<0.000000e+00> : vector<32x64xf32>
    %225 = tpu.matmul %224, %209, %cst_79 {dimension_numbers = #tpu.dot_dimension_numbers<[1], [0], [0], [1], [0, 0, 1, 1], [], []>} : vector<32x32xbf16>, vector<32x64xbf16>, vector<32x64xf32> -> vector<32x64xf32>
    %226 = arith.truncf %225 : vector<32x64xf32> to vector<32x64xbf16>
    %c1_80 = arith.constant 1 : index
    %c64_81 = arith.constant 64 : index
    %c0_82 = arith.constant 0 : index
    %227 = vector.load %arg4[%c1_80, %c64_81, %c0_82] : memref<2x128x128xbf16, #tpu.memory_space<vmem>>, vector<1x64x128xbf16>
    %228 = vector.shape_cast %227 : vector<1x64x128xbf16> to vector<64x128xbf16>
    %cst_83 = arith.constant dense<0.000000e+00> : vector<32x128xf32>
    %229 = tpu.matmul %226, %228, %cst_83 {dimension_numbers = #tpu.dot_dimension_numbers<[1], [0], [0], [1], [0, 0, 1, 1], [], []>} : vector<32x64xbf16>, vector<64x128xbf16>, vector<32x128xf32> -> vector<32x128xf32>
    %230 = arith.addf %203, %229 : vector<32x128xf32>
    %231 = arith.addf %143, %230 : vector<32x128xf32>
    %232 = vector.broadcast %150 : vector<1x128xf32> to vector<32x128xf32>
    %233 = arith.addf %231, %232 : vector<32x128xf32>
    %cst_84 = arith.constant dense<0.000000e+00> : vector<32xf32>
    %234 = vector.multi_reduction <add>, %233, %cst_84 [1] : vector<32x128xf32> to vector<32xf32>
    %235 = vector.shape_cast %234 : vector<32xf32> to vector<32x1xf32>
    %cst_85 = arith.constant 1.280000e+02 : f32
    %236 = vector.broadcast %cst_85 : f32 to vector<32x1xf32>
    %237 = arith.divf %235, %236 : vector<32x1xf32>
    %238 = vector.broadcast %237 : vector<32x1xf32> to vector<32x128xf32>
    %239 = arith.subf %233, %238 : vector<32x128xf32>
    %240 = arith.mulf %239, %239 : vector<32x128xf32>
    %cst_86 = arith.constant dense<0.000000e+00> : vector<32xf32>
    %241 = vector.multi_reduction <add>, %240, %cst_86 [1] : vector<32x128xf32> to vector<32xf32>
    %242 = vector.shape_cast %241 : vector<32xf32> to vector<32x1xf32>
    %cst_87 = arith.constant 1.280000e+02 : f32
    %243 = vector.broadcast %cst_87 : f32 to vector<32x1xf32>
    %244 = arith.divf %242, %243 : vector<32x1xf32>
    %245 = vector.broadcast %237 : vector<32x1xf32> to vector<32x128xf32>
    %246 = arith.subf %233, %245 : vector<32x128xf32>
    %cst_88 = arith.constant 9.99999974E-6 : f32
    %247 = vector.broadcast %cst_88 : f32 to vector<32x1xf32>
    %248 = arith.addf %244, %247 : vector<32x1xf32>
    %249 = math.rsqrt %248 : vector<32x1xf32>
    %250 = vector.broadcast %249 : vector<32x1xf32> to vector<32x128xf32>
    %251 = arith.mulf %246, %250 : vector<32x128xf32>
    %252 = vector.broadcast %148 : vector<1x128xf32> to vector<32x128xf32>
    %253 = arith.mulf %251, %252 : vector<32x128xf32>
    %254 = vector.broadcast %149 : vector<1x128xf32> to vector<32x128xf32>
    %255 = arith.addf %253, %254 : vector<32x128xf32>
    %256 = arith.truncf %255 : vector<32x128xf32> to vector<32x128xbf16>
    %c1_89 = arith.constant 1 : index
    %c0_90 = arith.constant 0 : index
    %c0_91 = arith.constant 0 : index
    %257 = vector.load %arg5[%c1_89, %c0_90, %c0_91] : memref<2x128x512xbf16, #tpu.memory_space<vmem>>, vector<1x128x512xbf16>
    %258 = vector.shape_cast %257 : vector<1x128x512xbf16> to vector<128x512xbf16>
    %cst_92 = arith.constant dense<0.000000e+00> : vector<32x512xf32>
    %259 = tpu.matmul %256, %258, %cst_92 {dimension_numbers = #tpu.dot_dimension_numbers<[1], [0], [0], [1], [0, 0, 1, 1], [], []>} : vector<32x128xbf16>, vector<128x512xbf16>, vector<32x512xf32> -> vector<32x512xf32>
    %c1_93 = arith.constant 1 : index
    %c0_94 = arith.constant 0 : index
    %c0_95 = arith.constant 0 : index
    %260 = vector.load %arg9[%c1_93, %c0_94, %c0_95] : memref<2x1x512xf32, #tpu.memory_space<vmem>>, vector<1x1x512xf32>
    %261 = vector.shape_cast %260 : vector<1x1x512xf32> to vector<1x512xf32>
    %262 = vector.broadcast %261 : vector<1x512xf32> to vector<32x512xf32>
    %263 = arith.addf %259, %262 : vector<32x512xf32>
    %cst_96 = arith.constant 0.000000e+00 : f32
    %264 = vector.broadcast %cst_96 : f32 to vector<32x512xf32>
    %265 = arith.maximumf %263, %264 : vector<32x512xf32>
    %266 = arith.truncf %265 : vector<32x512xf32> to vector<32x512xbf16>
    %c1_97 = arith.constant 1 : index
    %c0_98 = arith.constant 0 : index
    %c0_99 = arith.constant 0 : index
    %267 = vector.load %arg6[%c1_97, %c0_98, %c0_99] : memref<2x512x128xbf16, #tpu.memory_space<vmem>>, vector<1x512x128xbf16>
    %268 = vector.shape_cast %267 : vector<1x512x128xbf16> to vector<512x128xbf16>
    %cst_100 = arith.constant dense<0.000000e+00> : vector<32x128xf32>
    %269 = tpu.matmul %266, %268, %cst_100 {dimension_numbers = #tpu.dot_dimension_numbers<[1], [0], [0], [1], [0, 0, 1, 1], [], []>} : vector<32x512xbf16>, vector<512x128xbf16>, vector<32x128xf32> -> vector<32x128xf32>
    %270 = vector.broadcast %151 : vector<1x128xf32> to vector<32x128xf32>
    %271 = arith.addf %269, %270 : vector<32x128xf32>
    %272 = arith.addf %233, %271 : vector<32x128xf32>
    %c0_101 = arith.constant 0 : index
    %c0_102 = arith.constant 0 : index
    %273 = vector.load %arg10[%c0_101, %c0_102] : memref<2x128xf32, #tpu.memory_space<vmem>>, vector<1x128xf32>
    %c1_103 = arith.constant 1 : index
    %c0_104 = arith.constant 0 : index
    %274 = vector.load %arg10[%c1_103, %c0_104] : memref<2x128xf32, #tpu.memory_space<vmem>>, vector<1x128xf32>
    %cst_105 = arith.constant dense<0.000000e+00> : vector<32xf32>
    %275 = vector.multi_reduction <add>, %272, %cst_105 [1] : vector<32x128xf32> to vector<32xf32>
    %276 = vector.shape_cast %275 : vector<32xf32> to vector<32x1xf32>
    %cst_106 = arith.constant 1.280000e+02 : f32
    %277 = vector.broadcast %cst_106 : f32 to vector<32x1xf32>
    %278 = arith.divf %276, %277 : vector<32x1xf32>
    %279 = vector.broadcast %278 : vector<32x1xf32> to vector<32x128xf32>
    %280 = arith.subf %272, %279 : vector<32x128xf32>
    %281 = arith.mulf %280, %280 : vector<32x128xf32>
    %cst_107 = arith.constant dense<0.000000e+00> : vector<32xf32>
    %282 = vector.multi_reduction <add>, %281, %cst_107 [1] : vector<32x128xf32> to vector<32xf32>
    %283 = vector.shape_cast %282 : vector<32xf32> to vector<32x1xf32>
    %cst_108 = arith.constant 1.280000e+02 : f32
    %284 = vector.broadcast %cst_108 : f32 to vector<32x1xf32>
    %285 = arith.divf %283, %284 : vector<32x1xf32>
    %286 = vector.broadcast %278 : vector<32x1xf32> to vector<32x128xf32>
    %287 = arith.subf %272, %286 : vector<32x128xf32>
    %cst_109 = arith.constant 9.99999974E-6 : f32
    %288 = vector.broadcast %cst_109 : f32 to vector<32x1xf32>
    %289 = arith.addf %285, %288 : vector<32x1xf32>
    %290 = math.rsqrt %289 : vector<32x1xf32>
    %291 = vector.broadcast %290 : vector<32x1xf32> to vector<32x128xf32>
    %292 = arith.mulf %287, %291 : vector<32x128xf32>
    %293 = vector.broadcast %273 : vector<1x128xf32> to vector<32x128xf32>
    %294 = arith.mulf %292, %293 : vector<32x128xf32>
    %295 = vector.broadcast %274 : vector<1x128xf32> to vector<32x128xf32>
    %296 = arith.addf %294, %295 : vector<32x128xf32>
    %297 = arith.truncf %296 : vector<32x128xf32> to vector<32x128xbf16>
    %c0_110 = arith.constant 0 : index
    %c0_111 = arith.constant 0 : index
    %298 = vector.load %arg7[%c0_110, %c0_111] : memref<128x256xbf16, #tpu.memory_space<vmem>>, vector<128x256xbf16>
    %cst_112 = arith.constant dense<0.000000e+00> : vector<32x256xf32>
    %299 = tpu.matmul %297, %298, %cst_112 {dimension_numbers = #tpu.dot_dimension_numbers<[1], [0], [0], [1], [0, 0, 1, 1], [], []>} : vector<32x128xbf16>, vector<128x256xbf16>, vector<32x256xf32> -> vector<32x256xf32>
    %c0_113 = arith.constant 0 : index
    %c0_114 = arith.constant 0 : index
    %300 = vector.load %arg11[%c0_113, %c0_114] : memref<1x256xf32, #tpu.memory_space<vmem>>, vector<1x256xf32>
    %301 = vector.broadcast %300 : vector<1x256xf32> to vector<32x256xf32>
    %302 = arith.addf %299, %301 : vector<32x256xf32>
    %c0_115 = arith.constant 0 : index
    %c0_116 = arith.constant 0 : index
    %303 = vector.load %arg12[%c0_115, %c0_116] : memref<32x256xf32, #tpu.memory_space<vmem>>, vector<32x256xf32>
    tpu.vector_store %arg12[%c0_115, %c0_116], %302 {strides = array<i32>} : memref<32x256xf32, #tpu.memory_space<vmem>>, vector<32x256xf32>,
    return
  }
}

</mosaic_0001>

<bundles_post_ra>
// kernel: gpt_forward.1
= control target key start
LH: loop header
LB: loop body
LE: loop exit
PB: predicated region body
PF: predicated region fallthrough
CT: control target
= control target key end

     0   :  { %17 = vsyncpa [#allocation3], 0  ;;  %s5926_s0 = inlined_call_operand.vmem [shape: s32[32,2], index: 0, kind: input, shape index: {}]   ;;  %s5927_s1 = inlined_call_operand.vmem [shape: f32[32,32], index: 1, kind: input, shape index: {}]   ;;  %s5928_s2 = inlined_call_operand.hbm [shape: bf16[384,128], index: 2, kind: input, shape index: {}]   ;;  %s5929_s3 = inlined_call_operand.hbm [shape: bf16[2,128,384], index: 3, kind: input, shape index: {}]   ;;  %s5930_s4 = inlined_call_operand.hbm [shape: bf16[2,128,128], index: 4, kind: input, shape index: {}]   ;;  %s5931_s5 = inlined_call_operand.hbm [shape: bf16[2,128,512], index: 5, kind: input, shape index: {}]   ;;  %s5932_s6 = inlined_call_operand.hbm [shape: bf16[2,512,128], index: 6, kind: input, shape index: {}]   ;;  %s5933_s7 = inlined_call_operand.hbm [shape: bf16[128,256], index: 7, kind: input, shape index: {}]   ;;  %s5934_s8 = inlined_call_operand.vmem [shape: f32[2,6,128], index: 8, kind: input, shape index: {}]   ;;  %s5935_s9 = inlined_call_operand.vmem [shape: f32[2,1,512], index: 9, kind: input, shape index: {}]   ;;  %s5936_s10 = inlined_call_operand.vmem [shape: f32[2,128], index: 10, kind: input, shape index: {}]   ;;  %s5937_s11 = inlined_call_operand.vmem [shape: f32[1,256], index: 11, kind: input, shape index: {}]   ;;  %s5938_s12 = inlined_call_operand.hbm [shape: f32[32,256], index: 12, kind: output, shape index: {}]  }
   0x1   :  { %18 = vsyncpa [#allocation6], 0 }
   0x2   :  { %19 = vsyncpa [#allocation9], 0 }
   0x3   :  { %20 = vsyncpa [#allocation12], 0 }
   0x4   :  { %21 = vsyncpa [#allocation4], 0  ;;  %s5314_s21 = smov [#allocation5]  }
   0x5   :  { %s43_s22 = sshll.u32 %s5314_s21, 4  ;;  %s44_s22 = int_to_ptr.vmem [resolvable:$true] %s43_s22 }
   0x6   :  { %s5172_s23 = scalar_lea.vmem %s44_s22, 6144  ;;  %p5177_p1 = scmp.lt.s32.totalorder %s44_s22, %s44_s22 }
   0x7   :  { %p5173_p0 = scmp.ne.s32.totalorder %s44_s22, %s5172_s23  ;;  %p5178_p2 = scmp.lt.s32.totalorder %s5172_s23, %s5172_s23 }
   0x9   :  { %p5179_p3 = por %p5178_p2, %p5177_p1 }
   0xb   :  { %p5180_p4 = pnand %p5179_p3, %p5173_p0 }
   0xd   :  { %5183 = shalt.err (!%p5180_p4)
}
   0xe   :  { %s5315_s24 = smov 192   ;;  %s5316_s25 = smov 12  }
   0xf   :  { %49 = dma.hbm_to_vmem [thread:$0]  %s5929_s3, 6144, %s44_s22, [#allocation6], %s5315_s24, %s5315_s24, %s5316_s25  }
  0x10   :  { %s5317_s28 = smov [#allocation8]  }
  0x11   :  { %s67_s29 = sshll.u32 %s5317_s28, 4  ;;  %s68_s29 = int_to_ptr.vmem [resolvable:$true] %s67_s29 }
  0x12   :  { %s5192_s30 = scalar_lea.vmem %s68_s29, 8192  ;;  %p5197_p6 = scmp.lt.s32.totalorder %s68_s29, %s68_s29 }
  0x13   :  { %p5193_p5 = scmp.ne.s32.totalorder %s68_s29, %s5192_s30  ;;  %p5198_p7 = scmp.lt.s32.totalorder %s5192_s30, %s5192_s30 }
  0x15   :  { %p5199_p8 = por %p5198_p7, %p5197_p6 }
  0x17   :  { %p5200_p9 = pnand %p5199_p8, %p5193_p5 }
  0x19   :  { %5203 = shalt.err (!%p5200_p9)
}
  0x1a   :  { %s5318_s13 = smov 256   ;;  %s5319_s14 = smov 16  }
  0x1b   :  { %73 = dma.hbm_to_vmem [thread:$0]  %s5931_s5, 8192, %s68_s29, [#allocation9], %s5318_s13, %s5318_s13, %s5319_s14  }
  0x1c   :  { %s5320_s3 = smov [#allocation2]  }
  0x1d   :  { %s31_s17 = sshll.u32 %s5320_s3, 4  ;;  %s32_s17 = int_to_ptr.vmem [resolvable:$true] %s31_s17 }
  0x1e   :  { %s5212_s18 = scalar_lea.vmem %s32_s17, 3072  ;;  %p5217_p11 = scmp.lt.s32.totalorder %s32_s17, %s32_s17 }
  0x1f   :  { %p5213_p10 = scmp.ne.s32.totalorder %s32_s17, %s5212_s18  ;;  %p5218_p12 = scmp.lt.s32.totalorder %s5212_s18, %s5212_s18 }
  0x21   :  { %p5219_p13 = por %p5218_p12, %p5217_p11 }
  0x23   :  { %p5220_p0 = pnand %p5219_p13, %p5213_p10 }
  0x25   :  { %5223 = shalt.err (!%p5220_p0)
}
  0x26   :  { %s5321_s19 = smov 64   ;;  %s5322_s20 = smov 4  }
  0x27   :  { %37 = dma.hbm_to_vmem [thread:$0]  %s5928_s2, 3072, %s32_s17, [#allocation3], %s5321_s19, %s5321_s19, %s5322_s20  }
  0x28   :  { %s5323_s23 = smov [#allocation7]   ;;  %s5324_s24 = smov [#allocation10]  }
  0x29   :  { %s55_s5 = sshll.u32 %s5323_s23, 4  ;;  %s79_s25 = sshll.u32 %s5324_s24, 4  ;;  %s56_s5 = int_to_ptr.vmem [resolvable:$true] %s55_s5  ;;  %s80_s25 = int_to_ptr.vmem [resolvable:$true] %s79_s25 }
  0x2a   :  { %s5232_s26 = scalar_lea.vmem %s56_s5, 2048  ;;  %p5237_p2 = scmp.lt.s32.totalorder %s56_s5, %s56_s5 }
  0x2b   :  { %p5233_p1 = scmp.ne.s32.totalorder %s56_s5, %s5232_s26  ;;  %p5238_p3 = scmp.lt.s32.totalorder %s5232_s26, %s5232_s26 }
  0x2d   :  { %p5239_p4 = por %p5238_p3, %p5237_p2 }
  0x2f   :  { %p5240_p5 = pnand %p5239_p4, %p5233_p1 }
  0x31   :  { %5243 = shalt.err (!%p5240_p5)
}
  0x32   :  { %61 = dma.hbm_to_vmem [thread:$0]  %s5930_s4, 2048, %s56_s5, [#allocation6], %s5321_s19, %s5321_s19, %s5322_s20  }
  0x33   :  { %s5252_s2 = scalar_lea.vmem %s80_s25, 8192  ;;  %p5257_p7 = scmp.lt.s32.totalorder %s80_s25, %s80_s25 }
  0x34   :  { %p5253_p6 = scmp.ne.s32.totalorder %s80_s25, %s5252_s2  ;;  %p5258_p8 = scmp.lt.s32.totalorder %s5252_s2, %s5252_s2 }
  0x36   :  { %p5259_p9 = por %p5258_p8, %p5257_p7 }
  0x38   :  { %p5260_p10 = pnand %p5259_p9, %p5253_p6 }
  0x3a   :  { %5263 = shalt.err (!%p5260_p10)
}
  0x3b   :  { %85 = dma.hbm_to_vmem [thread:$0]  %s5932_s6, 8192, %s80_s25, [#allocation9], %s5321_s19, %s5321_s19, %s5322_s20  }
  0x3c   :  { %s5325_s15 = smov [#allocation11]  }
  0x3d   :  { %s91_s16 = sshll.u32 %s5325_s15, 4  ;;  %s92_s16 = int_to_ptr.vmem [resolvable:$true] %s91_s16 }
  0x3e   :  { %s5272_s3 = scalar_lea.vmem %s92_s16, 2048  ;;  %p5277_p12 = scmp.lt.s32.totalorder %s92_s16, %s92_s16 }
  0x3f   :  { %p5273_p11 = scmp.ne.s32.totalorder %s92_s16, %s5272_s3  ;;  %p5278_p13 = scmp.lt.s32.totalorder %s5272_s3, %s5272_s3 }
  0x41   :  { %p5279_p0 = por %p5278_p13, %p5277_p12 }
  0x43   :  { %p5280_p1 = pnand %p5279_p0, %p5273_p11 }
  0x45   :  { %5283 = shalt.err (!%p5280_p1)
}
  0x46   :  { %s5326_s4 = smov 128   ;;  %s5327_s17 = smov 8  }
  0x47   :  { %97 = dma.hbm_to_vmem [thread:$0]  %s5933_s7, 2048, %s92_s16, [#allocation12], %s5326_s4, %s5326_s4, %s5327_s17  }
  0x48   :  { %5304 = dma.done.wait [#allocation3], 3072  }
  0x49   :  { %5305 = vsyncadd [#allocation3], 4294964224 }
  0x4a   :  { %5306 = dma.done.wait [#allocation6], 8192  }
  0x4b   :  { %5307 = vsyncadd [#allocation6], 4294959104 }
  0x4c   :  { %5308 = dma.done.wait [#allocation9], 16384  }
  0x4d   :  { %5309 = vsyncadd [#allocation9], 4294950912 }
  0x4e   :  { %5310 = dma.done.wait [#allocation12], 2048  }
  0x4f   :  { %5311 = vsyncadd [#allocation12], 4294965248  ;;  %v5328_v0 = vmov 1   ;;  %v5329_v1 = vmov 0   ;;  %v125_v2 = vld [vmem:[%s5926_s0] sm:$0xff]  ;;  %v126_v3 = vld [vmem:[%s5926_s0 + $0x8] sm:$0xff]  ;;  %v129_v30 = vlaneseq }
  0x50   :  { %4762 = vset.pattern.permute.xlu1 %v5328_v0  ;;  %4761 = vset.pattern.permute.xlu0 %v5329_v1  ;;  %v4766_v4 = vld [vmem:[#allocation2 + $0x78] sm:$0xff]   ;;  %v127_v6 = vld [vmem:[%s5926_s0 + $0x10] sm:$0xff]  ;;  %v4770_v10 = vld [vmem:[#allocation2 + $0x68] sm:$0xff]   ;;  %v5330_v40 = vmov 1.0|1.0  }
  0x51   :  { %158 = vperm.xlu1 %4762, %v125_v2   ;;  %134 = vperm.xlu0 %4761, %v125_v2   ;;  %v4767_v5 = vld [vmem:[#allocation2 + $0x38] sm:$0xff]   ;;  %v4768_v7 = vld [vmem:[#allocation2 + $0x70] sm:$0xff]   ;;  %v4771_v12 = vld [vmem:[#allocation2 + $0x28] sm:$0xff]   ;;  %v130_v31 = vand.u32 127, %v129_v30 }
  0x52   :  { %4337 = vmatprep.subr.bf16.mxu0 %v4766_v4  ;;  %v128_v8 = vld [vmem:[%s5926_s0 + $0x18] sm:$0xff]  ;;  %v4769_v9 = vld [vmem:[#allocation2 + $0x30] sm:$0xff]   ;;  %v4773_v14 = vld [vmem:[#allocation2 + $0x60] sm:$0xff]  }
  0x53   :  { %4338 = vmatpush3.bf16.msra.mxu0 %v4767_v5  ;;  %v4772_v11 = vld [vmem:[#allocation2 + $0xb8] sm:$0xff]   ;;  %v4775_v13 = vld [vmem:[#allocation2 + $0xb0] sm:$0xff]   ;;  %v4778_v15 = vld [vmem:[#allocation2 + $0xa8] sm:$0xff]   ;;  %v131_v32 = vadd.s32 128, %v130_v31  ;;  %v132_v33 = vadd.s32 256, %v130_v31 }
  0x54   :  { %4339 = vmatprep.subr.bf16.mxu0 %v4768_v7  ;;  %4563 = vmatprep.subr.bf16.mxu1 %v4772_v11  ;;  %v4774_v16 = vld [vmem:[#allocation2 + $0x20] sm:$0xff]   ;;  %v4776_v17 = vld [vmem:[#allocation2 + $0x58] sm:$0xff]   ;;  %v4779_v20 = vld [vmem:[#allocation2 + $0x50] sm:$0xff]  }
  0x55   :  { %161 = vperm.xlu1 %4762, %v126_v3   ;;  %137 = vperm.xlu0 %4761, %v126_v3   ;;  %v4781_v18 = vld [vmem:[#allocation2 + $0xa0] sm:$0xff]   ;;  %v4777_v19 = vld [vmem:[#allocation2 + $0x18] sm:$0xff]   ;;  %v4780_v22 = vld [vmem:[#allocation2 + $0x10] sm:$0xff]  }
  0x56   :  { %4564 = vmatpush3.bf16.msra.mxu1 %v4772_v11  ;;  %v4784_v21 = vld [vmem:[#allocation2 + $0x98] sm:$0xff]   ;;  %v4782_v23 = vld [vmem:[#allocation2 + $0x48] sm:$0xff]   ;;  %v4787_v25 = vld [vmem:[#allocation2 + $0x90] sm:$0xff]  }
  0x57   :  { %4340 = vmatpush3.bf16.msra.mxu0 %v4769_v9  ;;  %4565 = vmatprep.subr.bf16.mxu1 %v4775_v13  ;;  %v4783_v24 = vld [vmem:[#allocation2 + $0x8] sm:$0xff]   ;;  %v4785_v26 = vld [vmem:[#allocation2 + $0x40] sm:$0xff]  }
  0x58   :  { %4341 = vmatprep.subr.bf16.mxu0 %v4770_v10  ;;  %v4788_v27 = vld [vmem:[#allocation2 + $0x88] sm:$0xff]   ;;  %v4786_v28 = vld [vmem:[#allocation2] sm:$0xff]  }
  0x59   :  { %4763 = vset.pattern.permute.xlu1 %v5329_v1  ;;  %140 = vperm.xlu0 %4761, %v127_v6   ;;  %v4789_v29 = vld [vmem:[#allocation2 + $0x80] sm:$0xff]   ;;  %v4790_v2 = vld [vmem:[#allocation5 + $0xa8] ss:$12 sps:$4 sm:$0xff]   ;;  %v4792_v3 = vld [vmem:[#allocation5 + $0xac] ss:$12 sps:$4 sm:$0xff]  }
  0x5a   :  { %143 = vperm.xlu1 %4763, %v128_v8   ;;  %4566 = vmatpush3.bf16.msra.mxu1 %v4775_v13  ;;  %v4816_v38 = vld [vmem:[#allocation5 + $0x38] ss:$12 sps:$4 sm:$0xff]  }
  0x5b   :  { %4342 = vmatpush3.bf16.msra.mxu0 %v4771_v12  ;;  %4567 = vmatprep.subr.bf16.mxu1 %v4778_v15  ;;  %v4819_v39 = vld [vmem:[#allocation5 + $0x4] ss:$12 sps:$4 sm:$0xff]  }
  0x5c   :  { %4343 = vmatprep.subr.bf16.mxu0 %v4773_v14 }
  0x5d   :  { %4764 = vset.pattern.permute.xlu0 %v5328_v0 }
  0x5e   :  { %4765 = vset.pattern.permute.xlu1 %v5328_v0  ;;  %164 = vperm.xlu0 %4764, %v127_v6  }
  0x5f   :  { %167 = vperm.xlu1 %4765, %v128_v8   ;;  %4344 = vmatpush3.bf16.msra.mxu0 %v4774_v16 }
  0x60   :  { %4345 = vmatprep.subr.bf16.mxu0 %v4776_v17  ;;  %4568 = vmatpush3.bf16.msra.mxu1 %v4778_v15 }
  0x61   :  { %4569 = vmatprep.subr.bf16.mxu1 %v4781_v18 }
  0x63   :  { %4346 = vmatpush3.bf16.msra.mxu0 %v4777_v19 }
  0x64   :  { %4347 = vmatprep.subr.bf16.mxu0 %v4779_v20  ;;  %4570 = vmatpush3.bf16.msra.mxu1 %v4781_v18  ;;  %v4795_v20 = vld [vmem:[#allocation5 + $0x94] ss:$12 sps:$4 sm:$0xff]  }
  0x65   :  { %4571 = vmatprep.subr.bf16.mxu1 %v4784_v21 }
  0x67   :  { %4348 = vmatpush3.bf16.msra.mxu0 %v4780_v22  ;;  %v4793_v22 = vld [vmem:[#allocation5 + $0x90] ss:$12 sps:$4 sm:$0xff]  }
  0x68   :  { %4349 = vmatprep.subr.bf16.mxu0 %v4782_v23  ;;  %4572 = vmatpush3.bf16.msra.mxu1 %v4784_v21  ;;  %v4796_v21 = vld [vmem:[#allocation5 + $0xb0] ss:$12 sps:$4 sm:$0xff]  }
  0x69   :  { %4573 = vmatprep.subr.bf16.mxu1 %v4787_v25  ;;  %v4799_v23 = vld [vmem:[#allocation5 + $0x7c] ss:$12 sps:$4 sm:$0xff]  }
  0x6b   :  { %4350 = vmatpush3.bf16.msra.mxu0 %v4783_v24  ;;  %v4800_v24 = vld [vmem:[#allocation5 + $0x98] ss:$12 sps:$4 sm:$0xff]  }
  0x6c   :  { %4351 = vmatprep.subr.bf16.mxu0 %v4785_v26  ;;  %4574 = vmatpush3.bf16.msra.mxu1 %v4787_v25  ;;  %v4797_v25 = vld [vmem:[#allocation5 + $0x78] ss:$12 sps:$4 sm:$0xff]  }
  0x6d   :  { %4575 = vmatprep.subr.bf16.mxu1 %v4788_v27  ;;  %v4803_v26 = vld [vmem:[#allocation5 + $0x64] ss:$12 sps:$4 sm:$0xff]  }
  0x6f   :  { %4352 = vmatpush3.bf16.msra.mxu0 %v4786_v28  ;;  %v4801_v28 = vld [vmem:[#allocation5 + $0x60] ss:$12 sps:$4 sm:$0xff]  }
  0x70   :  { %4576 = vmatpush3.bf16.msra.mxu1 %v4788_v27  ;;  %729 = vmatprep.subr.bf16.mxu0 %v4792_v3  ;;  %v4804_v27 = vld [vmem:[#allocation5 + $0x80] ss:$12 sps:$4 sm:$0xff]  }
  0x71   :  { %4577 = vmatprep.subr.bf16.mxu1 %v4789_v29 }
  0x74   :  { %4578 = vmatpush3.bf16.msra.mxu1 %v4789_v29  ;;  %v4807_v29 = vld [vmem:[#allocation5 + $0x4c] ss:$12 sps:$4 sm:$0xff]  }
  0x75   :  { %4583 = vmatprep.subr.bf16.mxu1 %v4796_v21 }
  0xcc   :  { %v159_v34 = vpop.permute.xlu1 %158  ;;  %v135_v35 = vpop.permute.xlu0 %134 }
  0xcd   :  { %vm146_vm0 = vcmp.eq.s32.totalorder %v131_v32, %v135_v35  ;;  %vm170_vm1 = vcmp.eq.s32.totalorder %v131_v32, %v159_v34  ;;  %vm169_vm2 = vcmp.eq.s32.totalorder %v130_v31, %v159_v34  ;;  %vm145_vm3 = vcmp.eq.s32.totalorder %v130_v31, %v135_v35 }
  0xce   :  { %vm147_vm4 = vcmp.eq.s32.totalorder %v132_v33, %v135_v35  ;;  %vm171_vm5 = vcmp.eq.s32.totalorder %v132_v33, %v159_v34  ;;  %vm182_vm6 = vmor %vm146_vm0, %vm170_vm1  ;;  %v4812_v34 = vld [vmem:[#allocation5 + $0x50] ss:$12 sps:$4 sm:$0xff]  }
  0xcf   :  { %vm5439_vm7 = vmor %vm147_vm4, %vm171_vm5  ;;  %v4809_v35 = vld [vmem:[#allocation5 + $0x30] ss:$12 sps:$4 sm:$0xff]  }
  0xd0   :  { %v162_v36 = vpop.permute.xlu1 %161  ;;  %v138_v37 = vpop.permute.xlu0 %137  ;;  %vm5443_vm10 = vmor %vm145_vm3, %vm169_vm2 }
  0xd1   :  { %vm149_vm8 = vcmp.eq.s32.totalorder %v131_v32, %v138_v37  ;;  %vm173_vm9 = vcmp.eq.s32.totalorder %v131_v32, %v162_v36  ;;  %vm150_vm12 = vcmp.eq.s32.totalorder %v132_v33, %v138_v37  ;;  %vm174_vm13 = vcmp.eq.s32.totalorder %v132_v33, %v162_v36 }
  0xd2   :  { %vm185_vm11 = vmor %vm149_vm8, %vm173_vm9  ;;  %vm172_vm14 = vcmp.eq.s32.totalorder %v130_v31, %v162_v36  ;;  %vm148_vm15 = vcmp.eq.s32.totalorder %v130_v31, %v138_v37  ;;  %v4813_v36 = vld [vmem:[#allocation5 + $0x18] ss:$12 sps:$4 sm:$0xff]   ;;  %v4815_v37 = vld [vmem:[#allocation5 + $0x1c] ss:$12 sps:$4 sm:$0xff]  }
  0xd3   :  { %vm4089_vm0 = vmpackc.low %vm185_vm11, %vm182_vm6 }
  0xd4   :  { %4090 = vmatprep.mubr.msk.bf16.mxu0 %vm4089_vm0, %v5330_v40  ;;  %vm186_vm1 = vmor %vm150_vm12, %vm174_vm13  ;;  %v141_v41 = vpop.permute.xlu0 %140 }
  0xd5   :  { %vm4097_vm4 = vmpackc.low %vm186_vm1, %vm5439_vm7  ;;  %v144_v42 = vpop.permute.xlu1 %143  ;;  %vm152_vm3 = vcmp.eq.s32.totalorder %v131_v32, %v141_v41  ;;  %vm153_vm1 = vcmp.eq.s32.totalorder %v132_v33, %v141_v41 }
  0xd6   :  { %4579 = vmatprep.mubr.msk.bf16.mxu1 %vm4097_vm4, %v5330_v40  ;;  %vm184_vm5 = vmor %vm148_vm15, %vm172_vm14  ;;  %vm155_vm9 = vcmp.eq.s32.totalorder %v131_v32, %v144_v42  ;;  %vm156_vm4 = vcmp.eq.s32.totalorder %v132_v33, %v144_v42 }
  0xd7   :  { %vm4091_vm2 = vmpackc.low %vm184_vm5, %vm5443_vm10 }
  0xd8   :  { %4092 = vmatmul.mubr.msk.bf16.vlgmr.msra.gmra.mxu0 %vm4091_vm2, %v5330_v40  ;;  %vm151_vm2 = vcmp.eq.s32.totalorder %v130_v31, %v141_v41  ;;  %v4817_v41 = vld [vmem:[#allocation5] ss:$12 sps:$4 sm:$0xff]  }
  0xd9   :  { %v165_v43 = vpop.permute.xlu0 %164  ;;  %730 = vmatpush1.bf16.msra.mxu0 %v4790_v2 }
  0xda   :  { %vm176_vm8 = vcmp.eq.s32.totalorder %v131_v32, %v165_v43  ;;  %v168_v44 = vpop.permute.xlu1 %167  ;;  %vm177_vm6 = vcmp.eq.s32.totalorder %v132_v33, %v165_v43  ;;  %vm175_vm14 = vcmp.eq.s32.totalorder %v130_v31, %v165_v43  ;;  %731 = vmatprep.subr.bf16.mxu0 %v4795_v20 }
  0xdb   :  { %vm179_vm11 = vcmp.eq.s32.totalorder %v131_v32, %v168_v44  ;;  %vm188_vm0 = vmor %vm152_vm3, %vm176_vm8  ;;  %vm180_vm12 = vcmp.eq.s32.totalorder %v132_v33, %v168_v44  ;;  %vm178_vm5 = vcmp.eq.s32.totalorder %v130_v31, %v168_v44  ;;  %vm154_vm8 = vcmp.eq.s32.totalorder %v130_v31, %v144_v42  ;;  %v4808_v31 = vld [vmem:[#allocation5 + $0x68] ss:$12 sps:$4 sm:$0xff]  }
  0xdc   :  { %vm191_vm13 = vmor %vm155_vm9, %vm179_vm11  ;;  %v4805_v32 = vld [vmem:[#allocation5 + $0x48] ss:$12 sps:$4 sm:$0xff]  }
  0xdd   :  { %vm4093_vm7 = vmpackc.low %vm191_vm13, %vm188_vm0  ;;  %732 = vmatpush1.bf16.msra.mxu0 %v4793_v22  ;;  %v4811_v33 = vld [vmem:[#allocation5 + $0x34] ss:$12 sps:$4 sm:$0xff]  }
  0xde   :  { %4094 = vmatprep.mubr.msk.bf16.mxu0 %vm4093_vm7, %v5330_v40  ;;  %vm189_vm15 = vmor %vm153_vm1, %vm177_vm6  ;;  %733 = vmatprep.subr.bf16.mxu0 %v4799_v23  ;;  %v4821_v42 = vld [vmem:[#allocation5 + $0x8] ss:$12 sps:$4 sm:$0xff]   ;;  %vm837_vm6 = vcmask 523264  }
  0xdf   :  { %vm192_vm10 = vmor %vm156_vm4, %vm180_vm12  ;;  %vm907_vm12 = vcmask 261120  }
  0xe0   :  { %vm4099_vm3 = vmpackc.low %vm192_vm10, %vm189_vm15 }
  0xe1   :  { %4580 = vmatmul.mubr.msk.bf16.vlgmr.msra.gmra.mxu1 %vm4099_vm3, %v5330_v40  ;;  %vm187_vm9 = vmor %vm151_vm2, %vm175_vm14  ;;  %734 = vmatpush1.bf16.msra.mxu0 %v4797_v25 }
  0xe2   :  { %vm190_vm11 = vmor %vm154_vm8, %vm178_vm5  ;;  %4584 = vmatpush3.bf16.msra.mxu1 %v4796_v21  ;;  %735 = vmatprep.subr.bf16.mxu0 %v4803_v26 }
  0xe3   :  { %vm4095_vm0 = vmpackc.low %vm190_vm11, %vm187_vm9  ;;  %4585 = vmatprep.subr.bf16.mxu1 %v4800_v24 }
  0xe4   :  { %4096 = vmatmul.mubr.msk.bf16.gmra.mxu0 %vm4095_vm0, %v5330_v40  ;;  %v4820_v40 = vld [vmem:[#allocation5 + $0x20] ss:$12 sps:$4 sm:$0xff]  }
  0xe5   :  { %761 = vmatprep.mubr.bf16.mxu0 %v5329_v1  ;;  %736 = vmatpush1.bf16.msra.mxu0 %v4801_v28 }
  0xe6   :  { %4586 = vmatpush3.bf16.msra.mxu1 %v4800_v24  ;;  %737 = vmatprep.subr.bf16.mxu0 %v4807_v29 }
  0xe7   :  { %4587 = vmatprep.subr.bf16.mxu1 %v4804_v27 }
  0xe9   :  { %738 = vmatpush1.bf16.msra.mxu0 %v4805_v32 }
  0xea   :  { %4588 = vmatpush3.bf16.msra.mxu1 %v4804_v27  ;;  %739 = vmatprep.subr.bf16.mxu0 %v4811_v33 }
  0xeb   :  { %4589 = vmatprep.subr.bf16.mxu1 %v4808_v31 }
  0xed   :  { %740 = vmatpush1.bf16.msra.mxu0 %v4809_v35 }
  0xee   :  { %4590 = vmatpush3.bf16.msra.mxu1 %v4808_v31  ;;  %741 = vmatprep.subr.bf16.mxu0 %v4815_v37 }
  0xef   :  { %4591 = vmatprep.subr.bf16.mxu1 %v4812_v34 }
  0xf1   :  { %742 = vmatpush1.bf16.msra.mxu0 %v4813_v36 }
  0xf2   :  { %4592 = vmatpush3.bf16.msra.mxu1 %v4812_v34  ;;  %743 = vmatprep.subr.bf16.mxu0 %v4819_v39 }
  0xf3   :  { %4593 = vmatprep.subr.bf16.mxu1 %v4816_v38 }
  0xf5   :  { %744 = vmatpush1.bf16.msra.mxu0 %v4817_v41 }
  0xf6   :  { %4594 = vmatpush3.bf16.msra.mxu1 %v4816_v38 }
  0xf7   :  { %4595 = vmatprep.subr.bf16.mxu1 %v4820_v40 }
  0xfa   :  { %4596 = vmatpush3.bf16.msra.mxu1 %v4820_v40 }
  0xfb   :  { %4597 = vmatprep.subr.bf16.mxu1 %v4821_v42 }
  0xfe   :  { %4598 = vmatpush3.bf16.msra.mxu1 %v4821_v42  ;;  %v5531_v42 = vld [vmem:[%s5927_s1] sm:$0xff] }
 0x198   :  { %v4353_v45 = vpop.f32.mrf.mxu0 }
 0x19a   :  { %v4354_v46 = vpop.f32.mrf.mxu0 }
 0x19b   :  { %v4355_v49 = vadd.f32 %v4354_v46, %v4353_v45 }
 0x19c   :  { %v4356_v47 = vpop.f32.mrf.mxu0 }
 0x19e   :  { %v4357_v50 = vpop.f32.mrf.mxu0 }
 0x19f   :  { %v4358_v55 = vadd.f32 %v4357_v50, %v4356_v47 }
 0x1a1   :  { %v4581_v48 = vpop.f32.mrf.mxu1 }
 0x1a3   :  { %v486_v51 = vpop.f32.mrf.mxu1 }
 0x1a4   :  { %v4359_v52 = vpop.f32.mrf.mxu0  ;;  %v5452_v53 = vadd.f32 %v4355_v49, %v486_v51 }
 0x1a5   :  { %v4582_v54 = vpop.f32.mrf.mxu1 }
 0x1a6   :  { %v4360_v56 = vpop.f32.mrf.mxu0  ;;  %506 = vadd.xlane.f32.xlu1 %v5452_v53 }
 0x1a7   :  { %v489_v57 = vpop.f32.mrf.mxu1  ;;  %v4361_v58 = vadd.f32 %v4360_v56, %v4359_v52 }
 0x1a8   :  { %v4362_v59 = vpop.f32.mrf.mxu0  ;;  %v5455_v60 = vadd.f32 %v4358_v55, %v489_v57  ;;  %v5485_v55 = vshrl.u32 %v129_v30, 7 }
 0x1a9   :  { %v5458_v63 = vadd.f32 %v4581_v48, %v4361_v58  ;;  %v5493_v58 = vld [vmem:[%s5934_s8] sm:$0x3f] }
 0x1aa   :  { %v4363_v61 = vpop.f32.mrf.mxu0  ;;  %508 = vadd.xlane.f32.xlu0 %v5455_v60  ;;  %v5488_v57 = vsub.s32 0, %v5485_v55  ;;  %v5499_v30 = vsub.s32 1, %v5485_v55 }
 0x1ab   :  { %v4364_v62 = vadd.f32 %v4363_v61, %v4362_v59 }
 0x1ad   :  { %v5460_v0 = vadd.f32 %v4582_v54, %v4364_v62  ;;  %v554_v62 = vrot.slane %v5493_v58, %v5488_v57 }
 0x1ae   :  { %510 = vadd.xlane.f32.xlu0 %v5458_v63 }
 0x1af   :  { %512 = vadd.xlane.f32.xlu1 %v5460_v0 }
 0x22f   :  { %v507_v4 = vpop.xlane.xlu1 %506 }
 0x230   :  { %v515_v5 = vmul.f32 0.0078125, %v507_v4 }
 0x232   :  { %v5465_v6 = vsub.f32 %v5452_v53, %v515_v5  ;;  %v562_v5 = vrot.slane %v5493_v58, %v5499_v30 }
 0x233   :  { %v509_v7 = vpop.xlane.xlu0 %508 }
 0x234   :  { %v516_v8 = vmul.f32 0.0078125, %v509_v7  ;;  %v523_v9 = vmul.f32 %v5465_v6, %v5465_v6 }
 0x236   :  { %v5470_v10 = vsub.f32 %v5455_v60, %v516_v8  ;;  %527 = vadd.xlane.f32.xlu0 %v523_v9 }
 0x237   :  { %v511_v11 = vpop.xlane.xlu0 %510 }
 0x238   :  { %v513_v12 = vpop.xlane.xlu1 %512  ;;  %v517_v13 = vmul.f32 0.0078125, %v511_v11  ;;  %v524_v14 = vmul.f32 %v5470_v10, %v5470_v10 }
 0x239   :  { %v518_v15 = vmul.f32 0.0078125, %v513_v12 }
 0x23a   :  { %v5475_v16 = vsub.f32 %v5458_v63, %v517_v13  ;;  %529 = vadd.xlane.f32.xlu1 %v524_v14 }
 0x23b   :  { %v5478_v17 = vsub.f32 %v5460_v0, %v518_v15 }
 0x23c   :  { %v525_v18 = vmul.f32 %v5475_v16, %v5475_v16 }
 0x23d   :  { %v526_v19 = vmul.f32 %v5478_v17, %v5478_v17 }
 0x23e   :  { %531 = vadd.xlane.f32.xlu0 %v525_v18 }
 0x23f   :  { %533 = vadd.xlane.f32.xlu1 %v526_v19 }
 0x2bf   :  { %v528_v43 = vpop.xlane.xlu0 %527 }
 0x2c0   :  { %v535_v44 = vmul.f32 0.0078125, %v528_v43 }
 0x2c2   :  { %v539_v45 = vadd.f32 1e-05, %v535_v44 }
 0x2c3   :  { %v530_v46 = vpop.xlane.xlu1 %529 }
 0x2c4   :  { %5054 = vrsqrt.f32 %v539_v45  ;;  %v536_v47 = vmul.f32 0.0078125, %v530_v46  ;;  %v5536_v46 = vld [vmem:[%s5927_s1 + $0x10] sm:$0xff] }
 0x2c6   :  { %v540_v48 = vadd.f32 1e-05, %v536_v47 }
 0x2c7   :  { %v532_v49 = vpop.xlane.xlu0 %531 }
 0x2c8   :  { %5056 = vrsqrt.f32 %v540_v48  ;;  %v534_v50 = vpop.xlane.xlu1 %533  ;;  %v537_v51 = vmul.f32 0.0078125, %v532_v49  ;;  %v5542_v49 = vld [vmem:[%s5927_s1 + $0x8] sm:$0xff] }
 0x2c9   :  { %v538_v52 = vmul.f32 0.0078125, %v534_v50 }
 0x2ca   :  { %v541_v54 = vadd.f32 1e-05, %v537_v51 }
 0x2cb   :  { %v542_v56 = vadd.f32 1e-05, %v538_v52 }
 0x2cc   :  { %5058 = vrsqrt.f32 %v541_v54 }
 0x2cd   :  { %5060 = vrsqrt.f32 %v542_v56  ;;  %v5549_v56 = vld [vmem:[%s5927_s1 + $0x18] sm:$0xff] }
 0x2d1   :  { %v5055_v59 = vpop.eup %5054 }
 0x2d2   :  { %v547_v61 = vmul.f32 %v5055_v59, %v5465_v6 }
 0x2d4   :  { %v555_v4 = vmul.f32 %v554_v62, %v547_v61 }
 0x2d5   :  { %v5057_v2 = vpop.eup %5056 }
 0x2d6   :  { %v548_v3 = vmul.f32 %v5057_v2, %v5470_v10  ;;  %v563_v11 = vadd.f32 %v562_v5, %v555_v4 }
 0x2d8   :  { %v556_v7 = vmul.f32 %v554_v62, %v548_v3 }
 0x2d9   :  { %v5059_v8 = vpop.eup %5058 }
 0x2da   :  { %v5061_v9 = vpop.eup %5060  ;;  %v564_v12 = vadd.f32 %v562_v5, %v556_v7  ;;  %v549_v6 = vmul.f32 %v5059_v8, %v5475_v16 }
 0x2db   :  { %v550_v13 = vmul.f32 %v5061_v9, %v5478_v17 }
 0x2dc   :  { %v567_v14 = vpack.c.bf16 %v564_v12, %v563_v11  ;;  %v557_v15 = vmul.f32 %v554_v62, %v549_v6 }
 0x2dd   :  { %v558_v18 = vmul.f32 %v554_v62, %v550_v13 }
 0x2de   :  { %762 = vmatmul.mubr.bf16.vlgmr.msra.gmra.mxu0 %v567_v14  ;;  %4599 = vmatprep.mubr.bf16.mxu1 %v567_v14  ;;  %v565_v19 = vadd.f32 %v562_v5, %v557_v15 }
 0x2df   :  { %v566_v10 = vadd.f32 %v562_v5, %v558_v18  ;;  %771 = vmatprep.mubr.bf16.mxu0 %v5329_v1 }
 0x2e1   :  { %v568_v20 = vpack.c.bf16 %v566_v10, %v565_v19 }
 0x2e3   :  { %4600 = vmatmul.mubr.bf16.vlgmr.msra.gmra.mxu1 %v568_v20 }
 0x2e6   :  { %772 = vmatmul.mubr.bf16.gmra.mxu0 %v568_v20 }
 0x39e   :  { %v763_v21 = vpop.f32.mrf.mxu0 }
 0x3a0   :  { %v765_v22 = vpop.f32.mrf.mxu0 }
 0x3a2   :  { %v767_v23 = vpop.f32.mrf.mxu0 }
 0x3a3   :  { %v5507_v24 = vpack.c.bf16 %v767_v23, %v763_v21  ;;  %v4601_v16 = vpop.f32.mrf.mxu1 }
 0x3a4   :  { %v769_v17 = vpop.f32.mrf.mxu0 }
 0x3a5   :  { %v816_v25 = vpop.f32.mrf.mxu1  ;;  %4607 = vmatprep.mubr.msk.bf16.mxu0 %vm837_vm6, %v5507_v24  ;;  %v833_v36 = vpack.c.bf16 %v769_v17, %v765_v22 }
 0x3a6   :  { %v773_v26 = vpop.f32.mrf.mxu0 }
 0x3a7   :  { %v4602_v27 = vpop.f32.mrf.mxu1  ;;  %v845_v38 = vsel %vm837_vm6, %v833_v36, 0 }
 0x3a8   :  { %v5511_v28 = vpack.c.bf16 %v4602_v27, %v4601_v16  ;;  %v775_v29 = vpop.f32.mrf.mxu0 }
 0x3a9   :  { %v819_v31 = vpop.f32.mrf.mxu1 }
 0x3aa   :  { %v5513_v32 = vpack.c.bf16 %v819_v31, %v816_v25  ;;  %4611 = vmatprep.subr.bf16.mxu1 %v5511_v28  ;;  %v777_v33 = vpop.f32.mrf.mxu0 }
 0x3ab   :  { %4612 = vmatpush3.bf16.msra.mxu1 %v5511_v28  ;;  %v832_v39 = vpack.c.bf16 %v777_v33, %v773_v26 }
 0x3ac   :  { %4613 = vmatprep.subr.bf16.mxu1 %v5513_v32  ;;  %v779_v34 = vpop.f32.mrf.mxu0 }
 0x3ad   :  { %v5518_v35 = vpack.c.bf16 %v779_v34, %v775_v29 }
 0x3af   :  { %4614 = vmatpush3.bf16.msra.mxu1 %v5513_v32  ;;  %4735 = vmatprep.subr.msk.bf16.mxu0 %vm837_vm6, %v5518_v35  ;;  %v848_v37 = vsel %vm837_vm6, %v5518_v35, 0 }
 0x3b0   :  { %4604 = vmatpush3.bf16.xpose.msra.mxu0 %v848_v37 }
 0x3b1   :  { %4736 = vmatprep.subr.msk.bf16.mxu0 %vm837_vm6, %v833_v36 }
 0x3b8   :  { %4606 = vmatpush3.bf16.xpose.msra.mxu0 %v845_v38 }
 0x3bf   :  { %4608 = vmatmul.mubr.msk.bf16.vlgmr.msra.gmra.mxu0 %vm837_vm6, %v832_v39 }
 0x47f   :  { %v4609_v40 = vpop.f32.mrf.mxu0 }
 0x480   :  { %v901_v43 = vmul.f32 0.088388346, %v4609_v40 }
 0x481   :  { %v884_v41 = vpop.f32.mrf.mxu0 }
 0x482   :  { %v899_v44 = vmul.f32 0.088388346, %v884_v41  ;;  %v905_v54 = vadd.f32 %v901_v43, %v5536_v46 }
 0x483   :  { %v4610_v45 = vpop.f32.mrf.mxu0 }
 0x484   :  { %v903_v47 = vadd.f32 %v899_v44, %v5531_v42  ;;  %v902_v50 = vmul.f32 0.088388346, %v4610_v45  ;;  %v914_v61 = vsel %vm907_vm12, %v905_v54, -inf }
 0x485   :  { %v887_v48 = vpop.f32.mrf.mxu0 }
 0x486   :  { %v900_v51 = vmul.f32 0.088388346, %v887_v48  ;;  %v908_v52 = vsel %vm907_vm12, %v903_v47, -inf  ;;  %v906_v2 = vadd.f32 %v902_v50, %v5549_v56 }
 0x487   :  { %909 = vmax.xlane.f32.xlu0 %v908_v52 }
 0x488   :  { %v904_v59 = vadd.f32 %v900_v51, %v5542_v49  ;;  %v917_v3 = vsel %vm907_vm12, %v906_v2, -inf }
 0x48a   :  { %v911_v62 = vsel %vm907_vm12, %v904_v59, -inf }
 0x48b   :  { %915 = vmax.xlane.f32.xlu0 %v914_v61  ;;  %912 = vmax.xlane.f32.xlu1 %v911_v62 }
 0x48f   :  { %918 = vmax.xlane.f32.xlu1 %v917_v3 }
 0x510   :  { %v910_v4 = vpop.xlane.xlu0 %909 }
 0x511   :  { %v920_v5 = vsub.f32 %v903_v47, %v910_v4 }
 0x513   :  { %v924_v12 = vmul.f32 1.442695, %v920_v5 }
 0x514   :  { %v916_v7 = vpop.xlane.xlu0 %915  ;;  %v913_v8 = vpop.xlane.xlu1 %912 }
 0x515   :  { %v922_v9 = vsub.f32 %v905_v54, %v916_v7  ;;  %v921_v11 = vsub.f32 %v904_v59, %v913_v8 }
 0x517   :  { %v928_v6 = vmul.f32 1.442695, %v922_v9  ;;  %v926_v13 = vmul.f32 1.442695, %v921_v11 }
 0x518   :  { %v919_v14 = vpop.xlane.xlu1 %918 }
 0x519   :  { %5062 = vpow2.f32 %v928_v6  ;;  %v923_v15 = vsub.f32 %v906_v2, %v919_v14 }
 0x51a   :  { %5064 = vpow2.f32 %v926_v13 }
 0x51b   :  { %5066 = vpow2.f32 %v924_v12  ;;  %v930_v18 = vmul.f32 1.442695, %v923_v15 }
 0x51d   :  { %5068 = vpow2.f32 %v930_v18 }
 0x526   :  { %v5063_v19 = vpop.eup %5062 }
 0x527   :  { %v5065_v10 = vpop.eup %5064  ;;  %v938_v20 = vsel %vm907_vm12, %v5063_v19, 0.0 }
 0x528   :  { %v5067_v21 = vpop.eup %5066  ;;  %939 = vadd.xlane.f32.xlu0 %v938_v20  ;;  %v935_v22 = vsel %vm907_vm12, %v5065_v10, 0.0 }
 0x529   :  { %936 = vadd.xlane.f32.xlu1 %v935_v22  ;;  %v932_v16 = vsel %vm907_vm12, %v5067_v21, 0.0 }
 0x52a   :  { %v5069_v23 = vpop.eup %5068 }
 0x52b   :  { %v941_v17 = vsel %vm907_vm12, %v5069_v23, 0.0 }
 0x52c   :  { %933 = vadd.xlane.f32.xlu0 %v932_v16 }
 0x52d   :  { %942 = vadd.xlane.f32.xlu1 %v941_v17 }
 0x53e   :  { %1027 = vrot.lane.b32.xlu1 %v833_v36, %s5321_s19 }
 0x542   :  { %1021 = vrot.lane.b32.xlu1 %v5507_v24, %s5321_s19  ;;  %1029 = vrot.lane.b32.xlu0 %v5518_v35, %s5321_s19 }
 0x546   :  { %1023 = vrot.lane.b32.xlu0 %v832_v39, %s5321_s19 }
 0x5b1   :  { %v940_v25 = vpop.xlane.xlu0 %939 }
 0x5b2   :  { %v937_v26 = vpop.xlane.xlu1 %936 }
 0x5b3   :  { %5070 = vrcp.f32 %v937_v26 }
 0x5b4   :  { %5072 = vrcp.f32 %v940_v25 }
 0x5b5   :  { %v934_v27 = vpop.xlane.xlu0 %933 }
 0x5b6   :  { %5074 = vrcp.f32 %v934_v27  ;;  %v943_v29 = vpop.xlane.xlu1 %942 }
 0x5b7   :  { %5076 = vrcp.f32 %v943_v29 }
 0x5b9   :  { %v1030_v31 = vpop.permute.xlu0 %1029 }
 0x5ba   :  { %4737 = vmatprep.subr.msk.bf16.mxu1 %vm837_vm6, %v1030_v31  ;;  %v1028_v24 = vpop.permute.xlu1 %1027  ;;  %v1041_v44 = vsel %vm837_vm6, %v1030_v31, 0 }
 0x5bb   :  { %v1038_v47 = vsel %vm837_vm6, %v1028_v24, 0 }
 0x5bd   :  { %v1024_v48 = vpop.permute.xlu0 %1023 }
 0x5be   :  { %v1022_v45 = vpop.permute.xlu1 %1021 }
 0x5c0   :  { %v5071_v33 = vpop.eup %5070 }
 0x5c1   :  { %v5073_v34 = vpop.eup %5072  ;;  %v949_v35 = vmul.f32 %v5071_v33, %v5065_v10 }
 0x5c2   :  { %v950_v40 = vmul.f32 %v5073_v34, %v5063_v19 }
 0x5c3   :  { %v5075_v36 = vpop.eup %5074 }
 0x5c4   :  { %v5077_v37 = vpop.eup %5076  ;;  %v948_v38 = vmul.f32 %v5075_v36, %v5067_v21 }
 0x5c5   :  { %v951_v39 = vmul.f32 %v5077_v37, %v5069_v23  ;;  %v4822_v37 = vld [vmem:[#allocation7 + $0x38] sm:$0xff]  }
 0x5c6   :  { %v952_v41 = vpack.c.bf16 %v949_v35, %v948_v38  ;;  %v4823_v38 = vld [vmem:[#allocation7 + $0x30] sm:$0xff]  }
 0x5c7   :  { %v953_v43 = vpack.c.bf16 %v951_v39, %v950_v40 }
 0x5c8   :  { %4615 = vmatprep.mubr.msk.bf16.mxu1 %vm907_vm12, %v952_v41 }
 0x5c9   :  { %4616 = vmatmul.mubr.msk.bf16.vlgmr.msra.gmra.mxu1 %vm907_vm12, %v953_v43 }
 0x5ca   :  { %4620 = vmatpush3.bf16.xpose.msra.mxu1 %v1041_v44  ;;  %4623 = vmatprep.mubr.msk.bf16.mxu1 %vm837_vm6, %v1022_v45 }
 0x5cb   :  { %4738 = vmatprep.subr.msk.bf16.mxu1 %vm837_vm6, %v1028_v24 }
 0x5d2   :  { %4622 = vmatpush3.bf16.xpose.msra.mxu1 %v1038_v47 }
 0x5d3   :  { %4635 = vmatprep.subr.bf16.mxu1 %v4822_v37 }
 0x5d9   :  { %4624 = vmatmul.mubr.msk.bf16.vlgmr.msra.gmra.mxu1 %vm837_vm6, %v1024_v48 }
 0x5da   :  { %4636 = vmatpush3.bf16.msra.mxu1 %v4822_v37 }
 0x5db   :  { %4637 = vmatprep.subr.bf16.mxu1 %v4823_v38 }
 0x5de   :  { %4638 = vmatpush3.bf16.msra.mxu1 %v4823_v38 }
 0x689   :  { %v5574_v50 = vpop.f32.mrf.mxu1 }
 0x68b   :  { %v5576_v51 = vpop.f32.mrf.mxu1 }
 0x68d   :  { %v5578_v52 = vpop.f32.mrf.mxu1 }
 0x68e   :  { %v1010_v54 = vpack.c.bf16 %v5578_v52, %v5574_v50 }
 0x68f   :  { %v5582_v59 = vpop.f32.mrf.mxu1 }
 0x690   :  { %v1009_v61 = vpack.c.bf16 %v5582_v59, %v5576_v51 }
 0x699   :  { %v4625_v62 = vpop.f32.mrf.mxu1 }
 0x69a   :  { %v1094_v9 = vmul.f32 0.088388346, %v4625_v62 }
 0x69b   :  { %v1077_v2 = vpop.f32.mrf.mxu1 }
 0x69c   :  { %v1092_v3 = vmul.f32 0.088388346, %v1077_v2  ;;  %v1098_v18 = vadd.f32 %v1094_v9, %v5536_v46  ;;  %v4826_v9 = vld [vmem:[#allocation7 + $0x18] sm:$0xff]  }
 0x69d   :  { %v4626_v4 = vpop.f32.mrf.mxu1 }
 0x69e   :  { %v1095_v5 = vmul.f32 0.088388346, %v4626_v4  ;;  %v1096_v7 = vadd.f32 %v1092_v3, %v5531_v42  ;;  %v1106_v42 = vsel %vm907_vm12, %v1098_v18, -inf }
 0x69f   :  { %v1080_v8 = vpop.f32.mrf.mxu1 }
 0x6a0   :  { %v1093_v11 = vmul.f32 0.088388346, %v1080_v8  ;;  %v1100_v12 = vsel %vm907_vm12, %v1096_v7, -inf  ;;  %v1099_v6 = vadd.f32 %v1095_v5, %v5549_v56  ;;  %v4825_v8 = vld [vmem:[#allocation7 + $0x20] sm:$0xff]  }
 0x6a1   :  { %1101 = vmax.xlane.f32.xlu1 %v1100_v12 }
 0x6a2   :  { %v1097_v13 = vadd.f32 %v1093_v11, %v5542_v49  ;;  %v1109_v14 = vsel %vm907_vm12, %v1099_v6, -inf }
 0x6a4   :  { %v1103_v15 = vsel %vm907_vm12, %v1097_v13, -inf }
 0x6a5   :  { %1110 = vmax.xlane.f32.xlu1 %v1109_v14  ;;  %1104 = vmax.xlane.f32.xlu0 %v1103_v15 }
 0x6a9   :  { %1107 = vmax.xlane.f32.xlu0 %v1106_v42  ;;  %v4828_v42 = vld [vmem:[#allocation7 + $0x8] sm:$0xff]  }
 0x72a   :  { %v1102_v19 = vpop.xlane.xlu1 %1101 }
 0x72b   :  { %v1112_v56 = vsub.f32 %v1096_v7, %v1102_v19  ;;  %v4824_v7 = vld [vmem:[#allocation7 + $0x28] sm:$0xff]   ;;  %v4829_v19 = vld [vmem:[#allocation7] sm:$0xff]  }
 0x72c   :  { %4639 = vmatprep.subr.bf16.mxu1 %v4824_v7 }
 0x72d   :  { %v1116_v25 = vmul.f32 1.442695, %v1112_v56  ;;  %4640 = vmatpush3.bf16.msra.mxu1 %v4824_v7  ;;  %v4847_v7 = vld [vmem:[#allocation8 + $0xac] ss:$16 sps:$4 sm:$0xff]  }
 0x72e   :  { %v1111_v10 = vpop.xlane.xlu1 %1110  ;;  %v1105_v20 = vpop.xlane.xlu0 %1104  ;;  %4641 = vmatprep.subr.bf16.mxu1 %v4825_v8 }
 0x72f   :  { %v1115_v21 = vsub.f32 %v1099_v6, %v1111_v10  ;;  %v1113_v22 = vsub.f32 %v1097_v13, %v1105_v20 }
 0x731   :  { %v1122_v23 = vmul.f32 1.442695, %v1115_v21  ;;  %v1118_v16 = vmul.f32 1.442695, %v1113_v22  ;;  %4642 = vmatpush3.bf16.msra.mxu1 %v4825_v8  ;;  %v1383_v21 = vsub.s32 4, %v5485_v55 }
 0x732   :  { %v1108_v49 = vpop.xlane.xlu0 %1107  ;;  %4647 = vmatprep.subr.bf16.mxu1 %v4826_v9  ;;  %v4842_v8 = vld [vmem:[#allocation8 + $0xa0] ss:$16 sps:$4 sm:$0xff]  }
 0x733   :  { %5078 = vpow2.f32 %v1122_v23  ;;  %v1114_v17 = vsub.f32 %v1098_v18, %v1108_v49  ;;  %v4827_v18 = vld [vmem:[#allocation7 + $0x10] sm:$0xff]   ;;  %v1384_v50 = vrot.slane %v5493_v58, %v1383_v21 }
 0x734   :  { %5080 = vpow2.f32 %v1118_v16 }
 0x735   :  { %v1120_v26 = vmul.f32 1.442695, %v1114_v17 }
 0x737   :  { %5082 = vpow2.f32 %v1120_v26 }
 0x738   :  { %5084 = vpow2.f32 %v1116_v25 }
 0x740   :  { %v5079_v46 = vpop.eup %5078 }
 0x741   :  { %v1133_v27 = vsel %vm907_vm12, %v5079_v46, 0.0  ;;  %v5081_v29 = vpop.eup %5080 }
 0x742   :  { %1134 = vadd.xlane.f32.xlu1 %v1133_v27  ;;  %v1127_v33 = vsel %vm907_vm12, %v5081_v29, 0.0 }
 0x744   :  { %v5083_v31 = vpop.eup %5082 }
 0x745   :  { %v1130_v34 = vsel %vm907_vm12, %v5083_v31, 0.0  ;;  %v5085_v36 = vpop.eup %5084 }
 0x746   :  { %1128 = vadd.xlane.f32.xlu1 %v1127_v33  ;;  %1131 = vadd.xlane.f32.xlu0 %v1130_v34  ;;  %v1124_v24 = vsel %vm907_vm12, %v5085_v36, 0.0  ;;  %v4832_v33 = vld [vmem:[#allocation8 + $0xe4] ss:$16 sps:$4 sm:$0xff]   ;;  %v4833_v34 = vld [vmem:[#allocation8 + $0xe8] ss:$16 sps:$4 sm:$0xff]  }
 0x74a   :  { %1125 = vadd.xlane.f32.xlu0 %v1124_v24 }
 0x757   :  { %1148 = vrot.lane.b32.xlu1 %v5513_v32, %s5321_s19 }
 0x760   :  { %1150 = vrot.lane.b32.xlu0 %v5511_v28, %s5321_s19 }
 0x7cb   :  { %v1135_v35 = vpop.xlane.xlu1 %1134 }
 0x7cf   :  { %v1129_v40 = vpop.xlane.xlu1 %1128  ;;  %v1132_v39 = vpop.xlane.xlu0 %1131 }
 0x7d0   :  { %5086 = vrcp.f32 %v1132_v39 }
 0x7d1   :  { %5088 = vrcp.f32 %v1129_v40 }
 0x7d2   :  { %5090 = vrcp.f32 %v1135_v35 }
 0x7d3   :  { %v1126_v41 = vpop.xlane.xlu0 %1125  ;;  %v1149_v32 = vpop.permute.xlu1 %1148 }
 0x7d4   :  { %5092 = vrcp.f32 %v1126_v41 }
 0x7d7   :  { %v1151_v43 = vpop.permute.xlu0 %1150 }
 0x7d8   :  { %4627 = vmatprep.subr.bf16.mxu0 %v1151_v43 }
 0x7d9   :  { %4628 = vmatpush3.bf16.msra.mxu0 %v1151_v43 }
 0x7da   :  { %4629 = vmatprep.subr.bf16.mxu0 %v1149_v32 }
 0x7dd   :  { %4630 = vmatpush3.bf16.msra.mxu0 %v1149_v32  ;;  %v5087_v28 = vpop.eup %5086 }
 0x7de   :  { %v5089_v44 = vpop.eup %5088  ;;  %v1142_v48 = vmul.f32 %v5087_v28, %v5083_v31  ;;  %1665 = vmatprep.subr.bf16.mxu0 %v4832_v33 }
 0x7df   :  { %v5091_v45 = vpop.eup %5090  ;;  %v1141_v2 = vmul.f32 %v5089_v44, %v5081_v29 }
 0x7e0   :  { %v1143_v3 = vmul.f32 %v5091_v45, %v5079_v46 }
 0x7e1   :  { %v5093_v47 = vpop.eup %5092 }
 0x7e2   :  { %v1140_v62 = vmul.f32 %v5093_v47, %v5085_v36  ;;  %v1145_v5 = vpack.c.bf16 %v1143_v3, %v1142_v48  ;;  %v4836_v3 = vld [vmem:[#allocation8 + $0xc0] ss:$16 sps:$4 sm:$0xff]  }
 0x7e4   :  { %v1144_v4 = vpack.c.bf16 %v1141_v2, %v1140_v62  ;;  %v4838_v62 = vld [vmem:[#allocation8 + $0xc4] ss:$16 sps:$4 sm:$0xff]   ;;  %v4841_v2 = vld [vmem:[#allocation8 + $0xcc] ss:$16 sps:$4 sm:$0xff]  }
 0x7e6   :  { %4631 = vmatprep.mubr.msk.bf16.mxu0 %vm907_vm12, %v1144_v4  ;;  %v4839_v4 = vld [vmem:[#allocation8 + $0xc8] ss:$16 sps:$4 sm:$0xff]  }
 0x7e7   :  { %4632 = vmatmul.mubr.msk.bf16.vlgmr.msra.gmra.mxu0 %vm907_vm12, %v1145_v5  ;;  %v4844_v5 = vld [vmem:[#allocation8 + $0xa4] ss:$16 sps:$4 sm:$0xff]  }
 0x7e8   :  { %1697 = vmatprep.mubr.bf16.mxu0 %v5329_v1 }
 0x8a7   :  { %v4633_v11 = vpop.f32.mrf.mxu0 }
 0x8a9   :  { %v1194_v12 = vpop.f32.mrf.mxu0 }
 0x8ab   :  { %v4634_v6 = vpop.f32.mrf.mxu0 }
 0x8ac   :  { %v1210_v15 = vpack.c.bf16 %v4634_v6, %v4633_v11  ;;  %v4850_v11 = vld [vmem:[#allocation8 + $0x84] ss:$16 sps:$4 sm:$0xff]   ;;  %v4848_v6 = vld [vmem:[#allocation8 + $0x80] ss:$16 sps:$4 sm:$0xff]  }
 0x8ad   :  { %v1197_v13 = vpop.f32.mrf.mxu0 }
 0x8ae   :  { %v1209_v14 = vpack.c.bf16 %v1197_v13, %v1194_v12  ;;  %v4853_v12 = vld [vmem:[#allocation8 + $0x8c] ss:$16 sps:$4 sm:$0xff]   ;;  %v4851_v13 = vld [vmem:[#allocation8 + $0x88] ss:$16 sps:$4 sm:$0xff]  }
 0x8b0   :  { %4643 = vmatprep.mubr.msk.bf16.mxu1 %vm837_vm6, %v1209_v14  ;;  %v4854_v14 = vld [vmem:[#allocation8 + $0x60] ss:$16 sps:$4 sm:$0xff]  }
 0x8b1   :  { %4644 = vmatmul.mubr.msk.bf16.vlgmr.msra.gmra.mxu1 %vm837_vm6, %v1210_v15  ;;  %v4856_v15 = vld [vmem:[#allocation8 + $0x64] ss:$16 sps:$4 sm:$0xff]  }
 0x8b2   :  { %4648 = vmatpush3.bf16.msra.mxu1 %v4826_v9  ;;  %4655 = vmatprep.mubr.msk.bf16.mxu1 %vm837_vm6, %v1009_v61  ;;  %v4845_v9 = vld [vmem:[#allocation8 + $0xa8] ss:$16 sps:$4 sm:$0xff]  }
 0x8b3   :  { %4649 = vmatprep.subr.bf16.mxu1 %v4827_v18 }
 0x8b6   :  { %4650 = vmatpush3.bf16.msra.mxu1 %v4827_v18  ;;  %v4857_v18 = vld [vmem:[#allocation8 + $0x68] ss:$16 sps:$4 sm:$0xff]  }
 0x8b7   :  { %4651 = vmatprep.subr.bf16.mxu1 %v4828_v42 }
 0x8ba   :  { %4652 = vmatpush3.bf16.msra.mxu1 %v4828_v42  ;;  %v4859_v42 = vld [vmem:[#allocation8 + $0x6c] ss:$16 sps:$4 sm:$0xff]  }
 0x8bb   :  { %4653 = vmatprep.subr.bf16.mxu1 %v4829_v19 }
 0x8be   :  { %4654 = vmatpush3.bf16.msra.mxu1 %v4829_v19  ;;  %v4862_v19 = vld [vmem:[#allocation8 + $0x44] ss:$16 sps:$4 sm:$0xff]  }
 0x8c1   :  { %4656 = vmatmul.mubr.msk.bf16.vlgmr.msra.gmra.mxu1 %vm837_vm6, %v1010_v54 }
 0x8c2   :  { %1750 = vmatprep.mubr.bf16.mxu1 %v5329_v1 }
 0x971   :  { %v4645_v10 = vpop.f32.mrf.mxu1 }
 0x973   :  { %v1283_v20 = vpop.f32.mrf.mxu1 }
 0x975   :  { %v4646_v51 = vpop.f32.mrf.mxu1 }
 0x977   :  { %v1286_v59 = vpop.f32.mrf.mxu1 }
 0x981   :  { %v4657_v61 = vpop.f32.mrf.mxu1 }
 0x982   :  { %v1371_v54 = vadd.f32 %v4657_v61, %v4645_v10  ;;  %v4865_v10 = vld [vmem:[#allocation8 + $0x4c] ss:$16 sps:$4 sm:$0xff]  }
 0x983   :  { %v1362_v22 = vpop.f32.mrf.mxu1  ;;  %v4871_v61 = vld [vmem:[#allocation8 + $0x2c] ss:$16 sps:$4 sm:$0xff]  }
 0x984   :  { %v1363_v56 = vadd.f32 %v1362_v22, %v1283_v20  ;;  %v1379_v27 = vadd.f32 %v1371_v54, %v5458_v63  ;;  %v4860_v20 = vld [vmem:[#allocation8 + $0x40] ss:$16 sps:$4 sm:$0xff]   ;;  %v4879_v54 = vld [vmem:[#allocation10 + $0xf8] sm:$0xff]  }
 0x985   :  { %v4658_v23 = vpop.f32.mrf.mxu1  ;;  %v4866_v22 = vld [vmem:[#allocation8 + $0x20] ss:$16 sps:$4 sm:$0xff]  }
 0x986   :  { %v1377_v16 = vadd.f32 %v1363_v56, %v5452_v53  ;;  %v1374_v49 = vadd.f32 %v4658_v23, %v4646_v51  ;;  %v5633_v31 = vadd.f32 %v1384_v50, %v1379_v27  ;;  %v4863_v51 = vld [vmem:[#allocation8 + $0x48] ss:$16 sps:$4 sm:$0xff]   ;;  %v4874_v23 = vld [vmem:[#allocation8 + $0x4] ss:$16 sps:$4 sm:$0xff]  }
 0x987   :  { %v1365_v52 = vpop.f32.mrf.mxu1  ;;  %v4869_v56 = vld [vmem:[#allocation8 + $0x28] ss:$16 sps:$4 sm:$0xff]  }
 0x988   :  { %v1380_v17 = vadd.f32 %v1374_v49, %v5460_v0  ;;  %v1366_v25 = vadd.f32 %v1365_v52, %v1286_v59  ;;  %v5622_v26 = vadd.f32 %v1384_v50, %v1377_v16  ;;  %v4830_v0 = vld [vmem:[#allocation8 + $0xe0] ss:$16 sps:$4 sm:$0xff]   ;;  %v4868_v59 = vld [vmem:[#allocation8 + $0x24] ss:$16 sps:$4 sm:$0xff]   ;;  %v4877_v16 = vld [vmem:[#allocation8 + $0xc] ss:$16 sps:$4 sm:$0xff]  }
 0x989   :  { %1666 = vmatpush1.bf16.msra.mxu0 %v4830_v0  ;;  %v4872_v49 = vld [vmem:[#allocation8] ss:$16 sps:$4 sm:$0xff]   ;;  %v4878_v52 = vld [vmem:[#allocation10 + $0x78] sm:$0xff]  }
 0x98a   :  { %v1378_v46 = vadd.f32 %v1366_v25, %v5455_v60  ;;  %1389 = vadd.xlane.f32.xlu1 %v5622_v26  ;;  %v5629_v53 = vadd.f32 %v1384_v50, %v1380_v17  ;;  %v4835_v60 = vld [vmem:[#allocation8 + $0xec] ss:$16 sps:$4 sm:$0xff]   ;;  %1667 = vmatprep.subr.bf16.mxu0 %v4838_v62 }
 0x98b   :  { %1718 = vmatprep.subr.bf16.mxu1 %v4835_v60 }
 0x98c   :  { %v5627_v29 = vadd.f32 %v1384_v50, %v1378_v46  ;;  %1719 = vmatpush1.bf16.msra.mxu1 %v4833_v34  ;;  %v4875_v50 = vld [vmem:[#allocation8 + $0x8] ss:$16 sps:$4 sm:$0xff]  }
 0x98d   :  { %1720 = vmatprep.subr.bf16.mxu1 %v4841_v2  ;;  %1668 = vmatpush1.bf16.msra.mxu0 %v4836_v3 }
 0x98e   :  { %1391 = vadd.xlane.f32.xlu0 %v5627_v29  ;;  %1395 = vadd.xlane.f32.xlu1 %v5629_v53 }
 0x98f   :  { %1669 = vmatprep.subr.bf16.mxu0 %v4844_v5 }
 0x990   :  { %1721 = vmatpush1.bf16.msra.mxu1 %v4839_v4 }
 0x991   :  { %1722 = vmatprep.subr.bf16.mxu1 %v4847_v7  ;;  %1670 = vmatpush1.bf16.msra.mxu0 %v4842_v8 }
 0x992   :  { %1393 = vadd.xlane.f32.xlu0 %v5633_v31  ;;  %1671 = vmatprep.subr.bf16.mxu0 %v4850_v11 }
 0x994   :  { %1723 = vmatpush1.bf16.msra.mxu1 %v4845_v9 }
 0x995   :  { %1724 = vmatprep.subr.bf16.mxu1 %v4853_v12  ;;  %1672 = vmatpush1.bf16.msra.mxu0 %v4848_v6  ;;  %v4880_v12 = vld [vmem:[#allocation10 + $0x38] sm:$0xff]  }
 0x996   :  { %1673 = vmatprep.subr.bf16.mxu0 %v4856_v15  ;;  %v4881_v6 = vld [vmem:[#allocation10 + $0xb8] sm:$0xff]  }
 0x998   :  { %1725 = vmatpush1.bf16.msra.mxu1 %v4851_v13 }
 0x999   :  { %1726 = vmatprep.subr.bf16.mxu1 %v4859_v42  ;;  %1674 = vmatpush1.bf16.msra.mxu0 %v4854_v14  ;;  %v4882_v14 = vld [vmem:[#allocation10 + $0x70] sm:$0xff]   ;;  %v4887_v42 = vld [vmem:[#allocation10 + $0xe8] sm:$0xff]  }
 0x99a   :  { %1675 = vmatprep.subr.bf16.mxu0 %v4862_v19 }
 0x99c   :  { %1727 = vmatpush1.bf16.msra.mxu1 %v4857_v18  ;;  %v4885_v18 = vld [vmem:[#allocation10 + $0xb0] sm:$0xff]  }
 0x99d   :  { %1728 = vmatprep.subr.bf16.mxu1 %v4865_v10  ;;  %1676 = vmatpush1.bf16.msra.mxu0 %v4860_v20  ;;  %v4888_v10 = vld [vmem:[#allocation10 + $0x28] sm:$0xff]  }
 0x99e   :  { %1677 = vmatprep.subr.bf16.mxu0 %v4868_v59  ;;  %v4889_v20 = vld [vmem:[#allocation10 + $0xa8] sm:$0xff]   ;;  %v4891_v59 = vld [vmem:[#allocation10 + $0xe0] sm:$0xff]  }
 0x9a0   :  { %1729 = vmatpush1.bf16.msra.mxu1 %v4863_v51  ;;  %v4890_v51 = vld [vmem:[#allocation10 + $0x60] sm:$0xff]  }
 0x9a1   :  { %1730 = vmatprep.subr.bf16.mxu1 %v4871_v61  ;;  %1678 = vmatpush1.bf16.msra.mxu0 %v4866_v22  ;;  %v4892_v61 = vld [vmem:[#allocation10 + $0x20] sm:$0xff]  }
 0x9a2   :  { %1679 = vmatprep.subr.bf16.mxu0 %v4874_v23  ;;  %v4893_v22 = vld [vmem:[#allocation10 + $0xa0] sm:$0xff]   ;;  %v4895_v23 = vld [vmem:[#allocation10 + $0xd8] sm:$0xff]  }
 0x9a4   :  { %1731 = vmatpush1.bf16.msra.mxu1 %v4869_v56  ;;  %v4894_v56 = vld [vmem:[#allocation10 + $0x58] sm:$0xff]  }
 0x9a5   :  { %1732 = vmatprep.subr.bf16.mxu1 %v4877_v16  ;;  %1680 = vmatpush1.bf16.msra.mxu0 %v4872_v49  ;;  %v4896_v16 = vld [vmem:[#allocation10 + $0x18] sm:$0xff]  }
 0x9a6   :  { %4413 = vmatprep.subr.bf16.mxu0 %v4878_v52  ;;  %v4897_v49 = vld [vmem:[#allocation10 + $0x98] sm:$0xff]   ;;  %v4899_v52 = vld [vmem:[#allocation10 + $0xd0] sm:$0xff]  }
 0x9a8   :  { %1733 = vmatpush1.bf16.msra.mxu1 %v4875_v50  ;;  %v4898_v50 = vld [vmem:[#allocation10 + $0x50] sm:$0xff]  }
 0x9a9   :  { %4441 = vmatprep.subr.bf16.mxu1 %v4879_v54  ;;  %v4900_v54 = vld [vmem:[#allocation10 + $0x10] sm:$0xff]  }
 0xa13   :  { %v1390_v63 = vpop.xlane.xlu1 %1389 }
 0xa14   :  { %v1397_v36 = vmul.f32 0.0078125, %v1390_v63 }
 0xa16   :  { %v5637_v24 = vsub.f32 %v5622_v26, %v1397_v36 }
 0xa17   :  { %v1392_v37 = vpop.xlane.xlu0 %1391  ;;  %v1396_v38 = vpop.xlane.xlu1 %1395 }
 0xa18   :  { %v1398_v35 = vmul.f32 0.0078125, %v1392_v37  ;;  %v1400_v40 = vmul.f32 0.0078125, %v1396_v38  ;;  %v1405_v39 = vmul.f32 %v5637_v24, %v5637_v24 }
 0xa1a   :  { %v5642_v41 = vsub.f32 %v5627_v29, %v1398_v35  ;;  %1409 = vadd.xlane.f32.xlu0 %v1405_v39  ;;  %v5645_v32 = vsub.f32 %v5629_v53, %v1400_v40  ;;  %v5657_v35 = vsub.s32 2, %v5485_v55 }
 0xa1b   :  { %v1394_v43 = vpop.xlane.xlu0 %1393 }
 0xa1c   :  { %v1399_v28 = vmul.f32 0.0078125, %v1394_v43  ;;  %v1406_v44 = vmul.f32 %v5642_v41, %v5642_v41  ;;  %v1408_v48 = vmul.f32 %v5645_v32, %v5645_v32  ;;  %v1436_v43 = vrot.slane %v5493_v58, %v5657_v35 }
 0xa1e   :  { %v5650_v45 = vsub.f32 %v5633_v31, %v1399_v28  ;;  %1411 = vadd.xlane.f32.xlu1 %v1406_v44  ;;  %v5663_v28 = vsub.s32 3, %v5485_v55 }
 0xa20   :  { %v1407_v47 = vmul.f32 %v5650_v45, %v5650_v45  ;;  %v1444_v62 = vrot.slane %v5493_v58, %v5663_v28 }
 0xa22   :  { %1413 = vadd.xlane.f32.xlu0 %v1407_v47  ;;  %1415 = vadd.xlane.f32.xlu1 %v1408_v48 }
 0xaa3   :  { %v1410_v17 = vpop.xlane.xlu0 %1409 }
 0xaa4   :  { %v1417_v25 = vmul.f32 0.0078125, %v1410_v17  ;;  %v4901_v17 = vld [vmem:[#allocation10 + $0x90] sm:$0xff]  }
 0xaa6   :  { %v1421_v46 = vadd.f32 1e-05, %v1417_v25  ;;  %v4902_v25 = vld [vmem:[#allocation10 + $0x48] sm:$0xff]  }
 0xaa7   :  { %v1412_v27 = vpop.xlane.xlu1 %1411 }
 0xaa8   :  { %5094 = vrsqrt.f32 %v1421_v46  ;;  %v1418_v0 = vmul.f32 0.0078125, %v1412_v27  ;;  %v4903_v46 = vld [vmem:[#allocation10 + $0xc8] sm:$0xff]  }
 0xaa9   :  { %v4904_v27 = vld [vmem:[#allocation10 + $0x8] sm:$0xff]  }
 0xaaa   :  { %v1422_v33 = vadd.f32 1e-05, %v1418_v0  ;;  %v4905_v0 = vld [vmem:[#allocation10 + $0x88] sm:$0xff]  }
 0xaab   :  { %v1414_v34 = vpop.xlane.xlu0 %1413  ;;  %v1416_v60 = vpop.xlane.xlu1 %1415 }
 0xaac   :  { %5096 = vrsqrt.f32 %v1422_v33  ;;  %v1419_v63 = vmul.f32 0.0078125, %v1414_v34  ;;  %v1420_v36 = vmul.f32 0.0078125, %v1416_v60  ;;  %v4906_v33 = vld [vmem:[#allocation10 + $0x40] sm:$0xff]  }
 0xaad   :  { %v4907_v34 = vld [vmem:[#allocation10 + $0xc0] sm:$0xff]  }
 0xaae   :  { %v1423_v37 = vadd.f32 1e-05, %v1419_v63  ;;  %v1424_v38 = vadd.f32 1e-05, %v1420_v36  ;;  %v4908_v60 = vld [vmem:[#allocation10] sm:$0xff]  }
 0xaaf   :  { %v4909_v63 = vld [vmem:[#allocation10 + $0x80] sm:$0xff]  }
 0xab0   :  { %5098 = vrsqrt.f32 %v1423_v37  ;;  %v1483_v36 = vld [vmem:[%s5935_s9] sm:$0xf] }
 0xab1   :  { %5100 = vrsqrt.f32 %v1424_v38 }
 0xab5   :  { %v5095_v40 = vpop.eup %5094 }
 0xab6   :  { %v1429_v39 = vmul.f32 %v5095_v40, %v5637_v24  ;;  %v1492_v40 = vrot.slane %v1483_v36, %v5499_v30 }
 0xab8   :  { %v1437_v48 = vmul.f32 %v1436_v43, %v1429_v39  ;;  %v1500_v39 = vrot.slane %v1483_v36, %v5663_v28 }
 0xab9   :  { %v5097_v44 = vpop.eup %5096 }
 0xaba   :  { %v1430_v47 = vmul.f32 %v5097_v44, %v5642_v41  ;;  %v1445_v5 = vadd.f32 %v1444_v62, %v1437_v48  ;;  %v4883_v41 = vld [vmem:[#allocation10 + $0xf0] sm:$0xff]   ;;  %v1496_v44 = vrot.slane %v1483_v36, %v5657_v35 }
 0xabc   :  { %v1438_v2 = vmul.f32 %v1436_v43, %v1430_v47 }
 0xabd   :  { %v5099_v3 = vpop.eup %5098 }
 0xabe   :  { %v5101_v4 = vpop.eup %5100  ;;  %v1446_v7 = vadd.f32 %v1444_v62, %v1438_v2  ;;  %v1431_v24 = vmul.f32 %v5099_v3, %v5650_v45  ;;  %v4884_v45 = vld [vmem:[#allocation10 + $0x30] sm:$0xff]  }
 0xabf   :  { %v1432_v8 = vmul.f32 %v5101_v4, %v5645_v32  ;;  %v4886_v32 = vld [vmem:[#allocation10 + $0x68] sm:$0xff]  }
 0xac0   :  { %v1449_v9 = vpack.c.bf16 %v1446_v7, %v1445_v5  ;;  %v1439_v11 = vmul.f32 %v1436_v43, %v1431_v24 }
 0xac1   :  { %v1440_v13 = vmul.f32 %v1436_v43, %v1432_v8  ;;  %v1488_v43 = vrot.slane %v1483_v36, %v5488_v57 }
 0xac2   :  { %1698 = vmatmul.mubr.bf16.vlgmr.msra.gmra.mxu0 %v1449_v9  ;;  %1751 = vmatmul.mubr.bf16.vlgmr.msra.gmra.mxu1 %v1449_v9  ;;  %v1447_v58 = vadd.f32 %v1444_v62, %v1439_v11 }
 0xac3   :  { %1707 = vmatprep.mubr.bf16.mxu0 %v5329_v1  ;;  %1760 = vmatprep.mubr.bf16.mxu1 %v5329_v1  ;;  %v1448_v15 = vadd.f32 %v1444_v62, %v1440_v13 }
 0xac4   :  { %4414 = vmatpush3.bf16.msra.mxu0 %v4880_v12  ;;  %4442 = vmatpush3.bf16.msra.mxu1 %v4881_v6 }
 0xac5   :  { %4415 = vmatprep.subr.bf16.mxu0 %v4882_v14  ;;  %4443 = vmatprep.subr.bf16.mxu1 %v4883_v41  ;;  %v1450_v19 = vpack.c.bf16 %v1448_v15, %v1447_v58 }
 0xac8   :  { %4416 = vmatpush3.bf16.msra.mxu0 %v4884_v45  ;;  %4444 = vmatpush3.bf16.msra.mxu1 %v4885_v18 }
 0xac9   :  { %4417 = vmatprep.subr.bf16.mxu0 %v4886_v32  ;;  %4445 = vmatprep.subr.bf16.mxu1 %v4887_v42 }
 0xaca   :  { %1708 = vmatmul.mubr.bf16.gmra.mxu0 %v1450_v19  ;;  %1761 = vmatmul.mubr.bf16.gmra.mxu1 %v1450_v19 }
 0xacc   :  { %4418 = vmatpush3.bf16.msra.mxu0 %v4888_v10  ;;  %4446 = vmatpush3.bf16.msra.mxu1 %v4889_v20 }
 0xacd   :  { %4419 = vmatprep.subr.bf16.mxu0 %v4890_v51  ;;  %4447 = vmatprep.subr.bf16.mxu1 %v4891_v59 }
 0xad0   :  { %4420 = vmatpush3.bf16.msra.mxu0 %v4892_v61  ;;  %4448 = vmatpush3.bf16.msra.mxu1 %v4893_v22 }
 0xad1   :  { %4421 = vmatprep.subr.bf16.mxu0 %v4894_v56  ;;  %4449 = vmatprep.subr.bf16.mxu1 %v4895_v23 }
 0xad4   :  { %4422 = vmatpush3.bf16.msra.mxu0 %v4896_v16  ;;  %4450 = vmatpush3.bf16.msra.mxu1 %v4897_v49 }
 0xad5   :  { %4423 = vmatprep.subr.bf16.mxu0 %v4898_v50  ;;  %4451 = vmatprep.subr.bf16.mxu1 %v4899_v52 }
 0xad8   :  { %4424 = vmatpush3.bf16.msra.mxu0 %v4900_v54  ;;  %4452 = vmatpush3.bf16.msra.mxu1 %v4901_v17 }
 0xad9   :  { %4425 = vmatprep.subr.bf16.mxu0 %v4902_v25  ;;  %4453 = vmatprep.subr.bf16.mxu1 %v4903_v46 }
 0xadc   :  { %4426 = vmatpush3.bf16.msra.mxu0 %v4904_v27  ;;  %4454 = vmatpush3.bf16.msra.mxu1 %v4905_v0 }
 0xadd   :  { %4427 = vmatprep.subr.bf16.mxu0 %v4906_v33  ;;  %4455 = vmatprep.subr.bf16.mxu1 %v4907_v34 }
 0xae0   :  { %4428 = vmatpush3.bf16.msra.mxu0 %v4908_v60  ;;  %4456 = vmatpush3.bf16.msra.mxu1 %v4909_v63 }
 0xb82   :  { %v1699_v37 = vpop.f32.mrf.mxu0  ;;  %v1752_v38 = vpop.f32.mrf.mxu1 }
 0xb83   :  { %v1700_v24 = vadd.f32 %v1699_v37, %v1488_v43  ;;  %v1753_v8 = vadd.f32 %v1752_v38, %v1496_v44 }
 0xb84   :  { %v1701_v47 = vpop.f32.mrf.mxu0  ;;  %v1754_v48 = vpop.f32.mrf.mxu1 }
 0xb85   :  { %v1702_v3 = vadd.f32 %v1701_v47, %v1492_v40  ;;  %v1755_v4 = vadd.f32 %v1754_v48, %v1500_v39  ;;  %v1771_v42 = vmax.f32 %v1700_v24, 0.0  ;;  %v1773_v19 = vmax.f32 %v1753_v8, 0.0 }
 0xb86   :  { %v1703_v62 = vpop.f32.mrf.mxu0  ;;  %v1756_v2 = vpop.f32.mrf.mxu1 }
 0xb87   :  { %v1704_v5 = vadd.f32 %v1703_v62, %v1488_v43  ;;  %v1757_v7 = vadd.f32 %v1756_v2, %v1496_v44  ;;  %v1772_v15 = vmax.f32 %v1702_v3, 0.0  ;;  %v1774_v45 = vmax.f32 %v1755_v4, 0.0 }
 0xb88   :  { %v1705_v9 = vpop.f32.mrf.mxu0  ;;  %v1758_v11 = vpop.f32.mrf.mxu1 }
 0xb89   :  { %v1706_v12 = vadd.f32 %v1705_v9, %v1492_v40  ;;  %v1759_v6 = vadd.f32 %v1758_v11, %v1500_v39  ;;  %v1775_v13 = vmax.f32 %v1704_v5, 0.0  ;;  %v1777_v14 = vmax.f32 %v1757_v7, 0.0 }
 0xb8a   :  { %v1709_v41 = vpop.f32.mrf.mxu0  ;;  %v1762_v58 = vpop.f32.mrf.mxu1 }
 0xb8b   :  { %v1776_v18 = vmax.f32 %v1706_v12, 0.0  ;;  %v1778_v32 = vmax.f32 %v1759_v6, 0.0  ;;  %v1787_v61 = vpack.c.bf16 %v1775_v13, %v1771_v42  ;;  %v1789_v22 = vpack.c.bf16 %v1777_v14, %v1773_v19 }
 0xb8c   :  { %v1711_v10 = vpop.f32.mrf.mxu0  ;;  %v1764_v20 = vpop.f32.mrf.mxu1  ;;  %v1710_v54 = vadd.f32 %v1709_v41, %v1488_v43  ;;  %v1763_v17 = vadd.f32 %v1762_v58, %v1496_v44 }
 0xb8d   :  { %v1788_v51 = vpack.c.bf16 %v1776_v18, %v1772_v15  ;;  %v1790_v59 = vpack.c.bf16 %v1778_v32, %v1774_v45  ;;  %v1712_v56 = vadd.f32 %v1711_v10, %v1492_v40  ;;  %v1765_v49 = vadd.f32 %v1764_v20, %v1500_v39 }
 0xb8e   :  { %v1713_v23 = vpop.f32.mrf.mxu0  ;;  %v1766_v16 = vpop.f32.mrf.mxu1  ;;  %v1779_v38 = vmax.f32 %v1710_v54, 0.0  ;;  %v1781_v47 = vmax.f32 %v1763_v17, 0.0 }
 0xb8f   :  { %v1714_v50 = vadd.f32 %v1713_v23, %v1488_v43  ;;  %v1767_v52 = vadd.f32 %v1766_v16, %v1496_v44  ;;  %2087 = vmatprep.mubr.bf16.mxu0 %v1788_v51  ;;  %2136 = vmatprep.mubr.bf16.mxu1 %v1790_v59  ;;  %v1780_v60 = vmax.f32 %v1712_v56, 0.0  ;;  %v1782_v63 = vmax.f32 %v1765_v49, 0.0  ;;  %v5158_v44 = vld [vmem:[%s5934_s8] sm:$0x3f] }
 0xb90   :  { %v1715_v25 = vpop.f32.mrf.mxu0  ;;  %v1768_v46 = vpop.f32.mrf.mxu1  ;;  %2088 = vmatmul.mubr.bf16.vlgmr.msra.gmra.mxu0 %v1787_v61  ;;  %2137 = vmatmul.mubr.bf16.vlgmr.msra.gmra.mxu1 %v1789_v22 }
 0xb91   :  { %v1716_v27 = vadd.f32 %v1715_v25, %v1492_v40  ;;  %v1769_v0 = vadd.f32 %v1768_v46, %v1500_v39  ;;  %v1783_v33 = vmax.f32 %v1714_v50, 0.0  ;;  %v1785_v34 = vmax.f32 %v1767_v52, 0.0  ;;  %v4912_v46 = vld [vmem:[#allocation5 + $0x16c] ss:$12 sps:$4 sm:$0xff]  }
 0xb92   :  { %v1861_v40 = vsub.s32 5, %v5485_v55  ;;  %2382 = vmatprep.subr.bf16.mxu0 %v4912_v46 }
 0xb93   :  { %v1784_v36 = vmax.f32 %v1716_v27, 0.0  ;;  %v1786_v37 = vmax.f32 %v1769_v0, 0.0  ;;  %v1791_v2 = vpack.c.bf16 %v1783_v33, %v1779_v38  ;;  %v1793_v3 = vpack.c.bf16 %v1785_v34, %v1781_v47 }
 0xb94   :  { %v1862_v4 = vrot.slane %v5158_v44, %v1861_v40  ;;  %v4918_v44 = vld [vmem:[#allocation5 + $0x13c] ss:$12 sps:$4 sm:$0xff]  }
 0xb95   :  { %v1792_v48 = vpack.c.bf16 %v1784_v36, %v1780_v60  ;;  %v1794_v62 = vpack.c.bf16 %v1786_v37, %v1782_v63 }
 0xb97   :  { %2095 = vmatprep.mubr.bf16.mxu0 %v1792_v48  ;;  %2144 = vmatprep.mubr.bf16.mxu1 %v1794_v62 }
 0xb98   :  { %2096 = vmatmul.mubr.bf16.gmra.mxu0 %v1791_v2  ;;  %2145 = vmatmul.mubr.bf16.gmra.mxu1 %v1793_v3 }
 0xb99   :  { %2414 = vmatprep.mubr.bf16.mxu0 %v5329_v1 }
 0xc50   :  { %v4429_v39 = vpop.f32.mrf.mxu0  ;;  %v4457_v43 = vpop.f32.mrf.mxu1 }
 0xc52   :  { %v4430_v5 = vpop.f32.mrf.mxu0  ;;  %v4458_v7 = vpop.f32.mrf.mxu1 }
 0xc53   :  { %v4431_v24 = vadd.f32 %v4430_v5, %v4429_v39  ;;  %v4459_v12 = vadd.f32 %v4458_v7, %v4457_v43  ;;  %v4915_v39 = vld [vmem:[#allocation5 + $0x154] ss:$12 sps:$4 sm:$0xff]   ;;  %v4913_v43 = vld [vmem:[#allocation5 + $0x150] ss:$12 sps:$4 sm:$0xff]   ;;  %v4916_v5 = vld [vmem:[#allocation5 + $0x138] ss:$12 sps:$4 sm:$0xff]  }
 0xc54   :  { %v4432_v8 = vpop.f32.mrf.mxu0  ;;  %v4460_v9 = vpop.f32.mrf.mxu1  ;;  %v4922_v7 = vld [vmem:[#allocation5 + $0x124] ss:$12 sps:$4 sm:$0xff]  }
 0xc55   :  { %v2090_v11 = vadd.f32 %v4431_v24, %v1862_v4  ;;  %v4923_v24 = vld [vmem:[#allocation5 + $0x158] ss:$12 sps:$4 sm:$0xff]  }
 0xc56   :  { %v4433_v6 = vpop.f32.mrf.mxu0  ;;  %v4461_v13 = vpop.f32.mrf.mxu1 }
 0xc57   :  { %v2139_v14 = vadd.f32 %v4459_v12, %v2090_v11  ;;  %v4434_v41 = vadd.f32 %v4433_v6, %v4432_v8  ;;  %v4462_v18 = vadd.f32 %v4461_v13, %v4460_v9  ;;  %v4920_v8 = vld [vmem:[#allocation5 + $0x120] ss:$12 sps:$4 sm:$0xff]   ;;  %v4924_v12 = vld [vmem:[#allocation5 + $0x108] ss:$12 sps:$4 sm:$0xff]  }
 0xc58   :  { %v4435_v58 = vpop.f32.mrf.mxu0  ;;  %v4463_v15 = vpop.f32.mrf.mxu1  ;;  %v4926_v9 = vld [vmem:[#allocation5 + $0x10c] ss:$12 sps:$4 sm:$0xff]   ;;  %v4930_v6 = vld [vmem:[#allocation5 + $0xf4] ss:$12 sps:$4 sm:$0xff]  }
 0xc59   :  { %v2093_v45 = vadd.f32 %v4434_v41, %v1862_v4  ;;  %v5687_v32 = vadd.f32 %v2139_v14, %v5622_v26  ;;  %v4927_v11 = vld [vmem:[#allocation5 + $0x140] ss:$12 sps:$4 sm:$0xff]   ;;  %v4931_v13 = vld [vmem:[#allocation5 + $0x128] ss:$12 sps:$4 sm:$0xff]   ;;  %v4928_v14 = vld [vmem:[#allocation5 + $0xf0] ss:$12 sps:$4 sm:$0xff]  }
 0xc5a   :  { %v4436_v42 = vpop.f32.mrf.mxu0  ;;  %v4464_v19 = vpop.f32.mrf.mxu1  ;;  %v4934_v41 = vld [vmem:[#allocation5 + $0xdc] ss:$12 sps:$4 sm:$0xff]  }
 0xc5b   :  { %v2142_v10 = vadd.f32 %v4462_v18, %v2093_v45  ;;  %v4437_v20 = vadd.f32 %v4436_v42, %v4435_v58  ;;  %2159 = vadd.xlane.f32.xlu0 %v5687_v32  ;;  %v4465_v22 = vadd.f32 %v4464_v19, %v4463_v15  ;;  %v4935_v58 = vld [vmem:[#allocation5 + $0x110] ss:$12 sps:$4 sm:$0xff]   ;;  %v4932_v15 = vld [vmem:[#allocation5 + $0xd8] ss:$12 sps:$4 sm:$0xff]   ;;  %v4936_v42 = vld [vmem:[#allocation5 + $0xc0] ss:$12 sps:$4 sm:$0xff]  }
 0xc5c   :  { %v4438_v51 = vpop.f32.mrf.mxu0  ;;  %v4466_v59 = vpop.f32.mrf.mxu1  ;;  %v4938_v45 = vld [vmem:[#allocation5 + $0xc4] ss:$12 sps:$4 sm:$0xff]   ;;  %v4940_v19 = vld [vmem:[#allocation5 + $0xe0] ss:$12 sps:$4 sm:$0xff]  }
 0xc5d   :  { %v2098_v61 = vadd.f32 %v4437_v20, %v1862_v4  ;;  %v5691_v56 = vadd.f32 %v2142_v10, %v5627_v29  ;;  %v4910_v29 = vld [vmem:[#allocation5 + $0x168] ss:$12 sps:$4 sm:$0xff]   ;;  %v4939_v18 = vld [vmem:[#allocation5 + $0xf8] ss:$12 sps:$4 sm:$0xff]  }
 0xc5e   :  { %v4439_v23 = vpop.f32.mrf.mxu0  ;;  %v4467_v16 = vpop.f32.mrf.mxu1  ;;  %2383 = vmatpush1.bf16.msra.mxu0 %v4910_v29  ;;  %v4941_v10 = vld [vmem:[#allocation5 + $0xc8] ss:$12 sps:$4 sm:$0xff]  }
 0xc5f   :  { %v2147_v49 = vadd.f32 %v4465_v22, %v2098_v61  ;;  %v4440_v50 = vadd.f32 %v4439_v23, %v4438_v51  ;;  %2161 = vadd.xlane.f32.xlu1 %v5691_v56  ;;  %v4468_v52 = vadd.f32 %v4467_v16, %v4466_v59  ;;  %2384 = vmatprep.subr.bf16.mxu0 %v4915_v39  ;;  %v5725_v29 = vld [vmem:[%s5934_s8 + $0x8] sm:$0x3f] }
 0xc61   :  { %v2101_v26 = vadd.f32 %v4440_v50, %v1862_v4  ;;  %v5695_v54 = vadd.f32 %v2147_v49, %v5633_v31  ;;  %v4919_v4 = vld [vmem:[#allocation5 + $0x170] ss:$12 sps:$4 sm:$0xff]  }
 0xc62   :  { %2385 = vmatpush1.bf16.msra.mxu0 %v4913_v43  ;;  %4659 = vmatprep.subr.bf16.mxu1 %v4919_v4 }
 0xc63   :  { %v2150_v17 = vadd.f32 %v4468_v52, %v2101_v26  ;;  %2163 = vadd.xlane.f32.xlu0 %v5695_v54  ;;  %2386 = vmatprep.subr.bf16.mxu0 %v4918_v44 }
 0xc64   :  { %4660 = vmatpush3.bf16.msra.mxu1 %v4919_v4 }
 0xc65   :  { %v5699_v25 = vadd.f32 %v2150_v17, %v5629_v53  ;;  %4661 = vmatprep.subr.bf16.mxu1 %v4923_v24 }
 0xc66   :  { %2387 = vmatpush1.bf16.msra.mxu0 %v4916_v5 }
 0xc67   :  { %2165 = vadd.xlane.f32.xlu1 %v5699_v25  ;;  %2388 = vmatprep.subr.bf16.mxu0 %v4922_v7 }
 0xc68   :  { %4662 = vmatpush3.bf16.msra.mxu1 %v4923_v24 }
 0xc69   :  { %4663 = vmatprep.subr.bf16.mxu1 %v4927_v11 }
 0xc6a   :  { %2389 = vmatpush1.bf16.msra.mxu0 %v4920_v8 }
 0xc6b   :  { %2390 = vmatprep.subr.bf16.mxu0 %v4926_v9 }
 0xc6c   :  { %4664 = vmatpush3.bf16.msra.mxu1 %v4927_v11 }
 0xc6d   :  { %4665 = vmatprep.subr.bf16.mxu1 %v4931_v13 }
 0xc6e   :  { %2391 = vmatpush1.bf16.msra.mxu0 %v4924_v12 }
 0xc6f   :  { %2392 = vmatprep.subr.bf16.mxu0 %v4930_v6 }
 0xc70   :  { %4666 = vmatpush3.bf16.msra.mxu1 %v4931_v13 }
 0xc71   :  { %4667 = vmatprep.subr.bf16.mxu1 %v4935_v58 }
 0xc72   :  { %2393 = vmatpush1.bf16.msra.mxu0 %v4928_v14 }
 0xc73   :  { %2394 = vmatprep.subr.bf16.mxu0 %v4934_v41 }
 0xc74   :  { %4668 = vmatpush3.bf16.msra.mxu1 %v4935_v58 }
 0xc75   :  { %4669 = vmatprep.subr.bf16.mxu1 %v4939_v18 }
 0xc76   :  { %2395 = vmatpush1.bf16.msra.mxu0 %v4932_v15 }
 0xc77   :  { %2396 = vmatprep.subr.bf16.mxu0 %v4938_v45 }
 0xc78   :  { %4670 = vmatpush3.bf16.msra.mxu1 %v4939_v18 }
 0xc79   :  { %4671 = vmatprep.subr.bf16.mxu1 %v4940_v19 }
 0xc7a   :  { %2397 = vmatpush1.bf16.msra.mxu0 %v4936_v42 }
 0xc7c   :  { %4672 = vmatpush3.bf16.msra.mxu1 %v4940_v19 }
 0xc7d   :  { %4673 = vmatprep.subr.bf16.mxu1 %v4941_v10 }
 0xc80   :  { %4674 = vmatpush3.bf16.msra.mxu1 %v4941_v10 }
 0xce4   :  { %v2160_v27 = vpop.xlane.xlu0 %2159 }
 0xce5   :  { %v2167_v0 = vmul.f32 0.0078125, %v2160_v27 }
 0xce7   :  { %v5703_v33 = vsub.f32 %v5687_v32, %v2167_v0  ;;  %v2206_v0 = vrot.slane %v5725_v29, %v5488_v57 }
 0xce8   :  { %v2162_v34 = vpop.xlane.xlu1 %2161 }
 0xce9   :  { %v2168_v31 = vmul.f32 0.0078125, %v2162_v34  ;;  %v2175_v60 = vmul.f32 %v5703_v33, %v5703_v33 }
 0xceb   :  { %v5708_v63 = vsub.f32 %v5691_v56, %v2168_v31  ;;  %2179 = vadd.xlane.f32.xlu0 %v2175_v60 }
 0xcec   :  { %v2164_v53 = vpop.xlane.xlu0 %2163 }
 0xced   :  { %v2169_v36 = vmul.f32 0.0078125, %v2164_v53  ;;  %v2176_v37 = vmul.f32 %v5708_v63, %v5708_v63  ;;  %v2214_v53 = vrot.slane %v5725_v29, %v5499_v30 }
 0xcef   :  { %v5713_v38 = vsub.f32 %v5695_v54, %v2169_v36  ;;  %2181 = vadd.xlane.f32.xlu1 %v2176_v37 }
 0xcf0   :  { %v2166_v47 = vpop.xlane.xlu1 %2165 }
 0xcf1   :  { %v2170_v48 = vmul.f32 0.0078125, %v2166_v47  ;;  %v2177_v62 = vmul.f32 %v5713_v38, %v5713_v38 }
 0xcf3   :  { %v5718_v2 = vsub.f32 %v5699_v25, %v2170_v48  ;;  %2183 = vadd.xlane.f32.xlu0 %v2177_v62 }
 0xcf5   :  { %v2178_v3 = vmul.f32 %v5718_v2, %v5718_v2 }
 0xcf7   :  { %2185 = vadd.xlane.f32.xlu1 %v2178_v3 }
 0xd74   :  { %v2180_v20 = vpop.xlane.xlu0 %2179 }
 0xd75   :  { %v2187_v51 = vmul.f32 0.0078125, %v2180_v20 }
 0xd77   :  { %v2191_v59 = vadd.f32 1e-05, %v2187_v51 }
 0xd78   :  { %v2182_v61 = vpop.xlane.xlu1 %2181 }
 0xd79   :  { %5102 = vrsqrt.f32 %v2191_v59  ;;  %v2188_v22 = vmul.f32 0.0078125, %v2182_v61 }
 0xd7b   :  { %v2192_v23 = vadd.f32 1e-05, %v2188_v22 }
 0xd7c   :  { %v2184_v16 = vpop.xlane.xlu0 %2183 }
 0xd7d   :  { %5104 = vrsqrt.f32 %v2192_v23  ;;  %v2189_v49 = vmul.f32 0.0078125, %v2184_v16  ;;  %v5760_v16 = vld [vmem:[%s5927_s1] sm:$0xff] }
 0xd7f   :  { %v2193_v50 = vadd.f32 1e-05, %v2189_v49 }
 0xd80   :  { %v2186_v26 = vpop.xlane.xlu1 %2185 }
 0xd81   :  { %5106 = vrsqrt.f32 %v2193_v50  ;;  %v2190_v52 = vmul.f32 0.0078125, %v2186_v26 }
 0xd83   :  { %v2194_v17 = vadd.f32 1e-05, %v2190_v52 }
 0xd85   :  { %5108 = vrsqrt.f32 %v2194_v17 }
 0xd86   :  { %v5103_v46 = vpop.eup %5102 }
 0xd87   :  { %v2199_v27 = vmul.f32 %v5103_v46, %v5703_v33  ;;  %v5767_v46 = vld [vmem:[%s5927_s1 + $0x10] sm:$0xff] }
 0xd89   :  { %v2207_v60 = vmul.f32 %v2206_v0, %v2199_v27 }
 0xd8a   :  { %v5105_v34 = vpop.eup %5104 }
 0xd8b   :  { %v2200_v31 = vmul.f32 %v5105_v34, %v5708_v63  ;;  %v2215_v47 = vadd.f32 %v2214_v53, %v2207_v60 }
 0xd8d   :  { %v2208_v36 = vmul.f32 %v2206_v0, %v2200_v31 }
 0xd8e   :  { %v5107_v37 = vpop.eup %5106 }
 0xd8f   :  { %v2216_v48 = vadd.f32 %v2214_v53, %v2208_v36  ;;  %v2201_v62 = vmul.f32 %v5107_v37, %v5713_v38 }
 0xd91   :  { %v2219_v3 = vpack.c.bf16 %v2216_v48, %v2215_v47  ;;  %v2209_v43 = vmul.f32 %v2206_v0, %v2201_v62 }
 0xd92   :  { %v5109_v39 = vpop.eup %5108 }
 0xd93   :  { %2415 = vmatmul.mubr.bf16.vlgmr.msra.gmra.mxu0 %v2219_v3  ;;  %4675 = vmatprep.mubr.bf16.mxu1 %v2219_v3  ;;  %v2202_v33 = vmul.f32 %v5109_v39, %v5718_v2  ;;  %v2217_v44 = vadd.f32 %v2214_v53, %v2209_v43 }
 0xd94   :  { %2424 = vmatprep.mubr.bf16.mxu0 %v5329_v1 }
 0xd95   :  { %v2210_v63 = vmul.f32 %v2206_v0, %v2202_v33  ;;  %v5773_v0 = vld [vmem:[%s5927_s1 + $0x8] sm:$0xff] }
 0xd97   :  { %v2218_v4 = vadd.f32 %v2214_v53, %v2210_v63  ;;  %v5781_v53 = vld [vmem:[%s5927_s1 + $0x18] sm:$0xff] }
 0xd99   :  { %v2220_v5 = vpack.c.bf16 %v2218_v4, %v2217_v44 }
 0xd9b   :  { %2425 = vmatmul.mubr.bf16.gmra.mxu0 %v2220_v5  ;;  %4676 = vmatmul.mubr.bf16.vlgmr.msra.gmra.mxu1 %v2220_v5 }
 0xe53   :  { %v2416_v7 = vpop.f32.mrf.mxu0 }
 0xe55   :  { %v2418_v24 = vpop.f32.mrf.mxu0 }
 0xe57   :  { %v2420_v8 = vpop.f32.mrf.mxu0 }
 0xe58   :  { %v5736_v9 = vpack.c.bf16 %v2420_v8, %v2416_v7 }
 0xe59   :  { %v2422_v38 = vpop.f32.mrf.mxu0 }
 0xe5a   :  { %4683 = vmatprep.mubr.msk.bf16.mxu0 %vm837_vm6, %v5736_v9  ;;  %v2486_v42 = vpack.c.bf16 %v2422_v38, %v2418_v24 }
 0xe5b   :  { %v2426_v11 = vpop.f32.mrf.mxu0  ;;  %v4677_v2 = vpop.f32.mrf.mxu1 }
 0xe5c   :  { %v2497_v10 = vsel %vm837_vm6, %v2486_v42, 0 }
 0xe5d   :  { %v2428_v12 = vpop.f32.mrf.mxu0  ;;  %v2469_v6 = vpop.f32.mrf.mxu1 }
 0xe5f   :  { %v2430_v13 = vpop.f32.mrf.mxu0  ;;  %v4678_v14 = vpop.f32.mrf.mxu1 }
 0xe60   :  { %v5740_v41 = vpack.c.bf16 %v4678_v14, %v4677_v2  ;;  %v2485_v20 = vpack.c.bf16 %v2430_v13, %v2426_v11 }
 0xe61   :  { %v2432_v58 = vpop.f32.mrf.mxu0  ;;  %v2472_v15 = vpop.f32.mrf.mxu1 }
 0xe62   :  { %v5742_v45 = vpack.c.bf16 %v2432_v58, %v2428_v12  ;;  %v5744_v18 = vpack.c.bf16 %v2472_v15, %v2469_v6  ;;  %4687 = vmatprep.subr.bf16.mxu1 %v5740_v41 }
 0xe63   :  { %4688 = vmatpush3.bf16.msra.mxu1 %v5740_v41 }
 0xe64   :  { %4739 = vmatprep.subr.msk.bf16.mxu0 %vm837_vm6, %v5742_v45  ;;  %4689 = vmatprep.subr.bf16.mxu1 %v5744_v18  ;;  %v2500_v19 = vsel %vm837_vm6, %v5742_v45, 0 }
 0xe65   :  { %4680 = vmatpush3.bf16.xpose.msra.mxu0 %v2500_v19 }
 0xe66   :  { %4740 = vmatprep.subr.msk.bf16.mxu0 %vm837_vm6, %v2486_v42 }
 0xe67   :  { %4690 = vmatpush3.bf16.msra.mxu1 %v5744_v18 }
 0xe6d   :  { %4682 = vmatpush3.bf16.xpose.msra.mxu0 %v2497_v10 }
 0xe74   :  { %4684 = vmatmul.mubr.msk.bf16.vlgmr.msra.gmra.mxu0 %vm837_vm6, %v2485_v20 }
 0xf34   :  { %v4685_v51 = vpop.f32.mrf.mxu0 }
 0xf35   :  { %v2553_v61 = vmul.f32 0.088388346, %v4685_v51 }
 0xf36   :  { %v2536_v59 = vpop.f32.mrf.mxu0 }
 0xf37   :  { %v2551_v22 = vmul.f32 0.088388346, %v2536_v59  ;;  %v2557_v27 = vadd.f32 %v5767_v46, %v2553_v61 }
 0xf38   :  { %v4686_v23 = vpop.f32.mrf.mxu0 }
 0xf39   :  { %v2555_v49 = vadd.f32 %v5760_v16, %v2551_v22  ;;  %v2554_v26 = vmul.f32 0.088388346, %v4686_v23  ;;  %v2565_v31 = vsel %vm907_vm12, %v2557_v27, -inf }
 0xf3a   :  { %v2539_v50 = vpop.f32.mrf.mxu0 }
 0xf3b   :  { %v2552_v52 = vmul.f32 0.088388346, %v2539_v50  ;;  %v2559_v17 = vsel %vm907_vm12, %v2555_v49, -inf  ;;  %v2558_v36 = vadd.f32 %v5781_v53, %v2554_v26 }
 0xf3c   :  { %2560 = vmax.xlane.f32.xlu0 %v2559_v17  ;;  %v4942_v17 = vld [vmem:[#allocation7 + $0x58] sm:$0xff]  }
 0xf3d   :  { %v2556_v34 = vadd.f32 %v5773_v0, %v2552_v52  ;;  %v2568_v37 = vsel %vm907_vm12, %v2558_v36, -inf }
 0xf3f   :  { %v2562_v60 = vsel %vm907_vm12, %v2556_v34, -inf }
 0xf40   :  { %2566 = vmax.xlane.f32.xlu0 %v2565_v31  ;;  %2563 = vmax.xlane.f32.xlu1 %v2562_v60  ;;  %v4944_v60 = vld [vmem:[#allocation7 + $0x48] sm:$0xff]  }
 0xf44   :  { %2569 = vmax.xlane.f32.xlu1 %v2568_v37 }
 0xfc5   :  { %v2561_v47 = vpop.xlane.xlu0 %2560 }
 0xfc6   :  { %v2571_v48 = vsub.f32 %v2555_v49, %v2561_v47 }
 0xfc8   :  { %v2575_v43 = vmul.f32 1.442695, %v2571_v48 }
 0xfc9   :  { %v2567_v62 = vpop.xlane.xlu0 %2566  ;;  %v2564_v3 = vpop.xlane.xlu1 %2563 }
 0xfca   :  { %v2573_v39 = vsub.f32 %v2557_v27, %v2567_v62  ;;  %v2572_v33 = vsub.f32 %v2556_v34, %v2564_v3  ;;  %v4943_v34 = vld [vmem:[#allocation7 + $0x50] sm:$0xff]  }
 0xfcc   :  { %v2579_v63 = vmul.f32 1.442695, %v2573_v39  ;;  %v2577_v44 = vmul.f32 1.442695, %v2572_v33 }
 0xfcd   :  { %v2570_v4 = vpop.xlane.xlu1 %2569 }
 0xfce   :  { %5110 = vpow2.f32 %v2579_v63  ;;  %v2574_v5 = vsub.f32 %v2558_v36, %v2570_v4  ;;  %v4945_v36 = vld [vmem:[#allocation7 + $0x40] sm:$0xff]  }
 0xfcf   :  { %5112 = vpow2.f32 %v2577_v44 }
 0xfd0   :  { %5114 = vpow2.f32 %v2575_v43  ;;  %v2581_v7 = vmul.f32 1.442695, %v2574_v5 }
 0xfd2   :  { %5116 = vpow2.f32 %v2581_v7 }
 0xfdb   :  { %v5111_v24 = vpop.eup %5110 }
 0xfdc   :  { %v5113_v8 = vpop.eup %5112  ;;  %v2589_v38 = vsel %vm907_vm12, %v5111_v24, 0.0 }
 0xfdd   :  { %v5115_v11 = vpop.eup %5114  ;;  %2590 = vadd.xlane.f32.xlu0 %v2589_v38  ;;  %v2586_v2 = vsel %vm907_vm12, %v5113_v8, 0.0 }
 0xfde   :  { %2587 = vadd.xlane.f32.xlu1 %v2586_v2  ;;  %v2583_v6 = vsel %vm907_vm12, %v5115_v11, 0.0 }
 0xfdf   :  { %v5117_v12 = vpop.eup %5116 }
 0xfe0   :  { %v2592_v13 = vsel %vm907_vm12, %v5117_v12, 0.0 }
 0xfe1   :  { %2584 = vadd.xlane.f32.xlu0 %v2583_v6 }
 0xfe2   :  { %2593 = vadd.xlane.f32.xlu1 %v2592_v13 }
 0xff3   :  { %2679 = vrot.lane.b32.xlu1 %v2486_v42, %s5321_s19 }
 0xff7   :  { %2673 = vrot.lane.b32.xlu1 %v5736_v9, %s5321_s19  ;;  %2681 = vrot.lane.b32.xlu0 %v5742_v45, %s5321_s19 }
 0xffb   :  { %2675 = vrot.lane.b32.xlu0 %v2485_v20, %s5321_s19 }
0x1066   :  { %v2591_v14 = vpop.xlane.xlu0 %2590 }
0x1067   :  { %v2588_v58 = vpop.xlane.xlu1 %2587 }
0x1068   :  { %5118 = vrcp.f32 %v2588_v58 }
0x1069   :  { %5120 = vrcp.f32 %v2591_v14 }
0x106a   :  { %v2585_v15 = vpop.xlane.xlu0 %2584 }
0x106b   :  { %5122 = vrcp.f32 %v2585_v15  ;;  %v2594_v19 = vpop.xlane.xlu1 %2593 }
0x106c   :  { %5124 = vrcp.f32 %v2594_v19 }
0x106e   :  { %v2682_v10 = vpop.permute.xlu0 %2681 }
0x106f   :  { %4741 = vmatprep.subr.msk.bf16.mxu1 %vm837_vm6, %v2682_v10  ;;  %v2680_v9 = vpop.permute.xlu1 %2679  ;;  %v2693_v26 = vsel %vm837_vm6, %v2682_v10, 0 }
0x1070   :  { %v2690_v27 = vsel %vm837_vm6, %v2680_v9, 0 }
0x1072   :  { %v2676_v31 = vpop.permute.xlu0 %2675 }
0x1073   :  { %v2674_v52 = vpop.permute.xlu1 %2673 }
0x1075   :  { %v5119_v42 = vpop.eup %5118 }
0x1076   :  { %v5121_v51 = vpop.eup %5120  ;;  %v2600_v45 = vmul.f32 %v5119_v42, %v5113_v8 }
0x1077   :  { %v2601_v23 = vmul.f32 %v5121_v51, %v5111_v24 }
0x1078   :  { %v5123_v59 = vpop.eup %5122 }
0x1079   :  { %v5125_v61 = vpop.eup %5124  ;;  %v2599_v22 = vmul.f32 %v5123_v59, %v5115_v11 }
0x107a   :  { %v2602_v20 = vmul.f32 %v5125_v61, %v5117_v12 }
0x107b   :  { %v2603_v49 = vpack.c.bf16 %v2600_v45, %v2599_v22 }
0x107c   :  { %v2604_v50 = vpack.c.bf16 %v2602_v20, %v2601_v23 }
0x107d   :  { %4691 = vmatprep.mubr.msk.bf16.mxu1 %vm907_vm12, %v2603_v49 }
0x107e   :  { %4692 = vmatmul.mubr.msk.bf16.vlgmr.msra.gmra.mxu1 %vm907_vm12, %v2604_v50 }
0x107f   :  { %4696 = vmatpush3.bf16.xpose.msra.mxu1 %v2693_v26  ;;  %4699 = vmatprep.mubr.msk.bf16.mxu1 %vm837_vm6, %v2674_v52 }
0x1080   :  { %4742 = vmatprep.subr.msk.bf16.mxu1 %vm837_vm6, %v2680_v9 }
0x1087   :  { %4698 = vmatpush3.bf16.xpose.msra.mxu1 %v2690_v27 }
0x1088   :  { %4723 = vmatprep.subr.bf16.mxu1 %v4942_v17 }
0x108e   :  { %4700 = vmatmul.mubr.msk.bf16.vlgmr.msra.gmra.mxu1 %vm837_vm6, %v2676_v31 }
0x108f   :  { %4724 = vmatpush3.bf16.msra.mxu1 %v4942_v17 }
0x1090   :  { %4725 = vmatprep.subr.bf16.mxu1 %v4943_v34 }
0x1093   :  { %4726 = vmatpush3.bf16.msra.mxu1 %v4943_v34 }
0x1094   :  { %4727 = vmatprep.subr.bf16.mxu1 %v4944_v60 }
0x1097   :  { %4728 = vmatpush3.bf16.msra.mxu1 %v4944_v60 }
0x1098   :  { %4729 = vmatprep.subr.bf16.mxu1 %v4945_v36 }
0x109b   :  { %4730 = vmatpush3.bf16.msra.mxu1 %v4945_v36  ;;  %v4946_v36 = vld [vmem:[#allocation7 + $0x78] sm:$0xff]  }
0x113e   :  { %v4693_v37 = vpop.f32.mrf.mxu1 }
0x1140   :  { %v2645_v47 = vpop.f32.mrf.mxu1 }
0x1142   :  { %v4694_v48 = vpop.f32.mrf.mxu1 }
0x1143   :  { %v2661_v39 = vpack.c.bf16 %v4694_v48, %v4693_v37 }
0x1144   :  { %v2648_v62 = vpop.f32.mrf.mxu1 }
0x1145   :  { %v2660_v3 = vpack.c.bf16 %v2648_v62, %v2645_v47 }
0x1147   :  { %4731 = vmatprep.mubr.msk.bf16.mxu1 %vm837_vm6, %v2660_v3 }
0x1148   :  { %4732 = vmatmul.mubr.msk.bf16.vlgmr.msra.gmra.mxu1 %vm837_vm6, %v2661_v39 }
0x1149   :  { %3404 = vmatprep.mubr.bf16.mxu1 %v5329_v1 }
0x114e   :  { %v4701_v33 = vpop.f32.mrf.mxu1 }
0x114f   :  { %v2746_v24 = vmul.f32 0.088388346, %v4701_v33 }
0x1150   :  { %v2729_v43 = vpop.f32.mrf.mxu1 }
0x1151   :  { %v2744_v63 = vmul.f32 0.088388346, %v2729_v43  ;;  %v2750_v13 = vadd.f32 %v5767_v46, %v2746_v24 }
0x1152   :  { %v4702_v44 = vpop.f32.mrf.mxu1 }
0x1153   :  { %v2747_v4 = vmul.f32 0.088388346, %v4702_v44  ;;  %v2748_v5 = vadd.f32 %v5760_v16, %v2744_v63  ;;  %v2758_v16 = vsel %vm907_vm12, %v2750_v13, -inf  ;;  %v4947_v63 = vld [vmem:[#allocation7 + $0x70] sm:$0xff]   ;;  %v4948_v44 = vld [vmem:[#allocation7 + $0x68] sm:$0xff]  }
0x1154   :  { %v2732_v7 = vpop.f32.mrf.mxu1 }
0x1155   :  { %v2745_v8 = vmul.f32 0.088388346, %v2732_v7  ;;  %v2752_v38 = vsel %vm907_vm12, %v2748_v5, -inf  ;;  %v2751_v11 = vadd.f32 %v5781_v53, %v2747_v4  ;;  %v4949_v4 = vld [vmem:[#allocation7 + $0x60] sm:$0xff]  }
0x1156   :  { %2753 = vmax.xlane.f32.xlu1 %v2752_v38 }
0x1157   :  { %v2749_v2 = vadd.f32 %v5773_v0, %v2745_v8  ;;  %v2761_v12 = vsel %vm907_vm12, %v2751_v11, -inf }
0x1159   :  { %v2755_v6 = vsel %vm907_vm12, %v2749_v2, -inf }
0x115a   :  { %2762 = vmax.xlane.f32.xlu1 %v2761_v12  ;;  %2756 = vmax.xlane.f32.xlu0 %v2755_v6 }
0x115e   :  { %2759 = vmax.xlane.f32.xlu0 %v2758_v16 }
0x11df   :  { %v2754_v14 = vpop.xlane.xlu1 %2753 }
0x11e0   :  { %v2764_v53 = vsub.f32 %v2748_v5, %v2754_v14 }
0x11e2   :  { %v2768_v9 = vmul.f32 1.442695, %v2764_v53 }
0x11e3   :  { %v2763_v58 = vpop.xlane.xlu1 %2762  ;;  %v2757_v15 = vpop.xlane.xlu0 %2756 }
0x11e4   :  { %v2767_v19 = vsub.f32 %v2751_v11, %v2763_v58  ;;  %v2765_v10 = vsub.f32 %v2749_v2, %v2757_v15 }
0x11e6   :  { %v2774_v42 = vmul.f32 1.442695, %v2767_v19  ;;  %v2770_v51 = vmul.f32 1.442695, %v2765_v10  ;;  %v3036_v10 = vrot.slane %v5725_v29, %v1383_v21 }
0x11e7   :  { %v2760_v0 = vpop.xlane.xlu0 %2759 }
0x11e8   :  { %5126 = vpow2.f32 %v2774_v42  ;;  %v2766_v59 = vsub.f32 %v2750_v13, %v2760_v0 }
0x11e9   :  { %5128 = vpow2.f32 %v2770_v51 }
0x11ea   :  { %v2772_v61 = vmul.f32 1.442695, %v2766_v59 }
0x11ec   :  { %5130 = vpow2.f32 %v2772_v61 }
0x11ed   :  { %5132 = vpow2.f32 %v2768_v9 }
0x11f5   :  { %v5127_v46 = vpop.eup %5126 }
0x11f6   :  { %v2785_v22 = vsel %vm907_vm12, %v5127_v46, 0.0  ;;  %v5129_v45 = vpop.eup %5128 }
0x11f7   :  { %2786 = vadd.xlane.f32.xlu1 %v2785_v22  ;;  %v2779_v20 = vsel %vm907_vm12, %v5129_v45, 0.0 }
0x11f9   :  { %v5131_v23 = vpop.eup %5130 }
0x11fa   :  { %v2782_v49 = vsel %vm907_vm12, %v5131_v23, 0.0  ;;  %v5133_v50 = vpop.eup %5132 }
0x11fb   :  { %2780 = vadd.xlane.f32.xlu1 %v2779_v20  ;;  %2783 = vadd.xlane.f32.xlu0 %v2782_v49  ;;  %v2776_v26 = vsel %vm907_vm12, %v5133_v50, 0.0 }
0x11ff   :  { %2777 = vadd.xlane.f32.xlu0 %v2776_v26 }
0x1208   :  { %v4733_v2 = vpop.f32.mrf.mxu1 }
0x120a   :  { %v3014_v12 = vpop.f32.mrf.mxu1 }
0x120c   :  { %2800 = vrot.lane.b32.xlu1 %v5744_v18, %s5321_s19  ;;  %v4734_v13 = vpop.f32.mrf.mxu1 }
0x120e   :  { %v3017_v53 = vpop.f32.mrf.mxu1 }
0x1215   :  { %2802 = vrot.lane.b32.xlu0 %v5740_v41, %s5321_s19 }
0x1280   :  { %v2787_v52 = vpop.xlane.xlu1 %2786 }
0x1284   :  { %v2781_v17 = vpop.xlane.xlu1 %2780  ;;  %v2784_v27 = vpop.xlane.xlu0 %2783 }
0x1285   :  { %5134 = vrcp.f32 %v2784_v27 }
0x1286   :  { %5136 = vrcp.f32 %v2781_v17 }
0x1287   :  { %5138 = vrcp.f32 %v2787_v52 }
0x1288   :  { %v2778_v34 = vpop.xlane.xlu0 %2777  ;;  %v2801_v60 = vpop.permute.xlu1 %2800 }
0x1289   :  { %5140 = vrcp.f32 %v2778_v34 }
0x128c   :  { %v2803_v31 = vpop.permute.xlu0 %2802 }
0x128d   :  { %4703 = vmatprep.subr.bf16.mxu0 %v2803_v31 }
0x128e   :  { %4704 = vmatpush3.bf16.msra.mxu0 %v2803_v31 }
0x128f   :  { %4705 = vmatprep.subr.bf16.mxu0 %v2801_v60 }
0x1292   :  { %4706 = vmatpush3.bf16.msra.mxu0 %v2801_v60  ;;  %v5135_v37 = vpop.eup %5134 }
0x1293   :  { %4711 = vmatprep.subr.bf16.mxu0 %v4946_v36  ;;  %v5137_v18 = vpop.eup %5136  ;;  %v2794_v48 = vmul.f32 %v5135_v37, %v5131_v23  ;;  %v4953_v23 = vld [vmem:[#allocation8 + $0x1e8] ss:$16 sps:$4 sm:$0xff]  }
0x1294   :  { %v5139_v47 = vpop.eup %5138  ;;  %v2793_v3 = vmul.f32 %v5137_v18, %v5129_v45  ;;  %v4952_v45 = vld [vmem:[#allocation8 + $0x1e4] ss:$16 sps:$4 sm:$0xff]  }
0x1295   :  { %v2795_v39 = vmul.f32 %v5139_v47, %v5127_v46 }
0x1296   :  { %v5141_v41 = vpop.eup %5140 }
0x1297   :  { %v2792_v62 = vmul.f32 %v5141_v41, %v5133_v50  ;;  %v2797_v43 = vpack.c.bf16 %v2795_v39, %v2794_v48  ;;  %v4958_v48 = vld [vmem:[#allocation8 + $0x1c4] ss:$16 sps:$4 sm:$0xff]   ;;  %v4959_v39 = vld [vmem:[#allocation8 + $0x1c8] ss:$16 sps:$4 sm:$0xff]  }
0x1299   :  { %v2796_v33 = vpack.c.bf16 %v2793_v3, %v2792_v62  ;;  %v4961_v62 = vld [vmem:[#allocation8 + $0x1cc] ss:$16 sps:$4 sm:$0xff]   ;;  %v4956_v3 = vld [vmem:[#allocation8 + $0x1c0] ss:$16 sps:$4 sm:$0xff]  }
0x129b   :  { %4707 = vmatprep.mubr.msk.bf16.mxu0 %vm907_vm12, %v2796_v33  ;;  %v4964_v33 = vld [vmem:[#allocation8 + $0x1a4] ss:$16 sps:$4 sm:$0xff]  }
0x129c   :  { %4708 = vmatmul.mubr.msk.bf16.vlgmr.msra.gmra.mxu0 %vm907_vm12, %v2797_v43  ;;  %v4967_v43 = vld [vmem:[#allocation8 + $0x1ac] ss:$16 sps:$4 sm:$0xff]  }
0x129d   :  { %4712 = vmatpush3.bf16.msra.mxu0 %v4946_v36 }
0x129e   :  { %4713 = vmatprep.subr.bf16.mxu0 %v4947_v63 }
0x12a1   :  { %4714 = vmatpush3.bf16.msra.mxu0 %v4947_v63  ;;  %v4962_v63 = vld [vmem:[#allocation8 + $0x1a0] ss:$16 sps:$4 sm:$0xff]  }
0x12a2   :  { %4715 = vmatprep.subr.bf16.mxu0 %v4948_v44 }
0x12a5   :  { %4716 = vmatpush3.bf16.msra.mxu0 %v4948_v44  ;;  %v4965_v44 = vld [vmem:[#allocation8 + $0x1a8] ss:$16 sps:$4 sm:$0xff]  }
0x12a6   :  { %4717 = vmatprep.subr.bf16.mxu0 %v4949_v4 }
0x12a9   :  { %4718 = vmatpush3.bf16.msra.mxu0 %v4949_v4  ;;  %v4970_v4 = vld [vmem:[#allocation8 + $0x184] ss:$16 sps:$4 sm:$0xff]  }
0x12aa   :  { %3319 = vmatprep.subr.bf16.mxu0 %v4952_v45 }
0x135c   :  { %v4709_v5 = vpop.f32.mrf.mxu0 }
0x135e   :  { %v2846_v7 = vpop.f32.mrf.mxu0 }
0x1360   :  { %v4710_v24 = vpop.f32.mrf.mxu0 }
0x1361   :  { %v2862_v11 = vpack.c.bf16 %v4710_v24, %v4709_v5  ;;  %v4973_v5 = vld [vmem:[#allocation8 + $0x18c] ss:$16 sps:$4 sm:$0xff]   ;;  %v4971_v24 = vld [vmem:[#allocation8 + $0x188] ss:$16 sps:$4 sm:$0xff]  }
0x1362   :  { %v2849_v8 = vpop.f32.mrf.mxu0 }
0x1363   :  { %v2861_v38 = vpack.c.bf16 %v2849_v8, %v2846_v7  ;;  %v4968_v7 = vld [vmem:[#allocation8 + $0x180] ss:$16 sps:$4 sm:$0xff]  }
0x1364   :  { %v4974_v8 = vld [vmem:[#allocation8 + $0x160] ss:$16 sps:$4 sm:$0xff]  }
0x1365   :  { %4719 = vmatprep.mubr.msk.bf16.mxu0 %vm837_vm6, %v2861_v38  ;;  %v4976_v38 = vld [vmem:[#allocation8 + $0x164] ss:$16 sps:$4 sm:$0xff]  }
0x1366   :  { %4720 = vmatmul.mubr.msk.bf16.vlgmr.msra.gmra.mxu0 %vm837_vm6, %v2862_v11  ;;  %v4977_v11 = vld [vmem:[#allocation8 + $0x168] ss:$16 sps:$4 sm:$0xff]  }
0x1367   :  { %3351 = vmatprep.mubr.bf16.mxu0 %v5329_v1 }
0x1426   :  { %v4721_v6 = vpop.f32.mrf.mxu0 }
0x1427   :  { %v3023_v51 = vadd.f32 %v4733_v2, %v4721_v6  ;;  %v4979_v2 = vld [vmem:[#allocation8 + $0x16c] ss:$16 sps:$4 sm:$0xff]  }
0x1428   :  { %v2935_v16 = vpop.f32.mrf.mxu0  ;;  %v4985_v6 = vld [vmem:[#allocation8 + $0x14c] ss:$16 sps:$4 sm:$0xff]  }
0x1429   :  { %v3015_v14 = vadd.f32 %v3014_v12, %v2935_v16  ;;  %v3031_v46 = vadd.f32 %v3023_v51, %v5695_v54  ;;  %v4982_v12 = vld [vmem:[#allocation8 + $0x144] ss:$16 sps:$4 sm:$0xff]   ;;  %v4983_v16 = vld [vmem:[#allocation8 + $0x148] ss:$16 sps:$4 sm:$0xff]  }
0x142a   :  { %v4722_v58 = vpop.f32.mrf.mxu0  ;;  %v4995_v51 = vld [vmem:[#allocation8 + $0x108] ss:$16 sps:$4 sm:$0xff]  }
0x142b   :  { %v3029_v15 = vadd.f32 %v3015_v14, %v5687_v32  ;;  %v3026_v19 = vadd.f32 %v4734_v13, %v4722_v58  ;;  %v5843_v21 = vadd.f32 %v3036_v10, %v3031_v46  ;;  %v4980_v13 = vld [vmem:[#allocation8 + $0x140] ss:$16 sps:$4 sm:$0xff]   ;;  %v4988_v14 = vld [vmem:[#allocation8 + $0x124] ss:$16 sps:$4 sm:$0xff]   ;;  %v4991_v58 = vld [vmem:[#allocation8 + $0x12c] ss:$16 sps:$4 sm:$0xff]  }
0x142c   :  { %v2938_v42 = vpop.f32.mrf.mxu0 }
0x142d   :  { %v3032_v0 = vadd.f32 %v3026_v19, %v5699_v25  ;;  %v3018_v59 = vadd.f32 %v3017_v53, %v2938_v42  ;;  %v5832_v9 = vadd.f32 %v3036_v10, %v3029_v15  ;;  %v4950_v25 = vld [vmem:[#allocation8 + $0x1e0] ss:$16 sps:$4 sm:$0xff]   ;;  %v4989_v19 = vld [vmem:[#allocation8 + $0x128] ss:$16 sps:$4 sm:$0xff]   ;;  %v4997_v53 = vld [vmem:[#allocation8 + $0x10c] ss:$16 sps:$4 sm:$0xff]  }
0x142e   :  { %3320 = vmatpush1.bf16.msra.mxu0 %v4950_v25  ;;  %v4986_v15 = vld [vmem:[#allocation8 + $0x120] ss:$16 sps:$4 sm:$0xff]  }
0x142f   :  { %v3030_v61 = vadd.f32 %v3018_v59, %v5691_v56  ;;  %3041 = vadd.xlane.f32.xlu1 %v5832_v9  ;;  %v5837_v32 = vadd.f32 %v3036_v10, %v3032_v0  ;;  %v4955_v56 = vld [vmem:[#allocation8 + $0x1ec] ss:$16 sps:$4 sm:$0xff]   ;;  %3321 = vmatprep.subr.bf16.mxu0 %v4958_v48  ;;  %v4992_v42 = vld [vmem:[#allocation8 + $0x100] ss:$16 sps:$4 sm:$0xff]   ;;  %v3096_v48 = vrot.slane %v5725_v29, %v5663_v28 }
0x1430   :  { %3372 = vmatprep.subr.bf16.mxu1 %v4955_v56  ;;  %v4998_v0 = vld [vmem:[#allocation10 + $0x178] sm:$0xff]  }
0x1431   :  { %v5839_v22 = vadd.f32 %v3036_v10, %v3030_v61  ;;  %3373 = vmatpush1.bf16.msra.mxu1 %v4953_v23  ;;  %v4994_v10 = vld [vmem:[#allocation8 + $0x104] ss:$16 sps:$4 sm:$0xff]   ;;  %v4999_v59 = vld [vmem:[#allocation10 + $0x1f8] sm:$0xff]  }
0x1432   :  { %3374 = vmatprep.subr.bf16.mxu1 %v4961_v62  ;;  %3322 = vmatpush1.bf16.msra.mxu0 %v4956_v3 }
0x1433   :  { %3047 = vadd.xlane.f32.xlu1 %v5837_v32  ;;  %3043 = vadd.xlane.f32.xlu0 %v5839_v22 }
0x1434   :  { %3323 = vmatprep.subr.bf16.mxu0 %v4964_v33 }
0x1435   :  { %3375 = vmatpush1.bf16.msra.mxu1 %v4959_v39 }
0x1436   :  { %3376 = vmatprep.subr.bf16.mxu1 %v4967_v43  ;;  %3324 = vmatpush1.bf16.msra.mxu0 %v4962_v63 }
0x1437   :  { %3045 = vadd.xlane.f32.xlu0 %v5843_v21  ;;  %3325 = vmatprep.subr.bf16.mxu0 %v4970_v4 }
0x1439   :  { %3377 = vmatpush1.bf16.msra.mxu1 %v4965_v44 }
0x143a   :  { %3378 = vmatprep.subr.bf16.mxu1 %v4973_v5  ;;  %3326 = vmatpush1.bf16.msra.mxu0 %v4968_v7  ;;  %v5000_v5 = vld [vmem:[#allocation10 + $0x138] sm:$0xff]  }
0x143b   :  { %3327 = vmatprep.subr.bf16.mxu0 %v4976_v38  ;;  %v5001_v7 = vld [vmem:[#allocation10 + $0x1b8] sm:$0xff]  }
0x143d   :  { %3379 = vmatpush1.bf16.msra.mxu1 %v4971_v24 }
0x143e   :  { %3380 = vmatprep.subr.bf16.mxu1 %v4979_v2  ;;  %3328 = vmatpush1.bf16.msra.mxu0 %v4974_v8  ;;  %v5002_v8 = vld [vmem:[#allocation10 + $0x170] sm:$0xff]   ;;  %v5007_v2 = vld [vmem:[#allocation10 + $0x1e8] sm:$0xff]  }
0x143f   :  { %3329 = vmatprep.subr.bf16.mxu0 %v4982_v12 }
0x1441   :  { %3381 = vmatpush1.bf16.msra.mxu1 %v4977_v11  ;;  %v5005_v11 = vld [vmem:[#allocation10 + $0x1b0] sm:$0xff]  }
0x1442   :  { %3382 = vmatprep.subr.bf16.mxu1 %v4985_v6  ;;  %3330 = vmatpush1.bf16.msra.mxu0 %v4980_v13  ;;  %v5008_v6 = vld [vmem:[#allocation10 + $0x128] sm:$0xff]  }
0x1443   :  { %3331 = vmatprep.subr.bf16.mxu0 %v4988_v14  ;;  %v5009_v13 = vld [vmem:[#allocation10 + $0x1a8] sm:$0xff]   ;;  %v5011_v14 = vld [vmem:[#allocation10 + $0x1e0] sm:$0xff]  }
0x1445   :  { %3383 = vmatpush1.bf16.msra.mxu1 %v4983_v16  ;;  %v5010_v16 = vld [vmem:[#allocation10 + $0x160] sm:$0xff]  }
0x1446   :  { %3384 = vmatprep.subr.bf16.mxu1 %v4991_v58  ;;  %3332 = vmatpush1.bf16.msra.mxu0 %v4986_v15  ;;  %v5012_v58 = vld [vmem:[#allocation10 + $0x120] sm:$0xff]  }
0x1447   :  { %3333 = vmatprep.subr.bf16.mxu0 %v4994_v10  ;;  %v5013_v15 = vld [vmem:[#allocation10 + $0x1a0] sm:$0xff]   ;;  %v5015_v10 = vld [vmem:[#allocation10 + $0x1d8] sm:$0xff]  }
0x1449   :  { %3385 = vmatpush1.bf16.msra.mxu1 %v4989_v19  ;;  %v5014_v19 = vld [vmem:[#allocation10 + $0x158] sm:$0xff]  }
0x144a   :  { %3386 = vmatprep.subr.bf16.mxu1 %v4997_v53  ;;  %3334 = vmatpush1.bf16.msra.mxu0 %v4992_v42  ;;  %v5016_v53 = vld [vmem:[#allocation10 + $0x118] sm:$0xff]  }
0x144b   :  { %4507 = vmatprep.subr.bf16.mxu0 %v4998_v0  ;;  %v5017_v42 = vld [vmem:[#allocation10 + $0x198] sm:$0xff]   ;;  %v5019_v0 = vld [vmem:[#allocation10 + $0x1d0] sm:$0xff]  }
0x144d   :  { %3387 = vmatpush1.bf16.msra.mxu1 %v4995_v51  ;;  %v5018_v51 = vld [vmem:[#allocation10 + $0x150] sm:$0xff]  }
0x144e   :  { %4535 = vmatprep.subr.bf16.mxu1 %v4999_v59  ;;  %v5020_v59 = vld [vmem:[#allocation10 + $0x110] sm:$0xff]  }
0x14b8   :  { %v3042_v54 = vpop.xlane.xlu1 %3041 }
0x14b9   :  { %v3049_v20 = vmul.f32 0.0078125, %v3042_v54 }
0x14bb   :  { %v5847_v49 = vsub.f32 %v5832_v9, %v3049_v20 }
0x14bc   :  { %v3048_v50 = vpop.xlane.xlu1 %3047  ;;  %v3044_v26 = vpop.xlane.xlu0 %3043 }
0x14bd   :  { %v3052_v52 = vmul.f32 0.0078125, %v3048_v50  ;;  %v3050_v17 = vmul.f32 0.0078125, %v3044_v26  ;;  %v3057_v27 = vmul.f32 %v5847_v49, %v5847_v49 }
0x14bf   :  { %v5852_v34 = vsub.f32 %v5839_v22, %v3050_v17  ;;  %3061 = vadd.xlane.f32.xlu0 %v3057_v27  ;;  %v5855_v60 = vsub.f32 %v5837_v32, %v3052_v52 }
0x14c0   :  { %v3046_v31 = vpop.xlane.xlu0 %3045 }
0x14c1   :  { %v3051_v36 = vmul.f32 0.0078125, %v3046_v31  ;;  %v3058_v37 = vmul.f32 %v5852_v34, %v5852_v34  ;;  %v3060_v47 = vmul.f32 %v5855_v60, %v5855_v60 }
0x14c3   :  { %v5860_v18 = vsub.f32 %v5843_v21, %v3051_v36  ;;  %3063 = vadd.xlane.f32.xlu1 %v3058_v37  ;;  %v3088_v36 = vrot.slane %v5725_v29, %v5657_v35 }
0x14c5   :  { %v3059_v41 = vmul.f32 %v5860_v18, %v5860_v18 }
0x14c7   :  { %3067 = vadd.xlane.f32.xlu1 %v3060_v47  ;;  %3065 = vadd.xlane.f32.xlu0 %v3059_v41 }
0x1548   :  { %v3062_v61 = vpop.xlane.xlu0 %3061 }
0x1549   :  { %v3069_v46 = vmul.f32 0.0078125, %v3062_v61  ;;  %v5021_v61 = vld [vmem:[#allocation10 + $0x190] sm:$0xff]  }
0x154b   :  { %v3073_v25 = vadd.f32 1e-05, %v3069_v46  ;;  %v5022_v46 = vld [vmem:[#allocation10 + $0x148] sm:$0xff]  }
0x154c   :  { %v3064_v45 = vpop.xlane.xlu1 %3063 }
0x154d   :  { %5142 = vrsqrt.f32 %v3073_v25  ;;  %v3070_v23 = vmul.f32 0.0078125, %v3064_v45  ;;  %v5023_v25 = vld [vmem:[#allocation10 + $0x1c8] sm:$0xff]  }
0x154e   :  { %v5024_v45 = vld [vmem:[#allocation10 + $0x108] sm:$0xff]  }
0x154f   :  { %v3074_v56 = vadd.f32 1e-05, %v3070_v23  ;;  %v5025_v23 = vld [vmem:[#allocation10 + $0x188] sm:$0xff]  }
0x1550   :  { %v3068_v54 = vpop.xlane.xlu1 %3067  ;;  %v3066_v20 = vpop.xlane.xlu0 %3065 }
0x1551   :  { %5144 = vrsqrt.f32 %v3074_v56  ;;  %v3072_v50 = vmul.f32 0.0078125, %v3068_v54  ;;  %v3071_v26 = vmul.f32 0.0078125, %v3066_v20  ;;  %v5026_v56 = vld [vmem:[#allocation10 + $0x140] sm:$0xff]  }
0x1552   :  { %v5027_v54 = vld [vmem:[#allocation10 + $0x1c0] sm:$0xff]  }
0x1553   :  { %v3076_v52 = vadd.f32 1e-05, %v3072_v50  ;;  %v3075_v17 = vadd.f32 1e-05, %v3071_v26  ;;  %v5028_v20 = vld [vmem:[#allocation10 + $0x100] sm:$0xff]  }
0x1554   :  { %v5029_v50 = vld [vmem:[#allocation10 + $0x180] sm:$0xff]  }
0x1555   :  { %5146 = vrsqrt.f32 %v3076_v52  ;;  %v4254_v26 = vld [vmem:[%s5935_s9 + $0x4] sm:$0xf] }
0x1556   :  { %5148 = vrsqrt.f32 %v3075_v17 }
0x155a   :  { %v5143_v27 = vpop.eup %5142 }
0x155b   :  { %v3081_v31 = vmul.f32 %v5143_v27, %v5847_v49  ;;  %v3146_v27 = vrot.slane %v4254_v26, %v5499_v30 }
0x155d   :  { %v3089_v41 = vmul.f32 %v3088_v36, %v3081_v31  ;;  %v3154_v31 = vrot.slane %v4254_v26, %v5663_v28 }
0x155e   :  { %v5145_v37 = vpop.eup %5144 }
0x155f   :  { %v3082_v47 = vmul.f32 %v5145_v37, %v5852_v34  ;;  %v3097_v33 = vadd.f32 %v3096_v48, %v3089_v41  ;;  %v5003_v34 = vld [vmem:[#allocation10 + $0x1f0] sm:$0xff]   ;;  %v3150_v37 = vrot.slane %v4254_v26, %v5657_v35 }
0x1561   :  { %v3090_v62 = vmul.f32 %v3088_v36, %v3082_v47 }
0x1562   :  { %v5147_v3 = vpop.eup %5146 }
0x1563   :  { %v5149_v39 = vpop.eup %5148  ;;  %v3098_v43 = vadd.f32 %v3096_v48, %v3090_v62  ;;  %v3084_v63 = vmul.f32 %v5147_v3, %v5855_v60  ;;  %v5004_v60 = vld [vmem:[#allocation10 + $0x130] sm:$0xff]  }
0x1564   :  { %v3083_v44 = vmul.f32 %v5149_v39, %v5860_v18  ;;  %v5006_v18 = vld [vmem:[#allocation10 + $0x168] sm:$0xff]  }
0x1565   :  { %v3101_v49 = vpack.c.bf16 %v3098_v43, %v3097_v33  ;;  %v3092_v4 = vmul.f32 %v3088_v36, %v3084_v63 }
0x1566   :  { %v3091_v24 = vmul.f32 %v3088_v36, %v3083_v44  ;;  %v3142_v36 = vrot.slane %v4254_v26, %v5488_v57 }
0x1567   :  { %3352 = vmatmul.mubr.bf16.vlgmr.msra.gmra.mxu0 %v3101_v49  ;;  %3405 = vmatmul.mubr.bf16.vlgmr.msra.gmra.mxu1 %v3101_v49  ;;  %v3100_v38 = vadd.f32 %v3096_v48, %v3092_v4 }
0x1568   :  { %3361 = vmatprep.mubr.bf16.mxu0 %v5329_v1  ;;  %3414 = vmatprep.mubr.bf16.mxu1 %v5329_v1  ;;  %v3099_v29 = vadd.f32 %v3096_v48, %v3091_v24 }
0x1569   :  { %4508 = vmatpush3.bf16.msra.mxu0 %v5000_v5  ;;  %4536 = vmatpush3.bf16.msra.mxu1 %v5001_v7 }
0x156a   :  { %4509 = vmatprep.subr.bf16.mxu0 %v5002_v8  ;;  %4537 = vmatprep.subr.bf16.mxu1 %v5003_v34  ;;  %v3102_v12 = vpack.c.bf16 %v3100_v38, %v3099_v29 }
0x156d   :  { %4510 = vmatpush3.bf16.msra.mxu0 %v5004_v60  ;;  %4538 = vmatpush3.bf16.msra.mxu1 %v5005_v11 }
0x156e   :  { %4511 = vmatprep.subr.bf16.mxu0 %v5006_v18  ;;  %4539 = vmatprep.subr.bf16.mxu1 %v5007_v2 }
0x156f   :  { %3362 = vmatmul.mubr.bf16.gmra.mxu0 %v3102_v12  ;;  %3415 = vmatmul.mubr.bf16.gmra.mxu1 %v3102_v12 }
0x1571   :  { %4512 = vmatpush3.bf16.msra.mxu0 %v5008_v6  ;;  %4540 = vmatpush3.bf16.msra.mxu1 %v5009_v13 }
0x1572   :  { %4513 = vmatprep.subr.bf16.mxu0 %v5010_v16  ;;  %4541 = vmatprep.subr.bf16.mxu1 %v5011_v14 }
0x1575   :  { %4514 = vmatpush3.bf16.msra.mxu0 %v5012_v58  ;;  %4542 = vmatpush3.bf16.msra.mxu1 %v5013_v15 }
0x1576   :  { %4515 = vmatprep.subr.bf16.mxu0 %v5014_v19  ;;  %4543 = vmatprep.subr.bf16.mxu1 %v5015_v10 }
0x1579   :  { %4516 = vmatpush3.bf16.msra.mxu0 %v5016_v53  ;;  %4544 = vmatpush3.bf16.msra.mxu1 %v5017_v42 }
0x157a   :  { %4517 = vmatprep.subr.bf16.mxu0 %v5018_v51  ;;  %4545 = vmatprep.subr.bf16.mxu1 %v5019_v0 }
0x157d   :  { %4518 = vmatpush3.bf16.msra.mxu0 %v5020_v59  ;;  %4546 = vmatpush3.bf16.msra.mxu1 %v5021_v61 }
0x157e   :  { %4519 = vmatprep.subr.bf16.mxu0 %v5022_v46  ;;  %4547 = vmatprep.subr.bf16.mxu1 %v5023_v25 }
0x1581   :  { %4520 = vmatpush3.bf16.msra.mxu0 %v5024_v45  ;;  %4548 = vmatpush3.bf16.msra.mxu1 %v5025_v23 }
0x1582   :  { %4521 = vmatprep.subr.bf16.mxu0 %v5026_v56  ;;  %4549 = vmatprep.subr.bf16.mxu1 %v5027_v54 }
0x1585   :  { %4522 = vmatpush3.bf16.msra.mxu0 %v5028_v20  ;;  %4550 = vmatpush3.bf16.msra.mxu1 %v5029_v50 }
0x1627   :  { %v3353_v52 = vpop.f32.mrf.mxu0  ;;  %v3406_v17 = vpop.f32.mrf.mxu1 }
0x1628   :  { %v3354_v63 = vadd.f32 %v3353_v52, %v3142_v36  ;;  %v3407_v44 = vadd.f32 %v3406_v17, %v3150_v37 }
0x1629   :  { %v3355_v47 = vpop.f32.mrf.mxu0  ;;  %v3408_v41 = vpop.f32.mrf.mxu1 }
0x162a   :  { %v3356_v3 = vadd.f32 %v3355_v47, %v3146_v27  ;;  %v3409_v39 = vadd.f32 %v3408_v41, %v3154_v31  ;;  %v3425_v11 = vmax.f32 %v3354_v63, 0.0  ;;  %v3427_v18 = vmax.f32 %v3407_v44, 0.0 }
0x162b   :  { %v3357_v48 = vpop.f32.mrf.mxu0  ;;  %v3410_v62 = vpop.f32.mrf.mxu1 }
0x162c   :  { %v3358_v33 = vadd.f32 %v3357_v48, %v3142_v36  ;;  %v3411_v43 = vadd.f32 %v3410_v62, %v3150_v37  ;;  %v3426_v29 = vmax.f32 %v3356_v3, 0.0  ;;  %v3428_v35 = vmax.f32 %v3409_v39, 0.0 }
0x162d   :  { %v3359_v49 = vpop.f32.mrf.mxu0  ;;  %v3412_v4 = vpop.f32.mrf.mxu1 }
0x162e   :  { %v3360_v5 = vadd.f32 %v3359_v49, %v3146_v27  ;;  %v3413_v7 = vadd.f32 %v3412_v4, %v3154_v31  ;;  %v3429_v24 = vmax.f32 %v3358_v33, 0.0  ;;  %v3431_v28 = vmax.f32 %v3411_v43, 0.0 }
0x162f   :  { %v3363_v8 = vpop.f32.mrf.mxu0  ;;  %v3416_v34 = vpop.f32.mrf.mxu1 }
0x1630   :  { %v3430_v38 = vmax.f32 %v3360_v5, 0.0  ;;  %v3432_v60 = vmax.f32 %v3413_v7, 0.0  ;;  %v3441_v16 = vpack.c.bf16 %v3429_v24, %v3425_v11  ;;  %v3443_v14 = vpack.c.bf16 %v3431_v28, %v3427_v18 }
0x1631   :  { %v3365_v2 = vpop.f32.mrf.mxu0  ;;  %v3418_v12 = vpop.f32.mrf.mxu1  ;;  %v3364_v51 = vadd.f32 %v3363_v8, %v3142_v36  ;;  %v3417_v0 = vadd.f32 %v3416_v34, %v3150_v37 }
0x1632   :  { %v3442_v6 = vpack.c.bf16 %v3430_v38, %v3426_v29  ;;  %v3444_v13 = vpack.c.bf16 %v3432_v60, %v3428_v35  ;;  %v3366_v58 = vadd.f32 %v3365_v2, %v3146_v27  ;;  %v3419_v10 = vadd.f32 %v3418_v12, %v3154_v31 }
0x1633   :  { %v3367_v15 = vpop.f32.mrf.mxu0  ;;  %v3420_v19 = vpop.f32.mrf.mxu1  ;;  %v3433_v26 = vmax.f32 %v3364_v51, 0.0  ;;  %v3435_v52 = vmax.f32 %v3417_v0, 0.0 }
0x1634   :  { %v3368_v53 = vadd.f32 %v3367_v15, %v3142_v36  ;;  %v3421_v42 = vadd.f32 %v3420_v19, %v3150_v37  ;;  %3742 = vmatprep.mubr.bf16.mxu0 %v3442_v6  ;;  %3791 = vmatprep.mubr.bf16.mxu1 %v3444_v13  ;;  %v3434_v56 = vmax.f32 %v3366_v58, 0.0  ;;  %v3436_v54 = vmax.f32 %v3419_v10, 0.0  ;;  %v5163_v36 = vld [vmem:[%s5934_s8 + $0x8] sm:$0x3f] }
0x1635   :  { %v3369_v59 = vpop.f32.mrf.mxu0  ;;  %v3422_v61 = vpop.f32.mrf.mxu1  ;;  %3743 = vmatmul.mubr.bf16.vlgmr.msra.gmra.mxu0 %v3441_v16  ;;  %3792 = vmatmul.mubr.bf16.vlgmr.msra.gmra.mxu1 %v3443_v14  ;;  %v3517_v37 = vrot.slane %v5163_v36, %v1861_v40  ;;  %v5042_v36 = vld [vmem:[#allocation11 + $0x30] ss:$8 sps:$4 sm:$0xff]  }
0x1636   :  { %v3370_v46 = vadd.f32 %v3369_v59, %v3146_v27  ;;  %v3423_v25 = vadd.f32 %v3422_v61, %v3154_v31  ;;  %v3437_v45 = vmax.f32 %v3368_v53, 0.0  ;;  %v3439_v23 = vmax.f32 %v3421_v42, 0.0  ;;  %v5030_v53 = vld [vmem:[#allocation11 + $0x70] ss:$8 sps:$4 sm:$0xff]   ;;  %v5032_v42 = vld [vmem:[#allocation11 + $0x74] ss:$8 sps:$4 sm:$0xff]  }
0x1637   :  { %3984 = vmatprep.subr.bf16.mxu0 %v5032_v42 }
0x1638   :  { %v3438_v20 = vmax.f32 %v3370_v46, 0.0  ;;  %v3440_v50 = vmax.f32 %v3423_v25, 0.0  ;;  %v3445_v41 = vpack.c.bf16 %v3437_v45, %v3433_v26  ;;  %v3447_v48 = vpack.c.bf16 %v3439_v23, %v3435_v52  ;;  %3985 = vmatpush1.bf16.msra.mxu0 %v5030_v53  ;;  %v5035_v52 = vld [vmem:[#allocation11 + $0x64] ss:$8 sps:$4 sm:$0xff]  }
0x1639   :  { %3986 = vmatprep.subr.bf16.mxu0 %v5035_v52 }
0x163a   :  { %v3446_v17 = vpack.c.bf16 %v3438_v20, %v3434_v56  ;;  %v3448_v47 = vpack.c.bf16 %v3440_v50, %v3436_v54 }
0x163c   :  { %3750 = vmatprep.mubr.bf16.mxu0 %v3446_v17  ;;  %3799 = vmatprep.mubr.bf16.mxu1 %v3448_v47  ;;  %v5033_v17 = vld [vmem:[#allocation11 + $0x60] ss:$8 sps:$4 sm:$0xff]   ;;  %v5038_v47 = vld [vmem:[#allocation11 + $0x54] ss:$8 sps:$4 sm:$0xff]  }
0x163d   :  { %3751 = vmatmul.mubr.bf16.gmra.mxu0 %v3445_v41  ;;  %3800 = vmatmul.mubr.bf16.gmra.mxu1 %v3447_v48  ;;  %v5036_v41 = vld [vmem:[#allocation11 + $0x50] ss:$8 sps:$4 sm:$0xff]   ;;  %v5041_v48 = vld [vmem:[#allocation11 + $0x44] ss:$8 sps:$4 sm:$0xff]  }
0x163e   :  { %4016 = vmatprep.mubr.bf16.mxu0 %v5329_v1  ;;  %3987 = vmatpush1.bf16.msra.mxu0 %v5033_v17 }
0x163f   :  { %3988 = vmatprep.subr.bf16.mxu0 %v5038_v47 }
0x1642   :  { %3989 = vmatpush1.bf16.msra.mxu0 %v5036_v41 }
0x1643   :  { %3990 = vmatprep.subr.bf16.mxu0 %v5041_v48 }
0x16f5   :  { %v4523_v27 = vpop.f32.mrf.mxu0  ;;  %v4551_v31 = vpop.f32.mrf.mxu1 }
0x16f7   :  { %v4524_v62 = vpop.f32.mrf.mxu0  ;;  %v4552_v3 = vpop.f32.mrf.mxu1 }
0x16f8   :  { %v4525_v39 = vadd.f32 %v4524_v62, %v4523_v27  ;;  %v4553_v44 = vadd.f32 %v4552_v3, %v4551_v31  ;;  %v5039_v27 = vld [vmem:[#allocation11 + $0x40] ss:$8 sps:$4 sm:$0xff]   ;;  %v5044_v31 = vld [vmem:[#allocation11 + $0x34] ss:$8 sps:$4 sm:$0xff]  }
0x16f9   :  { %v4526_v33 = vpop.f32.mrf.mxu0  ;;  %v4554_v43 = vpop.f32.mrf.mxu1  ;;  %3991 = vmatpush1.bf16.msra.mxu0 %v5039_v27  ;;  %v5045_v62 = vld [vmem:[#allocation11 + $0x20] ss:$8 sps:$4 sm:$0xff]   ;;  %v5050_v3 = vld [vmem:[#allocation11 + $0x14] ss:$8 sps:$4 sm:$0xff]  }
0x16fa   :  { %v3745_v63 = vadd.f32 %v4525_v39, %v3517_v37  ;;  %3992 = vmatprep.subr.bf16.mxu0 %v5044_v31  ;;  %v5048_v39 = vld [vmem:[#allocation11 + $0x10] ss:$8 sps:$4 sm:$0xff]  }
0x16fb   :  { %v4527_v49 = vpop.f32.mrf.mxu0  ;;  %v4555_v4 = vpop.f32.mrf.mxu1 }
0x16fc   :  { %v3794_v5 = vadd.f32 %v4553_v44, %v3745_v63  ;;  %v4528_v7 = vadd.f32 %v4527_v49, %v4526_v33  ;;  %v4556_v34 = vadd.f32 %v4555_v4, %v4554_v43  ;;  %v5053_v33 = vld [vmem:[#allocation11 + $0x4] ss:$8 sps:$4 sm:$0xff]   ;;  %v5051_v43 = vld [vmem:[#allocation11] ss:$8 sps:$4 sm:$0xff]  }
0x16fd   :  { %v4529_v24 = vpop.f32.mrf.mxu0  ;;  %v4557_v28 = vpop.f32.mrf.mxu1  ;;  %3993 = vmatpush1.bf16.msra.mxu0 %v5042_v36 }
0x16fe   :  { %v3748_v8 = vadd.f32 %v4528_v7, %v3517_v37  ;;  %v3808_v29 = vadd.f32 %v3794_v5, %v5832_v9 }
0x16ff   :  { %v4530_v35 = vpop.f32.mrf.mxu0  ;;  %v4558_v55 = vpop.f32.mrf.mxu1 }
0x1700   :  { %v3797_v40 = vadd.f32 %v4556_v34, %v3748_v8  ;;  %v4531_v38 = vadd.f32 %v4530_v35, %v4529_v24  ;;  %3814 = vadd.xlane.f32.xlu0 %v3808_v29  ;;  %v4559_v2 = vadd.f32 %v4558_v55, %v4557_v28 }
0x1701   :  { %v4532_v60 = vpop.f32.mrf.mxu0  ;;  %v4560_v11 = vpop.f32.mrf.mxu1 }
0x1702   :  { %v3753_v18 = vadd.f32 %v4531_v38, %v3517_v37  ;;  %v3809_v12 = vadd.f32 %v3797_v40, %v5839_v22  ;;  %v4319_v38 = vld [vmem:[%s5936_s10] ss:$0 sm:$0xff] }
0x1703   :  { %v4533_v6 = vpop.f32.mrf.mxu0  ;;  %v4561_v13 = vpop.f32.mrf.mxu1 }
0x1704   :  { %v3802_v16 = vadd.f32 %v4559_v2, %v3753_v18  ;;  %v4534_v14 = vadd.f32 %v4533_v6, %v4532_v60  ;;  %3816 = vadd.xlane.f32.xlu1 %v3809_v12  ;;  %v4562_v15 = vadd.f32 %v4561_v13, %v4560_v11  ;;  %v4320_v2 = vld [vmem:[%s5936_s10 + $0x1] ss:$0 sm:$0xff] }
0x1706   :  { %v3756_v58 = vadd.f32 %v4534_v14, %v3517_v37  ;;  %v3810_v9 = vadd.f32 %v3802_v16, %v5843_v21  ;;  %v5047_v37 = vld [vmem:[#allocation11 + $0x24] ss:$8 sps:$4 sm:$0xff]  }
0x1707   :  { %3994 = vmatprep.subr.bf16.mxu0 %v5047_v37 }
0x1708   :  { %v3805_v19 = vadd.f32 %v4562_v15, %v3756_v58  ;;  %3818 = vadd.xlane.f32.xlu0 %v3810_v9  ;;  %3995 = vmatpush1.bf16.msra.mxu0 %v5045_v62 }
0x1709   :  { %3996 = vmatprep.subr.bf16.mxu0 %v5050_v3 }
0x170a   :  { %v3811_v10 = vadd.f32 %v3805_v19, %v5837_v32 }
0x170c   :  { %3820 = vadd.xlane.f32.xlu1 %v3811_v10  ;;  %3997 = vmatpush1.bf16.msra.mxu0 %v5048_v39 }
0x170d   :  { %3998 = vmatprep.subr.bf16.mxu0 %v5053_v33 }
0x1710   :  { %3999 = vmatpush1.bf16.msra.mxu0 %v5051_v43 }
0x1789   :  { %v3815_v51 = vpop.xlane.xlu0 %3814 }
0x178a   :  { %v3822_v22 = vmul.f32 0.0078125, %v3815_v51 }
0x178c   :  { %v5893_v0 = vsub.f32 %v3808_v29, %v3822_v22  ;;  %v3892_v22 = vld [vmem:[%s5937_s11] sm:$0x3]  ;;  %s5331_s11 = smov [#allocation13]  }
0x178d   :  { %v3817_v59 = vpop.xlane.xlu1 %3816  ;;  %s4050_s15 = sshll.u32 %s5331_s11, 4  ;;  %s4051_s15 = int_to_ptr.vmem [resolvable:$true] %s4050_s15 }
0x178e   :  { %v3823_v61 = vmul.f32 0.0078125, %v3817_v59  ;;  %v3830_v46 = vmul.f32 %v5893_v0, %v5893_v0  ;;  %v3901_v59 = vrot.slane %v3892_v22, %v5499_v30  ;;  %s5284_s16 = scalar_lea.vmem %s4051_s15, 1024  ;;  %p5289_p3 = scmp.lt.s32.totalorder %s4051_s15, %s4051_s15 }
0x178f   :  { %p5285_p2 = scmp.ne.s32.totalorder %s4051_s15, %s5284_s16  ;;  %p5290_p4 = scmp.lt.s32.totalorder %s5284_s16, %s5284_s16 }
0x1790   :  { %v3827_v25 = vsub.f32 %v3809_v12, %v3823_v61  ;;  %3834 = vadd.xlane.f32.xlu0 %v3830_v46 }
0x1791   :  { %v3819_v21 = vpop.xlane.xlu0 %3818  ;;  %p5291_p5 = por %p5290_p4, %p5289_p3 }
0x1792   :  { %v3824_v45 = vmul.f32 0.0078125, %v3819_v21  ;;  %v3831_v23 = vmul.f32 %v3827_v25, %v3827_v25 }
0x1793   :  { %p5292_p6 = pnand %p5291_p5, %p5285_p2 }
0x1794   :  { %v5897_v32 = vsub.f32 %v3810_v9, %v3824_v45  ;;  %3836 = vadd.xlane.f32.xlu1 %v3831_v23 }
0x1795   :  { %v3821_v56 = vpop.xlane.xlu1 %3820 }
0x1796   :  { %v3825_v54 = vmul.f32 0.0078125, %v3821_v56  ;;  %v3832_v20 = vmul.f32 %v5897_v32, %v5897_v32 }
0x1798   :  { %v5901_v50 = vsub.f32 %v3811_v10, %v3825_v54  ;;  %3838 = vadd.xlane.f32.xlu0 %v3832_v20 }
0x179a   :  { %v3833_v26 = vmul.f32 %v5901_v50, %v5901_v50 }
0x179c   :  { %3840 = vadd.xlane.f32.xlu1 %v3833_v26 }
0x1819   :  { %v3835_v63 = vpop.xlane.xlu0 %3834 }
0x181a   :  { %v3842_v44 = vmul.f32 0.0078125, %v3835_v63 }
0x181c   :  { %v3846_v49 = vadd.f32 1e-05, %v3842_v44 }
0x181d   :  { %v3837_v4 = vpop.xlane.xlu1 %3836 }
0x181e   :  { %5150 = vrsqrt.f32 %v3846_v49  ;;  %v3843_v5 = vmul.f32 0.0078125, %v3837_v4 }
0x1820   :  { %v3847_v7 = vadd.f32 1e-05, %v3843_v5 }
0x1821   :  { %v3839_v24 = vpop.xlane.xlu0 %3838 }
0x1822   :  { %5152 = vrsqrt.f32 %v3847_v7  ;;  %v3844_v28 = vmul.f32 0.0078125, %v3839_v24 }
0x1824   :  { %v3848_v8 = vadd.f32 1e-05, %v3844_v28 }
0x1825   :  { %v3841_v34 = vpop.xlane.xlu1 %3840 }
0x1826   :  { %5154 = vrsqrt.f32 %v3848_v8  ;;  %v3845_v29 = vmul.f32 0.0078125, %v3841_v34 }
0x1828   :  { %v3849_v35 = vadd.f32 1e-05, %v3845_v29 }
0x182a   :  { %5156 = vrsqrt.f32 %v3849_v35 }
0x182b   :  { %v5151_v55 = vpop.eup %5150 }
0x182c   :  { %v3854_v40 = vmul.f32 %v5151_v55, %v5893_v0  ;;  %v3897_v0 = vrot.slane %v3892_v22, %v5488_v57 }
0x182e   :  { %v3862_v18 = vmul.f32 %v4319_v38, %v3854_v40 }
0x182f   :  { %v5153_v60 = vpop.eup %5152 }
0x1830   :  { %v3855_v11 = vmul.f32 %v5153_v60, %v3827_v25  ;;  %v3870_v13 = vadd.f32 %v4320_v2, %v3862_v18 }
0x1832   :  { %v3863_v12 = vmul.f32 %v4319_v38, %v3855_v11 }
0x1833   :  { %v5155_v6 = vpop.eup %5154 }
0x1834   :  { %v3871_v16 = vadd.f32 %v4320_v2, %v3863_v12  ;;  %v3856_v14 = vmul.f32 %v5155_v6, %v5897_v32 }
0x1836   :  { %v3874_v58 = vpack.c.bf16 %v3871_v16, %v3870_v13  ;;  %v3864_v19 = vmul.f32 %v4319_v38, %v3856_v14 }
0x1837   :  { %v5157_v15 = vpop.eup %5156 }
0x1838   :  { %4017 = vmatmul.mubr.bf16.vlgmr.msra.gmra.mxu0 %v3874_v58  ;;  %v3857_v9 = vmul.f32 %v5157_v15, %v5901_v50  ;;  %v3872_v53 = vadd.f32 %v4320_v2, %v3864_v19 }
0x1839   :  { %4026 = vmatprep.mubr.bf16.mxu0 %v5329_v1 }
0x183a   :  { %v3865_v10 = vmul.f32 %v4319_v38, %v3857_v9 }
0x183c   :  { %v3873_v42 = vadd.f32 %v4320_v2, %v3865_v10 }
0x183e   :  { %v3875_v51 = vpack.c.bf16 %v3873_v42, %v3872_v53 }
0x1840   :  { %4027 = vmatmul.mubr.bf16.gmra.mxu0 %v3875_v51 }
0x18f8   :  { %v4018_v61 = vpop.f32.mrf.mxu0 }
0x18f9   :  { %v4019_v46 = vadd.f32 %v4018_v61, %v3897_v0 }
0x18fa   :  { %v4020_v25 = vpop.f32.mrf.mxu0 }
0x18fb   :  { %4037 = vst [vmem:[#allocation13] sm:$0xff] %v4019_v46  ;;  %v4021_v21 = vadd.f32 %v4020_v25, %v3901_v59 }
0x18fc   :  { %v4022_v45 = vpop.f32.mrf.mxu0 }
0x18fd   :  { %4038 = vst [vmem:[#allocation13 + $0x8] sm:$0xff] %v4021_v21  ;;  %v4023_v1 = vadd.f32 %v4022_v45, %v3897_v0 }
0x18fe   :  { %v4024_v23 = vpop.f32.mrf.mxu0 }
0x18ff   :  { %4039 = vst [vmem:[#allocation13 + $0x10] sm:$0xff] %v4023_v1  ;;  %v4025_v32 = vadd.f32 %v4024_v23, %v3901_v59 }
0x1900   :  { %v4028_v56 = vpop.f32.mrf.mxu0 }
0x1901   :  { %4040 = vst [vmem:[#allocation13 + $0x18] sm:$0xff] %v4025_v32  ;;  %v4029_v54 = vadd.f32 %v4028_v56, %v3897_v0 }
0x1902   :  { %v4030_v20 = vpop.f32.mrf.mxu0 }
0x1903   :  { %4041 = vst [vmem:[#allocation13 + $0x20] sm:$0xff] %v4029_v54  ;;  %v4031_v50 = vadd.f32 %v4030_v20, %v3901_v59 }
0x1904   :  { %v4032_v57 = vpop.f32.mrf.mxu0 }
0x1905   :  { %4042 = vst [vmem:[#allocation13 + $0x28] sm:$0xff] %v4031_v50  ;;  %v4033_v30 = vadd.f32 %v4032_v57, %v3897_v0 }
0x1906   :  { %v4034_v26 = vpop.f32.mrf.mxu0 }
0x1907   :  { %4043 = vst [vmem:[#allocation13 + $0x30] sm:$0xff] %v4033_v30  ;;  %v4035_v52 = vadd.f32 %v4034_v26, %v3901_v59 }
0x1909   :  { %4044 = vst [vmem:[#allocation13 + $0x38] sm:$0xff] %v4035_v52 }
0x190a   :  { %5295 = shalt.err (!%p5292_p6)
}
0x190b   :  { %4056 = dma.vmem_to_hbm [thread:$0]  %s4051_s15, 1024, %s5938_s12, [#allocation4], %s5318_s13, %s5318_s13, %s5319_s14  }
0x190c   :  { %5312 = dma.done.wait [#allocation4], 1024  }
0x190d   :  { %5313 = vsyncadd [#allocation4], 4294966272 }
0x190e   :  { %4060 = vsyncpa [#allocation3], 1 }
0x190f   :  { %4061 = vsyncpa [#allocation6], 1 }
0x1910   :  { %4062 = vsyncpa [#allocation9], 1 }
0x1911   :  { %4063 = vsyncpa [#allocation12], 1 }
0x1912   :  { %4064 = vsyncpa [#allocation4], 1 }

</bundles_post_ra>
